<compile_context>
chip_gen: v5e
topology: v5e:2x2
jax: 0.10.0
libtpu: 0.0.40
codegen_flags: <defaults>
</compile_context>

<pallas_src>
import functools

import jax
import jax.numpy as jnp
import numpy as np
from jax import lax
from jax.experimental import pallas as pl
from jax.experimental.pallas import tpu as pltpu

HIGH = jax.lax.Precision.HIGHEST


def _hardswish(x):
    return x * jnp.clip(x + 3.0, 0.0, 6.0) * (1.0 / 6.0)


def _hardsigmoid(x):
    return jnp.clip(x * (1.0 / 6.0) + 0.5, 0.0, 1.0)


def _irb_kernel(px_ref, x_ref, w1_ref, b1_ref, wdw_ref, b2_ref,
                wse1_ref, bse1_ref, wse2_ref, bse2_ref, wp_ref, b3_ref,
                o_ref, *, H, W, use_res):
    HW = H * W

    # ---- 1x1 expansion conv (bf16 MXU, f32 accumulate); BN scale folded into w1 ----
    h = jnp.dot(x_ref[0].astype(jnp.bfloat16), w1_ref[...],
                preferred_element_type=jnp.float32)
    h = _hardswish(h + b1_ref[...])                       # (HW, Cmid) f32

    # ---- 3x3 depthwise conv (stride 1, pad 1) as 9 masked sublane rolls ----
    # Spatial offset (dy-1, dx-1) <=> flat offset o = (dy-1)*W + (dx-1); rolling by
    # -o along the flattened pixel axis brings h[p+o] to row p, and the boundary
    # rows/cols are masked out to reproduce zero padding.
    pidx = lax.broadcasted_iota(jnp.int32, (HW, 1), 0)    # flat pixel index p
    px = px_ref[...]                                      # p % W (precomputed in wrapper)
    wdw = wdw_ref[...]                                    # (9, Cmid), BN scale folded
    acc = h * wdw[4:5, :]                                 # center tap: no shift, no mask
    for dy in range(3):
        for dx in range(3):
            if dy == 1 and dx == 1:
                continue
            off = (dy - 1) * W + (dx - 1)
            tap = pltpu.roll(h, shift=(-off) % HW, axis=0)
            conds = []
            if dy == 0:
                conds.append(pidx >= W)                   # y - 1 >= 0
            if dy == 2:
                conds.append(pidx < HW - W)               # y + 1 <= H - 1
            if dx == 0:
                conds.append(px >= 1)                     # x - 1 >= 0
            if dx == 2:
                conds.append(px < W - 1)                  # x + 1 <= W - 1
            mask = conds[0]
            for c in conds[1:]:
                mask = jnp.logical_and(mask, c)
            k = dy * 3 + dx
            acc = acc + jnp.where(mask, tap, 0.0) * wdw[k:k + 1, :]
    h2 = _hardswish(acc + b2_ref[...])                    # (HW, Cmid)

    # ---- Squeeze-and-Excite on the VPU/XLU (no M=1 MXU push/drain) ----
    se = jnp.mean(h2, axis=0, keepdims=True)              # (1, Cmid)
    t = jnp.sum(wse1_ref[...] * se, axis=1, keepdims=True) + bse1_ref[...]
    t = jnp.maximum(t, 0.0)                               # (Cred, 1)
    g = jnp.sum(wse2_ref[...] * t, axis=0, keepdims=True) + bse2_ref[...]
    h2 = h2 * _hardsigmoid(g)                             # (HW, Cmid)

    # ---- 1x1 projection conv (bf16 MXU); BN scale folded, bias added ----
    out = jnp.dot(h2.astype(jnp.bfloat16), wp_ref[...],
                  preferred_element_type=jnp.float32) + b3_ref[...]
    if use_res:
        out = out + x_ref[0]                              # residual (f32)
    o_ref[0] = out.astype(o_ref.dtype)


def inverted_residual_block(x_nchw, p, *, stride=1):
    # TODO(synk): stride=2 depthwise path not implemented; this config uses stride=1.
    assert stride == 1
    x = jnp.transpose(x_nchw, (0, 2, 3, 1)).astype(jnp.float32)   # NHWC
    N, H, W, Cin = x.shape
    HW = H * W
    eps = 1e-5

    def fold_bn(g, b, m, v):
        s = g / jnp.sqrt(v + eps)
        return s, b - m * s

    s1, b1 = fold_bn(p["bn1_g"], p["bn1_b"], p["bn1_m"], p["bn1_v"])
    s2, b2 = fold_bn(p["bn2_g"], p["bn2_b"], p["bn2_m"], p["bn2_v"])
    s3, b3 = fold_bn(p["bn3_g"], p["bn3_b"], p["bn3_m"], p["bn3_v"])

    # BN scales folded into conv weights; 1x1 weights cast to bf16 (single-pass MXU).
    w1 = (jnp.transpose(p["w_exp"][:, :, 0, 0], (1, 0)) * s1[None, :]).astype(jnp.bfloat16)
    Cmid = w1.shape[1]
    wdw = (jnp.transpose(p["w_dw"][:, 0, :, :], (1, 2, 0)).reshape(9, Cmid)
           * s2[None, :]).astype(jnp.float32)                       # (9, Cmid)
    wse1 = p["w_se1"].astype(jnp.float32)                           # (Cred, Cmid)
    bse1 = p["b_se1"].reshape(-1, 1).astype(jnp.float32)            # (Cred, 1)
    wse2 = jnp.transpose(p["w_se2"], (1, 0)).astype(jnp.float32)    # (Cred, Cmid)
    bse2 = p["b_se2"].reshape(1, -1).astype(jnp.float32)            # (1, Cmid)
    wp = (jnp.transpose(p["w_proj"][:, :, 0, 0], (1, 0)) * s3[None, :]).astype(jnp.bfloat16)
    Cout = wp.shape[1]
    b1 = b1.reshape(1, -1).astype(jnp.float32)
    b2 = b2.reshape(1, -1).astype(jnp.float32)
    b3 = b3.reshape(1, -1).astype(jnp.float32)

    use_res = (stride == 1 and Cin == Cout)

    x_flat = x.reshape(N, HW, Cin)
    px = (jnp.arange(HW, dtype=jnp.int32) % W).reshape(HW, 1)   # per-pixel column index

    def full_spec(a):
        return pl.BlockSpec(a.shape, lambda n: (0,) * a.ndim)

    params = (w1, b1, wdw, b2, wse1, bse1, wse2, bse2, wp, b3)
    in_specs = ([full_spec(px),
                 pl.BlockSpec((1, HW, Cin), lambda n: (n, 0, 0))]
                + [full_spec(a) for a in params])

    out = pl.pallas_call(
        functools.partial(_irb_kernel, H=H, W=W, use_res=use_res),
        out_shape=jax.ShapeDtypeStruct((N, HW, Cout), jnp.float32),
        grid_spec=pltpu.PrefetchScalarGridSpec(
            num_scalar_prefetch=0,
            grid=(N,),                                    # one image per grid step
            in_specs=in_specs,
            out_specs=pl.BlockSpec((1, HW, Cout), lambda n: (n, 0, 0)),
        ),
        compiler_params=pltpu.CompilerParams(dimension_semantics=("parallel",)),
    )(px, x_flat, *params)

    out = out.reshape(N, H, W, Cout)
    return jnp.transpose(out, (0, 3, 1, 2))               # back to NCHW


# ---------------- pure-JAX reference (mirrors the PyTorch module, eval BN) ----------------
def ref_forward(x_nchw, p):
    eps = 1e-5

    def bn(h, g, b, m, v):
        return (h - m[None, :, None, None]) / jnp.sqrt(v[None, :, None, None] + eps) \
            * g[None, :, None, None] + b[None, :, None, None]

    hs = lambda t: t * jnp.clip(t + 3.0, 0.0, 6.0) / 6.0

    dn = ("NCHW", "OIHW", "NCHW")
    h = lax.conv_general_dilated(x_nchw, p["w_exp"], (1, 1), "VALID",
                                 dimension_numbers=dn, precision=HIGH)
    h = hs(bn(h, p["bn1_g"], p["bn1_b"], p["bn1_m"], p["bn1_v"]))
    h = lax.conv_general_dilated(h, p["w_dw"], (1, 1), ((1, 1), (1, 1)),
                                 dimension_numbers=dn,
                                 feature_group_count=h.shape[1], precision=HIGH)
    h = hs(bn(h, p["bn2_g"], p["bn2_b"], p["bn2_m"], p["bn2_v"]))
    y = h.mean(axis=(2, 3))
    y = jnp.maximum(jnp.dot(y, p["w_se1"].T, precision=HIGH) + p["b_se1"], 0.0)
    y = jnp.clip((jnp.dot(y, p["w_se2"].T, precision=HIGH) + p["b_se2"]) / 6.0 + 0.5, 0.0, 1.0)
    h = h * y[:, :, None, None]
    h = lax.conv_general_dilated(h, p["w_proj"], (1, 1), "VALID",
                                 dimension_numbers=dn, precision=HIGH)
    h = bn(h, p["bn3_g"], p["bn3_b"], p["bn3_m"], p["bn3_v"])
    return x_nchw + h


if __name__ == "__main__":
    # InvertedResidualBlock(input_channel=8, output_channel=8, kernel_size=3,
    #                       stride=1, expand_ratio=4, use_hs=True, use_se=True)
    N, Cin, H, W = 2, 8, 16, 16
    Cout, expand_ratio = 8, 4
    Cmid = Cin * expand_ratio          # 32
    Cred = Cmid // 8                   # 4  (SE reduction=8)

    keys = jax.random.split(jax.random.PRNGKey(0), 20)
    u = lambda k, s: jax.random.uniform(k, s, jnp.float32, 0.5, 1.5)
    n = lambda k, s, sc=0.2: jax.random.normal(k, s, jnp.float32) * sc

    p = {
        "w_exp": n(keys[0], (Cmid, Cin, 1, 1)),
        "bn1_g": u(keys[1], (Cmid,)), "bn1_b": n(keys[2], (Cmid,), 0.1),
        "bn1_m": n(keys[3], (Cmid,), 0.1), "bn1_v": u(keys[4], (Cmid,)),
        "w_dw": n(keys[5], (Cmid, 1, 3, 3)),
        "bn2_g": u(keys[6], (Cmid,)), "bn2_b": n(keys[7], (Cmid,), 0.1),
        "bn2_m": n(keys[8], (Cmid,), 0.1), "bn2_v": u(keys[9], (Cmid,)),
        "w_se1": n(keys[10], (Cred, Cmid)), "b_se1": n(keys[11], (Cred,), 0.1),
        "w_se2": n(keys[12], (Cmid, Cred)), "b_se2": n(keys[13], (Cmid,), 0.1),
        "w_proj": n(keys[14], (Cout, Cmid, 1, 1)),
        "bn3_g": u(keys[15], (Cout,)), "bn3_b": n(keys[16], (Cout,), 0.1),
        "bn3_m": n(keys[17], (Cout,), 0.1), "bn3_v": u(keys[18], (Cout,)),
    }
    x = jax.random.normal(keys[19], (N, Cin, H, W), jnp.float32)

    out = jax.block_until_ready(inverted_residual_block(x, p))
    ref = jax.block_until_ready(ref_forward(x, p))
    assert out.shape == ref.shape == (N, Cout, H, W)
    np.testing.assert_allclose(np.asarray(out), np.asarray(ref), atol=2e-2, rtol=2e-2)
    print("KERNEL_OK")
</pallas_src>

<mosaic_0001>
module attributes {stable_mosaic.version = 11 : i64} {
  func.func @_irb_kernel(%arg0: i32, %arg1: memref<256x1xi32, #tpu.memory_space<vmem>>, %arg2: memref<1x256x8xf32, #tpu.memory_space<vmem>>, %arg3: memref<8x32xbf16, #tpu.memory_space<vmem>>, %arg4: memref<1x32xf32, #tpu.memory_space<vmem>>, %arg5: memref<9x32xf32, #tpu.memory_space<vmem>>, %arg6: memref<1x32xf32, #tpu.memory_space<vmem>>, %arg7: memref<4x32xf32, #tpu.memory_space<vmem>>, %arg8: memref<4x1xf32, #tpu.memory_space<vmem>>, %arg9: memref<4x32xf32, #tpu.memory_space<vmem>>, %arg10: memref<1x32xf32, #tpu.memory_space<vmem>>, %arg11: memref<32x8xbf16, #tpu.memory_space<vmem>>, %arg12: memref<1x8xf32, #tpu.memory_space<vmem>>, %arg13: memref<1x256x8xf32, #tpu.memory_space<vmem>>) attributes {dimension_semantics = [#tpu.dimension_semantics<parallel>], iteration_bounds = array<i64: 2>, scalar_prefetch = 0 : i64, scratch_operands = 0 : i64, tpu.core_type = #tpu.core_type<tc>, window_params = [{pipeline_mode = #tpu.pipeline_mode<synchronous>, transform_indices = @transform_0, window_bounds = array<i64: 256, 1>}, {transform_indices = @transform_1, window_bounds = array<i64: 1, 256, 8>}, {pipeline_mode = #tpu.pipeline_mode<synchronous>, transform_indices = @transform_2, window_bounds = array<i64: 8, 32>}, {pipeline_mode = #tpu.pipeline_mode<synchronous>, transform_indices = @transform_3, window_bounds = array<i64: 1, 32>}, {pipeline_mode = #tpu.pipeline_mode<synchronous>, transform_indices = @transform_4, window_bounds = array<i64: 9, 32>}, {pipeline_mode = #tpu.pipeline_mode<synchronous>, transform_indices = @transform_5, window_bounds = array<i64: 1, 32>}, {pipeline_mode = #tpu.pipeline_mode<synchronous>, transform_indices = @transform_6, window_bounds = array<i64: 4, 32>}, {pipeline_mode = #tpu.pipeline_mode<synchronous>, transform_indices = @transform_7, window_bounds = array<i64: 4, 1>}, {pipeline_mode = #tpu.pipeline_mode<synchronous>, transform_indices = @transform_8, window_bounds = array<i64: 4, 32>}, {pipeline_mode = #tpu.pipeline_mode<synchronous>, transform_indices = @transform_9, window_bounds = array<i64: 1, 32>}, {pipeline_mode = #tpu.pipeline_mode<synchronous>, transform_indices = @transform_10, window_bounds = array<i64: 32, 8>}, {pipeline_mode = #tpu.pipeline_mode<synchronous>, transform_indices = @transform_11, window_bounds = array<i64: 1, 8>}, {transform_indices = @transform_12, window_bounds = array<i64: 1, 256, 8>}]} {
    %c0 = arith.constant 0 : index
    %c0_0 = arith.constant 0 : index
    %c0_1 = arith.constant 0 : index
    %0 = vector.load %arg2[%c0, %c0_0, %c0_1] : memref<1x256x8xf32, #tpu.memory_space<vmem>>, vector<1x256x8xf32>
    %1 = vector.shape_cast %0 : vector<1x256x8xf32> to vector<256x8xf32>
    %2 = arith.truncf %1 : vector<256x8xf32> to vector<256x8xbf16>
    %c0_2 = arith.constant 0 : index
    %c0_3 = arith.constant 0 : index
    %3 = vector.load %arg3[%c0_2, %c0_3] : memref<8x32xbf16, #tpu.memory_space<vmem>>, vector<8x32xbf16>
    %cst = arith.constant dense<0.000000e+00> : vector<256x32xf32>
    %4 = tpu.matmul %2, %3, %cst {dimension_numbers = #tpu.dot_dimension_numbers<[1], [0], [0], [1], [0, 0, 1, 1], [], []>} : vector<256x8xbf16>, vector<8x32xbf16>, vector<256x32xf32> -> vector<256x32xf32>
    %c0_4 = arith.constant 0 : index
    %c0_5 = arith.constant 0 : index
    %5 = vector.load %arg4[%c0_4, %c0_5] : memref<1x32xf32, #tpu.memory_space<vmem>>, vector<1x32xf32>
    %6 = vector.broadcast %5 : vector<1x32xf32> to vector<256x32xf32>
    %7 = arith.addf %4, %6 : vector<256x32xf32>
    %cst_6 = arith.constant 3.000000e+00 : f32
    %8 = vector.broadcast %cst_6 : f32 to vector<256x32xf32>
    %9 = arith.addf %7, %8 : vector<256x32xf32>
    %cst_7 = arith.constant 0.000000e+00 : f32
    %cst_8 = arith.constant 6.000000e+00 : f32
    %10 = vector.broadcast %cst_7 : f32 to vector<256x32xf32>
    %11 = arith.maximumf %10, %9 : vector<256x32xf32>
    %12 = vector.broadcast %cst_8 : f32 to vector<256x32xf32>
    %13 = arith.minimumf %12, %11 : vector<256x32xf32>
    %14 = arith.mulf %7, %13 : vector<256x32xf32>
    %cst_9 = arith.constant 0.166666672 : f32
    %15 = vector.broadcast %cst_9 : f32 to vector<256x32xf32>
    %16 = arith.mulf %14, %15 : vector<256x32xf32>
    %17 = tpu.iota {dimensions = array<i32: 0>} : vector<256x1xi32>
    %c0_10 = arith.constant 0 : index
    %c0_11 = arith.constant 0 : index
    %18 = vector.load %arg1[%c0_10, %c0_11] : memref<256x1xi32, #tpu.memory_space<vmem>>, vector<256x1xi32>
    %c0_12 = arith.constant 0 : index
    %c0_13 = arith.constant 0 : index
    %19 = vector.load %arg5[%c0_12, %c0_13] : memref<9x32xf32, #tpu.memory_space<vmem>>, vector<9x32xf32>
    %20 = vector.extract_strided_slice %19 {offsets = [4, 0], sizes = [1, 32], strides = [1, 1]} : vector<9x32xf32> to vector<1x32xf32>
    %21 = vector.broadcast %20 : vector<1x32xf32> to vector<256x32xf32>
    %22 = arith.mulf %16, %21 : vector<256x32xf32>
    %c17_i32 = arith.constant 17 : i32
    %23 = tpu.dynamic_rotate %16 by %c17_i32 dim 0 : vector<256x32xf32>, i32 -> vector<256x32xf32>
    %c16_i32 = arith.constant 16 : i32
    %24 = vector.broadcast %c16_i32 : i32 to vector<256x1xi32>
    %25 = arith.cmpi sge, %17, %24 : vector<256x1xi32>
    %c1_i32 = arith.constant 1 : i32
    %26 = vector.broadcast %c1_i32 : i32 to vector<256x1xi32>
    %27 = arith.cmpi sge, %18, %26 : vector<256x1xi32>
    %28 = arith.andi %25, %27 : vector<256x1xi1>
    %cst_14 = arith.constant 0.000000e+00 : f32
    %29 = vector.shape_cast %28 : vector<256x1xi1> to vector<256x1xi1>
    %30 = vector.broadcast %29 : vector<256x1xi1> to vector<256x32xi1>
    %31 = vector.broadcast %cst_14 : f32 to vector<256x32xf32>
    %32 = arith.select %30, %23, %31 : vector<256x32xi1>, vector<256x32xf32>
    %33 = vector.extract_strided_slice %19 {offsets = [0, 0], sizes = [1, 32], strides = [1, 1]} : vector<9x32xf32> to vector<1x32xf32>
    %34 = vector.broadcast %33 : vector<1x32xf32> to vector<256x32xf32>
    %35 = arith.mulf %32, %34 : vector<256x32xf32>
    %36 = arith.addf %22, %35 : vector<256x32xf32>
    %c16_i32_15 = arith.constant 16 : i32
    %37 = tpu.dynamic_rotate %16 by %c16_i32_15 dim 0 : vector<256x32xf32>, i32 -> vector<256x32xf32>
    %c16_i32_16 = arith.constant 16 : i32
    %38 = vector.broadcast %c16_i32_16 : i32 to vector<256x1xi32>
    %39 = arith.cmpi sge, %17, %38 : vector<256x1xi32>
    %cst_17 = arith.constant 0.000000e+00 : f32
    %40 = vector.shape_cast %39 : vector<256x1xi1> to vector<256x1xi1>
    %41 = vector.broadcast %40 : vector<256x1xi1> to vector<256x32xi1>
    %42 = vector.broadcast %cst_17 : f32 to vector<256x32xf32>
    %43 = arith.select %41, %37, %42 : vector<256x32xi1>, vector<256x32xf32>
    %44 = vector.extract_strided_slice %19 {offsets = [1, 0], sizes = [1, 32], strides = [1, 1]} : vector<9x32xf32> to vector<1x32xf32>
    %45 = vector.broadcast %44 : vector<1x32xf32> to vector<256x32xf32>
    %46 = arith.mulf %43, %45 : vector<256x32xf32>
    %47 = arith.addf %36, %46 : vector<256x32xf32>
    %c15_i32 = arith.constant 15 : i32
    %48 = tpu.dynamic_rotate %16 by %c15_i32 dim 0 : vector<256x32xf32>, i32 -> vector<256x32xf32>
    %c16_i32_18 = arith.constant 16 : i32
    %49 = vector.broadcast %c16_i32_18 : i32 to vector<256x1xi32>
    %50 = arith.cmpi sge, %17, %49 : vector<256x1xi32>
    %c15_i32_19 = arith.constant 15 : i32
    %51 = vector.broadcast %c15_i32_19 : i32 to vector<256x1xi32>
    %52 = arith.cmpi slt, %18, %51 : vector<256x1xi32>
    %53 = arith.andi %50, %52 : vector<256x1xi1>
    %cst_20 = arith.constant 0.000000e+00 : f32
    %54 = vector.shape_cast %53 : vector<256x1xi1> to vector<256x1xi1>
    %55 = vector.broadcast %54 : vector<256x1xi1> to vector<256x32xi1>
    %56 = vector.broadcast %cst_20 : f32 to vector<256x32xf32>
    %57 = arith.select %55, %48, %56 : vector<256x32xi1>, vector<256x32xf32>
    %58 = vector.extract_strided_slice %19 {offsets = [2, 0], sizes = [1, 32], strides = [1, 1]} : vector<9x32xf32> to vector<1x32xf32>
    %59 = vector.broadcast %58 : vector<1x32xf32> to vector<256x32xf32>
    %60 = arith.mulf %57, %59 : vector<256x32xf32>
    %61 = arith.addf %47, %60 : vector<256x32xf32>
    %c1_i32_21 = arith.constant 1 : i32
    %62 = tpu.dynamic_rotate %16 by %c1_i32_21 dim 0 : vector<256x32xf32>, i32 -> vector<256x32xf32>
    %c1_i32_22 = arith.constant 1 : i32
    %63 = vector.broadcast %c1_i32_22 : i32 to vector<256x1xi32>
    %64 = arith.cmpi sge, %18, %63 : vector<256x1xi32>
    %cst_23 = arith.constant 0.000000e+00 : f32
    %65 = vector.shape_cast %64 : vector<256x1xi1> to vector<256x1xi1>
    %66 = vector.broadcast %65 : vector<256x1xi1> to vector<256x32xi1>
    %67 = vector.broadcast %cst_23 : f32 to vector<256x32xf32>
    %68 = arith.select %66, %62, %67 : vector<256x32xi1>, vector<256x32xf32>
    %69 = vector.extract_strided_slice %19 {offsets = [3, 0], sizes = [1, 32], strides = [1, 1]} : vector<9x32xf32> to vector<1x32xf32>
    %70 = vector.broadcast %69 : vector<1x32xf32> to vector<256x32xf32>
    %71 = arith.mulf %68, %70 : vector<256x32xf32>
    %72 = arith.addf %61, %71 : vector<256x32xf32>
    %c255_i32 = arith.constant 255 : i32
    %73 = tpu.dynamic_rotate %16 by %c255_i32 dim 0 : vector<256x32xf32>, i32 -> vector<256x32xf32>
    %c15_i32_24 = arith.constant 15 : i32
    %74 = vector.broadcast %c15_i32_24 : i32 to vector<256x1xi32>
    %75 = arith.cmpi slt, %18, %74 : vector<256x1xi32>
    %cst_25 = arith.constant 0.000000e+00 : f32
    %76 = vector.shape_cast %75 : vector<256x1xi1> to vector<256x1xi1>
    %77 = vector.broadcast %76 : vector<256x1xi1> to vector<256x32xi1>
    %78 = vector.broadcast %cst_25 : f32 to vector<256x32xf32>
    %79 = arith.select %77, %73, %78 : vector<256x32xi1>, vector<256x32xf32>
    %80 = vector.extract_strided_slice %19 {offsets = [5, 0], sizes = [1, 32], strides = [1, 1]} : vector<9x32xf32> to vector<1x32xf32>
    %81 = vector.broadcast %80 : vector<1x32xf32> to vector<256x32xf32>
    %82 = arith.mulf %79, %81 : vector<256x32xf32>
    %83 = arith.addf %72, %82 : vector<256x32xf32>
    %c241_i32 = arith.constant 241 : i32
    %84 = tpu.dynamic_rotate %16 by %c241_i32 dim 0 : vector<256x32xf32>, i32 -> vector<256x32xf32>
    %c240_i32 = arith.constant 240 : i32
    %85 = vector.broadcast %c240_i32 : i32 to vector<256x1xi32>
    %86 = arith.cmpi slt, %17, %85 : vector<256x1xi32>
    %c1_i32_26 = arith.constant 1 : i32
    %87 = vector.broadcast %c1_i32_26 : i32 to vector<256x1xi32>
    %88 = arith.cmpi sge, %18, %87 : vector<256x1xi32>
    %89 = arith.andi %86, %88 : vector<256x1xi1>
    %cst_27 = arith.constant 0.000000e+00 : f32
    %90 = vector.shape_cast %89 : vector<256x1xi1> to vector<256x1xi1>
    %91 = vector.broadcast %90 : vector<256x1xi1> to vector<256x32xi1>
    %92 = vector.broadcast %cst_27 : f32 to vector<256x32xf32>
    %93 = arith.select %91, %84, %92 : vector<256x32xi1>, vector<256x32xf32>
    %94 = vector.extract_strided_slice %19 {offsets = [6, 0], sizes = [1, 32], strides = [1, 1]} : vector<9x32xf32> to vector<1x32xf32>
    %95 = vector.broadcast %94 : vector<1x32xf32> to vector<256x32xf32>
    %96 = arith.mulf %93, %95 : vector<256x32xf32>
    %97 = arith.addf %83, %96 : vector<256x32xf32>
    %c240_i32_28 = arith.constant 240 : i32
    %98 = tpu.dynamic_rotate %16 by %c240_i32_28 dim 0 : vector<256x32xf32>, i32 -> vector<256x32xf32>
    %c240_i32_29 = arith.constant 240 : i32
    %99 = vector.broadcast %c240_i32_29 : i32 to vector<256x1xi32>
    %100 = arith.cmpi slt, %17, %99 : vector<256x1xi32>
    %cst_30 = arith.constant 0.000000e+00 : f32
    %101 = vector.shape_cast %100 : vector<256x1xi1> to vector<256x1xi1>
    %102 = vector.broadcast %101 : vector<256x1xi1> to vector<256x32xi1>
    %103 = vector.broadcast %cst_30 : f32 to vector<256x32xf32>
    %104 = arith.select %102, %98, %103 : vector<256x32xi1>, vector<256x32xf32>
    %105 = vector.extract_strided_slice %19 {offsets = [7, 0], sizes = [1, 32], strides = [1, 1]} : vector<9x32xf32> to vector<1x32xf32>
    %106 = vector.broadcast %105 : vector<1x32xf32> to vector<256x32xf32>
    %107 = arith.mulf %104, %106 : vector<256x32xf32>
    %108 = arith.addf %97, %107 : vector<256x32xf32>
    %c239_i32 = arith.constant 239 : i32
    %109 = tpu.dynamic_rotate %16 by %c239_i32 dim 0 : vector<256x32xf32>, i32 -> vector<256x32xf32>
    %c240_i32_31 = arith.constant 240 : i32
    %110 = vector.broadcast %c240_i32_31 : i32 to vector<256x1xi32>
    %111 = arith.cmpi slt, %17, %110 : vector<256x1xi32>
    %c15_i32_32 = arith.constant 15 : i32
    %112 = vector.broadcast %c15_i32_32 : i32 to vector<256x1xi32>
    %113 = arith.cmpi slt, %18, %112 : vector<256x1xi32>
    %114 = arith.andi %111, %113 : vector<256x1xi1>
    %cst_33 = arith.constant 0.000000e+00 : f32
    %115 = vector.shape_cast %114 : vector<256x1xi1> to vector<256x1xi1>
    %116 = vector.broadcast %115 : vector<256x1xi1> to vector<256x32xi1>
    %117 = vector.broadcast %cst_33 : f32 to vector<256x32xf32>
    %118 = arith.select %116, %109, %117 : vector<256x32xi1>, vector<256x32xf32>
    %119 = vector.extract_strided_slice %19 {offsets = [8, 0], sizes = [1, 32], strides = [1, 1]} : vector<9x32xf32> to vector<1x32xf32>
    %120 = vector.broadcast %119 : vector<1x32xf32> to vector<256x32xf32>
    %121 = arith.mulf %118, %120 : vector<256x32xf32>
    %122 = arith.addf %108, %121 : vector<256x32xf32>
    %c0_34 = arith.constant 0 : index
    %c0_35 = arith.constant 0 : index
    %123 = vector.load %arg6[%c0_34, %c0_35] : memref<1x32xf32, #tpu.memory_space<vmem>>, vector<1x32xf32>
    %124 = vector.broadcast %123 : vector<1x32xf32> to vector<256x32xf32>
    %125 = arith.addf %122, %124 : vector<256x32xf32>
    %cst_36 = arith.constant 3.000000e+00 : f32
    %126 = vector.broadcast %cst_36 : f32 to vector<256x32xf32>
    %127 = arith.addf %125, %126 : vector<256x32xf32>
    %cst_37 = arith.constant 0.000000e+00 : f32
    %cst_38 = arith.constant 6.000000e+00 : f32
    %128 = vector.broadcast %cst_37 : f32 to vector<256x32xf32>
    %129 = arith.maximumf %128, %127 : vector<256x32xf32>
    %130 = vector.broadcast %cst_38 : f32 to vector<256x32xf32>
    %131 = arith.minimumf %130, %129 : vector<256x32xf32>
    %132 = arith.mulf %125, %131 : vector<256x32xf32>
    %cst_39 = arith.constant 0.166666672 : f32
    %133 = vector.broadcast %cst_39 : f32 to vector<256x32xf32>
    %134 = arith.mulf %132, %133 : vector<256x32xf32>
    %cst_40 = arith.constant dense<0.000000e+00> : vector<32xf32>
    %135 = vector.multi_reduction <add>, %134, %cst_40 [0] : vector<256x32xf32> to vector<32xf32>
    %136 = vector.shape_cast %135 : vector<32xf32> to vector<1x32xf32>
    %cst_41 = arith.constant 2.560000e+02 : f32
    %137 = vector.broadcast %cst_41 : f32 to vector<1x32xf32>
    %138 = arith.divf %136, %137 : vector<1x32xf32>
    %c0_42 = arith.constant 0 : index
    %c0_43 = arith.constant 0 : index
    %139 = vector.load %arg7[%c0_42, %c0_43] : memref<4x32xf32, #tpu.memory_space<vmem>>, vector<4x32xf32>
    %140 = vector.broadcast %138 : vector<1x32xf32> to vector<4x32xf32>
    %141 = arith.mulf %139, %140 : vector<4x32xf32>
    %cst_44 = arith.constant dense<0.000000e+00> : vector<4xf32>
    %142 = vector.multi_reduction <add>, %141, %cst_44 [1] : vector<4x32xf32> to vector<4xf32>
    %143 = vector.shape_cast %142 : vector<4xf32> to vector<4x1xf32>
    %c0_45 = arith.constant 0 : index
    %c0_46 = arith.constant 0 : index
    %144 = vector.load %arg8[%c0_45, %c0_46] : memref<4x1xf32, #tpu.memory_space<vmem>>, vector<4x1xf32>
    %145 = arith.addf %143, %144 : vector<4x1xf32>
    %cst_47 = arith.constant 0.000000e+00 : f32
    %146 = vector.broadcast %cst_47 : f32 to vector<4x1xf32>
    %147 = arith.maximumf %145, %146 : vector<4x1xf32>
    %c0_48 = arith.constant 0 : index
    %c0_49 = arith.constant 0 : index
    %148 = vector.load %arg9[%c0_48, %c0_49] : memref<4x32xf32, #tpu.memory_space<vmem>>, vector<4x32xf32>
    %149 = vector.broadcast %147 : vector<4x1xf32> to vector<4x32xf32>
    %150 = arith.mulf %148, %149 : vector<4x32xf32>
    %cst_50 = arith.constant dense<0.000000e+00> : vector<32xf32>
    %151 = vector.multi_reduction <add>, %150, %cst_50 [0] : vector<4x32xf32> to vector<32xf32>
    %152 = vector.shape_cast %151 : vector<32xf32> to vector<1x32xf32>
    %c0_51 = arith.constant 0 : index
    %c0_52 = arith.constant 0 : index
    %153 = vector.load %arg10[%c0_51, %c0_52] : memref<1x32xf32, #tpu.memory_space<vmem>>, vector<1x32xf32>
    %154 = arith.addf %152, %153 : vector<1x32xf32>
    %cst_53 = arith.constant 0.166666672 : f32
    %155 = vector.broadcast %cst_53 : f32 to vector<1x32xf32>
    %156 = arith.mulf %154, %155 : vector<1x32xf32>
    %cst_54 = arith.constant 5.000000e-01 : f32
    %157 = vector.broadcast %cst_54 : f32 to vector<1x32xf32>
    %158 = arith.addf %156, %157 : vector<1x32xf32>
    %cst_55 = arith.constant 0.000000e+00 : f32
    %cst_56 = arith.constant 1.000000e+00 : f32
    %159 = vector.broadcast %cst_55 : f32 to vector<1x32xf32>
    %160 = arith.maximumf %159, %158 : vector<1x32xf32>
    %161 = vector.broadcast %cst_56 : f32 to vector<1x32xf32>
    %162 = arith.minimumf %161, %160 : vector<1x32xf32>
    %163 = vector.broadcast %162 : vector<1x32xf32> to vector<256x32xf32>
    %164 = arith.mulf %134, %163 : vector<256x32xf32>
    %165 = arith.truncf %164 : vector<256x32xf32> to vector<256x32xbf16>
    %c0_57 = arith.constant 0 : index
    %c0_58 = arith.constant 0 : index
    %166 = vector.load %arg11[%c0_57, %c0_58] : memref<32x8xbf16, #tpu.memory_space<vmem>>, vector<32x8xbf16>
    %cst_59 = arith.constant dense<0.000000e+00> : vector<256x8xf32>
    %167 = tpu.matmul %165, %166, %cst_59 {dimension_numbers = #tpu.dot_dimension_numbers<[1], [0], [0], [1], [0, 0, 1, 1], [], []>} : vector<256x32xbf16>, vector<32x8xbf16>, vector<256x8xf32> -> vector<256x8xf32>
    %c0_60 = arith.constant 0 : index
    %c0_61 = arith.constant 0 : index
    %168 = vector.load %arg12[%c0_60, %c0_61] : memref<1x8xf32, #tpu.memory_space<vmem>>, vector<1x8xf32>
    %169 = vector.broadcast %168 : vector<1x8xf32> to vector<256x8xf32>
    %170 = arith.addf %167, %169 : vector<256x8xf32>
    %c0_62 = arith.constant 0 : index
    %c0_63 = arith.constant 0 : index
    %c0_64 = arith.constant 0 : index
    %171 = vector.load %arg2[%c0_62, %c0_63, %c0_64] : memref<1x256x8xf32, #tpu.memory_space<vmem>>, vector<1x256x8xf32>
    %172 = vector.shape_cast %171 : vector<1x256x8xf32> to vector<256x8xf32>
    %173 = arith.addf %170, %172 : vector<256x8xf32>
    %c0_65 = arith.constant 0 : index
    %c0_66 = arith.constant 0 : index
    %c0_67 = arith.constant 0 : index
    %174 = vector.load %arg13[%c0_65, %c0_66, %c0_67] : memref<1x256x8xf32, #tpu.memory_space<vmem>>, vector<1x256x8xf32>
    %175 = vector.shape_cast %174 : vector<1x256x8xf32> to vector<256x8xf32>
    %176 = vector.shape_cast %173 : vector<256x8xf32> to vector<1x256x8xf32>
    tpu.vector_store %arg13[%c0_65, %c0_66, %c0_67], %176 {strides = array<i32>} : memref<1x256x8xf32, #tpu.memory_space<vmem>>, vector<1x256x8xf32>,
    return
  }
  func.func @transform_0(%arg0: i32) -> (i32, i32) {
    %c0_i32 = arith.constant 0 : i32
    %c0_i32_0 = arith.constant 0 : i32
    %c0_i32_1 = arith.constant 0 : i32
    return %c0_i32, %c0_i32_0 : i32, i32
  }
  func.func @transform_1(%arg0: i32) -> (i32, i32, i32) {
    %c0_i32 = arith.constant 0 : i32
    %c0_i32_0 = arith.constant 0 : i32
    %c0_i32_1 = arith.constant 0 : i32
    return %arg0, %c0_i32, %c0_i32_0 : i32, i32, i32
  }
  func.func @transform_2(%arg0: i32) -> (i32, i32) {
    %c0_i32 = arith.constant 0 : i32
    %c0_i32_0 = arith.constant 0 : i32
    %c0_i32_1 = arith.constant 0 : i32
    return %c0_i32, %c0_i32_0 : i32, i32
  }
  func.func @transform_3(%arg0: i32) -> (i32, i32) {
    %c0_i32 = arith.constant 0 : i32
    %c0_i32_0 = arith.constant 0 : i32
    %c0_i32_1 = arith.constant 0 : i32
    return %c0_i32, %c0_i32_0 : i32, i32
  }
  func.func @transform_4(%arg0: i32) -> (i32, i32) {
    %c0_i32 = arith.constant 0 : i32
    %c0_i32_0 = arith.constant 0 : i32
    %c0_i32_1 = arith.constant 0 : i32
    return %c0_i32, %c0_i32_0 : i32, i32
  }
  func.func @transform_5(%arg0: i32) -> (i32, i32) {
    %c0_i32 = arith.constant 0 : i32
    %c0_i32_0 = arith.constant 0 : i32
    %c0_i32_1 = arith.constant 0 : i32
    return %c0_i32, %c0_i32_0 : i32, i32
  }
  func.func @transform_6(%arg0: i32) -> (i32, i32) {
    %c0_i32 = arith.constant 0 : i32
    %c0_i32_0 = arith.constant 0 : i32
    %c0_i32_1 = arith.constant 0 : i32
    return %c0_i32, %c0_i32_0 : i32, i32
  }
  func.func @transform_7(%arg0: i32) -> (i32, i32) {
    %c0_i32 = arith.constant 0 : i32
    %c0_i32_0 = arith.constant 0 : i32
    %c0_i32_1 = arith.constant 0 : i32
    return %c0_i32, %c0_i32_0 : i32, i32
  }
  func.func @transform_8(%arg0: i32) -> (i32, i32) {
    %c0_i32 = arith.constant 0 : i32
    %c0_i32_0 = arith.constant 0 : i32
    %c0_i32_1 = arith.constant 0 : i32
    return %c0_i32, %c0_i32_0 : i32, i32
  }
  func.func @transform_9(%arg0: i32) -> (i32, i32) {
    %c0_i32 = arith.constant 0 : i32
    %c0_i32_0 = arith.constant 0 : i32
    %c0_i32_1 = arith.constant 0 : i32
    return %c0_i32, %c0_i32_0 : i32, i32
  }
  func.func @transform_10(%arg0: i32) -> (i32, i32) {
    %c0_i32 = arith.constant 0 : i32
    %c0_i32_0 = arith.constant 0 : i32
    %c0_i32_1 = arith.constant 0 : i32
    return %c0_i32, %c0_i32_0 : i32, i32
  }
  func.func @transform_11(%arg0: i32) -> (i32, i32) {
    %c0_i32 = arith.constant 0 : i32
    %c0_i32_0 = arith.constant 0 : i32
    %c0_i32_1 = arith.constant 0 : i32
    return %c0_i32, %c0_i32_0 : i32, i32
  }
  func.func @transform_12(%arg0: i32) -> (i32, i32, i32) {
    %c0_i32 = arith.constant 0 : i32
    %c0_i32_0 = arith.constant 0 : i32
    %c0_i32_1 = arith.constant 0 : i32
    return %arg0, %c0_i32, %c0_i32_0 : i32, i32, i32
  }
}

</mosaic_0001>

<bundles_post_ra>
// kernel: tpu_custom_call.1
= control target key start
LH: loop header
LB: loop body
LE: loop exit
PB: predicated region body
PF: predicated region fallthrough
CT: control target
= control target key end

     0   :  { %s3955_s21 = smov 0   ;;  %s7180_s0 = inlined_call_operand.vmem [shape: s32[256,1], index: 0, kind: input, shape index: {}]   ;;  %s7181_s1 = inlined_call_operand.vmem [shape: f32[2,256,8], index: 1, kind: input, shape index: {}]   ;;  %s7182_s2 = inlined_call_operand.vmem [shape: bf16[8,32], index: 2, kind: input, shape index: {}]   ;;  %s7183_s3 = inlined_call_operand.vmem [shape: f32[1,32], index: 3, kind: input, shape index: {}]   ;;  %s7184_s4 = inlined_call_operand.vmem [shape: f32[9,32], index: 4, kind: input, shape index: {}]   ;;  %s7185_s5 = inlined_call_operand.vmem [shape: f32[1,32], index: 5, kind: input, shape index: {}]   ;;  %s7186_s6 = inlined_call_operand.vmem [shape: f32[4,32], index: 6, kind: input, shape index: {}]   ;;  %s7187_s7 = inlined_call_operand.vmem [shape: f32[4,1], index: 7, kind: input, shape index: {}]   ;;  %s7188_s8 = inlined_call_operand.vmem [shape: f32[4,32], index: 8, kind: input, shape index: {}]   ;;  %s7189_s9 = inlined_call_operand.vmem [shape: f32[1,32], index: 9, kind: input, shape index: {}]   ;;  %s7190_s10 = inlined_call_operand.vmem [shape: bf16[32,8], index: 10, kind: input, shape index: {}]   ;;  %s7191_s11 = inlined_call_operand.vmem [shape: f32[1,8], index: 11, kind: input, shape index: {}]   ;;  %s7192_s12 = inlined_call_operand.vmem [shape: f32[2,256,8], index: 12, kind: output, shape index: {}]  }
   0x1 LB: > { %s3748_s22 = sadd.s32 4294967295, %s3886_s21   ;;  %p3752_p0 = scmp.ge.s32.totalorder %s3886_s21, 1  ;;  %s3886_s21 = sphi %s3955_s21, %s22_s21  }
   0x2   : > { %p362_p1 = scmp.lt.s32.totalorder %s3886_s21, 3 }
   0x4   : > { %p363_p2 = pnand %p3752_p0, %p362_p1 }
   0x6   : > { %366 = sbr.rel (%p363_p2) target bundleno = 1203 (0x4b3), region = 68 }
   0xb   : > { %v3966_v0 = vld [vmem:[%s7180_s0 + $0x28] sm:$0xff]  ;;  %v3971_v1 = vld [vmem:[%s7180_s0 + $0x18] sm:$0xff]  ;;  %v463_v2 = vld [vmem:[%s7182_s2] sm:$0xf]  ;;  %vm517_vm0 = vcmask 1043456   ;;  %v7212_v3 = vmov 0  }
   0xc   : > { %3823 = vset.pattern.permute.xlu2 %v7212_v3  ;;  %3822 = vset.pattern.permute.xlu1 %v7212_v3  ;;  %vm972_vm1 = vcmp.ge.s32.totalorder %v3966_v0, 1  ;;  %vm970_vm2 = vcmp.ge.s32.totalorder %v3971_v1, 1  ;;  %v519_v4 = vsel %vm517_vm0, %v463_v2, 0  ;;  %p404_p3 = scmp.lt.s32.totalorder %s3748_s22, 1  ;;  %v3990_v7 = vld [vmem:[%s7180_s0 + $0x30] sm:$0xff]  ;;  %v3999_v8 = vld [vmem:[%s7180_s0 + $0x20] sm:$0xff] }
   0xd   : > { %3816 = vset.pattern.permute.xlu0 %v7212_v3  ;;  %v3982_v5 = vsel %vm972_vm1, 1, %v7212_v3  ;;  %v3985_v6 = vsel %vm970_vm2, 1, %v7212_v3  ;;  %528 = vmatpush.bf16.msra.mxu0 %v519_v4  ;;  %v4004_v9 = vld [vmem:[%s7180_s0 + $0x10] sm:$0xff]  ;;  %vm973_vm3 = vcmp.ge.s32.totalorder %v3990_v7, 1  ;;  %vm971_vm4 = vcmp.ge.s32.totalorder %v3999_v8, 1  ;;  %v4035_v19 = vld [vmem:[%s7180_s0 + $0x48] sm:$0xff] }
   0xe   : > { %7494 = vst [vmem:[#allocation2_spill] sm:$0xff] %v3982_v5  ;;  %3818 = vperm.xlu0 %3816, %v7212_v3   ;;  %1079 = vperm.xlu2 %3823, %v3982_v5   ;;  %s8134_s22 = smov (!%p404_p3, %s3748_s22), 1  ;;  %vm969_vm5 = vcmp.ge.s32.totalorder %v4004_v9, 1  ;;  %vm468_vm6 = vcmask 64512   ;;  %v4023_v15 = vsel %vm973_vm3, 1, %v7212_v3  ;;  %v4026_v17 = vsel %vm971_vm4, 1, %v7212_v3 }
   0xf   : > { %7495 = vst [vmem:[#allocation3_spill] sm:$0xff] %v3985_v6  ;;  %1073 = vperm.xlu1 %3822, %v3985_v6   ;;  %3803 = vmatpush.bf16.msra.mxu3 %v519_v4  ;;  %s3799_s17 = sshll.u32 %s8134_s22, 8  ;;  %v4029_v18 = vsel %vm969_vm5, 1, %v7212_v3  ;;  %v4042_v20 = vld [vmem:[%s7180_s0 + $0x40] sm:$0xff]  ;;  %v4047_v21 = vld [vmem:[%s7180_s0 + $0x38] sm:$0xff]  ;;  %vm976_vm7 = vcmp.ge.s32.totalorder %v4035_v19, 1 }
  0x10   : > { %s4014_s20 = scalar_lea.vmem %s7181_s1, %s3799_s17  ;;  %7496 = vst [vmem:[#allocation4_spill] sm:$0xff] %v4023_v15  ;;  %vm975_vm8 = vcmp.ge.s32.totalorder %v4042_v20, 1  ;;  %vm974_vm9 = vcmp.ge.s32.totalorder %v4047_v21, 1  ;;  %v4055_v22 = vsel %vm976_vm7, 1, %v7212_v3  ;;  %v4066_v25 = vld [vmem:[%s7180_s0 + $0x60] sm:$0xff]  ;;  %v4071_v26 = vld [vmem:[%s7180_s0 + $0x58] sm:$0xff]  ;;  %s7048_s23 = scalar_lea.vmem %s7192_s12, %s3799_s17 }
  0x11   : > { %v415_v10 = vld [vmem:[%s4014_s20] sm:$0xff]  ;;  %v416_v11 = vld [vmem:[%s4014_s20 + $0x8] sm:$0xff]  ;;  %v433_v12 = vld [vmem:[%s4014_s20 + $0x90] sm:$0xff]  ;;  %7497 = vst [vmem:[#allocation5_spill] sm:$0xff] %v4026_v17  ;;  %v4058_v23 = vsel %vm975_vm8, 1, %v7212_v3  ;;  %v4061_v24 = vsel %vm974_vm9, 1, %v7212_v3 }
  0x12   : > { %v447_v13 = vpack.c.bf16 %v416_v11, %v415_v10  ;;  %v434_v14 = vld [vmem:[%s4014_s20 + $0x98] sm:$0xff]  ;;  %7498 = vst [vmem:[#allocation6_spill] sm:$0xff] %v4029_v18  ;;  %v417_v27 = vld [vmem:[%s4014_s20 + $0x10] sm:$0xff]  ;;  %v435_v30 = vld [vmem:[%s4014_s20 + $0xa0] sm:$0xff]  ;;  %vm979_vm10 = vcmp.ge.s32.totalorder %v4066_v25, 1  ;;  %vm978_vm11 = vcmp.ge.s32.totalorder %v4071_v26, 1 }
  0x13   : > { %v456_v16 = vpack.c.bf16 %v434_v14, %v433_v12  ;;  %7499 = vst [vmem:[#allocation7_spill] sm:$0xff] %v4055_v22  ;;  %v418_v28 = vld [vmem:[%s4014_s20 + $0x18] sm:$0xff]  ;;  %v4079_v29 = vld [vmem:[%s7180_s0 + $0x50] sm:$0xff]  ;;  %v436_v31 = vld [vmem:[%s4014_s20 + $0xa8] sm:$0xff]  ;;  %v4089_v34 = vsel %vm979_vm10, 1, %v7212_v3  ;;  %v4092_v35 = vsel %vm978_vm11, 1, %v7212_v3 }
  0x14   : > { %3757 = vmatmul.msk.bf16.vlgmr.msra.gmra.mxu0 %vm468_vm6, %v447_v13  ;;  %7500 = vst [vmem:[#allocation8_spill] sm:$0xff] %v4058_v23  ;;  %v448_v32 = vpack.c.bf16 %v418_v28, %v417_v27  ;;  %vm977_vm12 = vcmp.ge.s32.totalorder %v4079_v29, 1  ;;  %v457_v33 = vpack.c.bf16 %v436_v31, %v435_v30  ;;  %v4101_v37 = vld [vmem:[%s7180_s0 + $0x78] sm:$0xff]  ;;  %v4108_v38 = vld [vmem:[%s7180_s0 + $0x70] sm:$0xff]  ;;  %v4113_v39 = vld [vmem:[%s7180_s0 + $0x68] sm:$0xff] }
  0x15   : > { %3766 = vmatmul.msk.bf16.vlgmr.msra.gmra.mxu3 %vm468_vm6, %v456_v16  ;;  %7501 = vst [vmem:[#allocation9_spill] sm:$0xff] %v4061_v24  ;;  %v4095_v36 = vsel %vm977_vm12, 1, %v7212_v3  ;;  %vm982_vm13 = vcmp.ge.s32.totalorder %v4101_v37, 1  ;;  %vm981_vm14 = vcmp.ge.s32.totalorder %v4108_v38, 1  ;;  %vm980_vm15 = vcmp.ge.s32.totalorder %v4113_v39, 1  ;;  %v419_v43 = vld [vmem:[%s4014_s20 + $0x20] sm:$0xff] }
  0x16   : > { %1082 = vperm.xlu2 %3823, %v4023_v15   ;;  %1070 = vperm.xlu0 %3816, %v4029_v18   ;;  %7502 = vst [vmem:[#allocation10_spill] sm:$0xff] %v4089_v34  ;;  %v4121_v40 = vsel %vm982_vm13, 1, %v7212_v3  ;;  %v4124_v41 = vsel %vm981_vm14, 1, %v7212_v3  ;;  %v4127_v42 = vsel %vm980_vm15, 1, %v7212_v3  ;;  %v4133_v44 = vld [vmem:[%s7180_s0 + $0x90] sm:$0xff]  ;;  %v420_v45 = vld [vmem:[%s4014_s20 + $0x28] sm:$0xff] }
  0x17   : > { %1076 = vperm.xlu1 %3822, %v4026_v17   ;;  %7503 = vst [vmem:[#allocation11_spill] sm:$0xff] %v4092_v35  ;;  %v4140_v46 = vld [vmem:[%s7180_s0 + $0x88] sm:$0xff]  ;;  %v4145_v47 = vld [vmem:[%s7180_s0 + $0x80] sm:$0xff]  ;;  %v437_v48 = vld [vmem:[%s4014_s20 + $0xb0] sm:$0xff]  ;;  %vm985_vm0 = vcmp.ge.s32.totalorder %v4133_v44, 1  ;;  %v449_v50 = vpack.c.bf16 %v420_v45, %v419_v43 }
  0x18   : > { %7504 = vst [vmem:[#allocation12_spill] sm:$0xff] %v4095_v36  ;;  %v438_v49 = vld [vmem:[%s4014_s20 + $0xb8] sm:$0xff]  ;;  %vm984_vm1 = vcmp.ge.s32.totalorder %v4140_v46, 1  ;;  %vm983_vm2 = vcmp.ge.s32.totalorder %v4145_v47, 1  ;;  %v4155_v52 = vsel %vm985_vm0, 1, %v7212_v3  ;;  %v4167_v55 = vld [vmem:[%s7180_s0 + $0xa8] sm:$0xff] }
  0x19   : > { %7505 = vst [vmem:[#allocation13_spill] sm:$0xff] %v4121_v40  ;;  %v458_v51 = vpack.c.bf16 %v438_v49, %v437_v48  ;;  %v4158_v53 = vsel %vm984_vm1, 1, %v7212_v3  ;;  %v4161_v54 = vsel %vm983_vm2, 1, %v7212_v3  ;;  %v4174_v56 = vld [vmem:[%s7180_s0 + $0xa0] sm:$0xff]  ;;  %v4179_v57 = vld [vmem:[%s7180_s0 + $0x98] sm:$0xff]  ;;  %vm988_vm3 = vcmp.ge.s32.totalorder %v4167_v55, 1 }
  0x1a   : > { %7506 = vst [vmem:[#allocation14_spill] sm:$0xff] %v4124_v41  ;;  %vm987_vm4 = vcmp.ge.s32.totalorder %v4174_v56, 1  ;;  %vm986_vm5 = vcmp.ge.s32.totalorder %v4179_v57, 1  ;;  %v4187_v58 = vsel %vm988_vm3, 1, %v7212_v3  ;;  %v421_v61 = vld [vmem:[%s4014_s20 + $0x30] sm:$0xff]  ;;  %v4199_v62 = vld [vmem:[%s7180_s0 + $0xc0] sm:$0xff] }
  0x1b   : > { %7507 = vst [vmem:[#allocation15_spill] sm:$0xff] %v4127_v42  ;;  %v4190_v59 = vsel %vm987_vm4, 1, %v7212_v3  ;;  %v4193_v60 = vsel %vm986_vm5, 1, %v7212_v3  ;;  %v422_v63 = vld [vmem:[%s4014_s20 + $0x38] sm:$0xff]  ;;  %v4211_v4 = vld [vmem:[%s7180_s0 + $0xb0] sm:$0xff]  ;;  %v439_v10 = vld [vmem:[%s4014_s20 + $0xc0] sm:$0xff] }
  0x1c   : > { %7508 = vst [vmem:[#allocation16_spill] sm:$0xff] %v4155_v52  ;;  %v4206_v2 = vld [vmem:[%s7180_s0 + $0xb8] sm:$0xff]  ;;  %v440_v11 = vld [vmem:[%s4014_s20 + $0xc8] sm:$0xff]  ;;  %vm991_vm7 = vcmp.ge.s32.totalorder %v4199_v62, 1  ;;  %v450_v12 = vpack.c.bf16 %v422_v63, %v421_v61  ;;  %vm989_vm9 = vcmp.ge.s32.totalorder %v4211_v4, 1  ;;  %v4240_v30 = vld [vmem:[%s7180_s0 + $0xd0] sm:$0xff] }
  0x1d   : > { %7509 = vst [vmem:[#allocation17_spill] sm:$0xff] %v4158_v53  ;;  %vm990_vm8 = vcmp.ge.s32.totalorder %v4206_v2, 1  ;;  %v459_v13 = vpack.c.bf16 %v440_v11, %v439_v10  ;;  %v4221_v14 = vsel %vm991_vm7, 1, %v7212_v3  ;;  %v4227_v27 = vsel %vm989_vm9, 1, %v7212_v3  ;;  %v4233_v28 = vld [vmem:[%s7180_s0 + $0xd8] sm:$0xff]  ;;  %v4245_v31 = vld [vmem:[%s7180_s0 + $0xc8] sm:$0xff] }
  0x1e   : > { %1091 = vperm.xlu2 %3823, %v4055_v22   ;;  %1085 = vperm.xlu0 %3816, %v4061_v24   ;;  %7510 = vst [vmem:[#allocation18_spill] sm:$0xff] %v4161_v54  ;;  %v4224_v16 = vsel %vm990_vm8, 1, %v7212_v3  ;;  %vm994_vm10 = vcmp.ge.s32.totalorder %v4233_v28, 1  ;;  %vm993_vm11 = vcmp.ge.s32.totalorder %v4240_v30, 1  ;;  %vm992_vm12 = vcmp.ge.s32.totalorder %v4245_v31, 1  ;;  %v423_v45 = vld [vmem:[%s4014_s20 + $0x40] sm:$0xff] }
  0x1f   : > { %1088 = vperm.xlu1 %3822, %v4058_v23   ;;  %7511 = vst [vmem:[#allocation19_spill] sm:$0xff] %v4187_v58  ;;  %v4259_v43 = vsel %vm992_vm12, 1, %v7212_v3  ;;  %v4265_v48 = vld [vmem:[%s7180_s0 + $0xf0] sm:$0xff]  ;;  %v424_v49 = vld [vmem:[%s4014_s20 + $0x48] sm:$0xff]  ;;  %v442_v63 = vld [vmem:[%s4014_s20 + $0xd8] sm:$0xff]  ;;  %vm1516_vm0 = vcmp.lt.s32.totalorder %v4004_v9, 15 }
  0x20   : > { %7512 = vst [vmem:[#allocation20_spill] sm:$0xff] %v4190_v59  ;;  %v441_v61 = vld [vmem:[%s4014_s20 + $0xd0] sm:$0xff]  ;;  %vm997_vm13 = vcmp.ge.s32.totalorder %v4265_v48, 1  ;;  %v451_v10 = vpack.c.bf16 %v424_v49, %v423_v45  ;;  %v4301_v45 = vld [vmem:[%s7180_s0 + $0xf8] sm:$0xff]  ;;  %v4308_v49 = vsel %vm1516_vm0, 1, %v7212_v3  ;;  %vm1519_vm2 = vcmp.lt.s32.totalorder %v3966_v0, 15 }
  0x21   : > { %7513 = vst [vmem:[#allocation21_spill] sm:$0xff] %v4193_v60  ;;  %v460_v11 = vpack.c.bf16 %v442_v63, %v441_v61  ;;  %vm998_vm1 = vcmp.ge.s32.totalorder %v4301_v45, 1  ;;  %v425_v63 = vld [vmem:[%s4014_s20 + $0x50] sm:$0xff]  ;;  %vm1518_vm3 = vcmp.lt.s32.totalorder %v3999_v8, 15  ;;  %vm1517_vm4 = vcmp.lt.s32.totalorder %v3971_v1, 15 }
  0x22   : > { %7514 = vst [vmem:[#allocation22_spill] sm:$0xff] %v4221_v14  ;;  %v4311_v61 = vsel %vm998_vm1, 1, %v7212_v3  ;;  %vm1522_vm5 = vcmp.lt.s32.totalorder %v4042_v20, 15  ;;  %vm1521_vm7 = vcmp.lt.s32.totalorder %v4047_v21, 15  ;;  %vm1520_vm8 = vcmp.lt.s32.totalorder %v3990_v7, 15  ;;  %v445_v20 = vld [vmem:[%s4014_s20 + $0xf0] sm:$0xff] }
  0x23   : > { %7515 = vst [vmem:[#allocation23_spill] sm:$0xff] %v4224_v16  ;;  %v4343_v1 = vsel %vm1522_vm5, 1, %v7212_v3  ;;  %v4346_v8 = vsel %vm1521_vm7, 1, %v7212_v3  ;;  %v446_v21 = vld [vmem:[%s4014_s20 + $0xf8] sm:$0xff]  ;;  %vm1525_vm9 = vcmp.lt.s32.totalorder %v4071_v26, 15  ;;  %vm1528_vm12 = vcmp.lt.s32.totalorder %v4108_v38, 15 }
  0x24   : > { %3758 = vmatmul.msk.bf16.gmra.mxu0 %vm468_vm6, %v448_v32  ;;  %7516 = vst [vmem:[#allocation24_spill] sm:$0xff] %v4227_v27  ;;  %v4253_v32 = vsel %vm994_vm10, 1, %v7212_v3  ;;  %vm1524_vm10 = vcmp.lt.s32.totalorder %v4079_v29, 15  ;;  %v4383_v26 = vsel %vm1528_vm12, 1, %v7212_v3  ;;  %vm1530_vm0 = vcmp.lt.s32.totalorder %v4145_v47, 15 }
  0x25   : > { %3767 = vmatmul.msk.bf16.gmra.mxu3 %vm468_vm6, %v457_v33  ;;  %7517 = vst [vmem:[#allocation25_spill] sm:$0xff] %v4253_v32  ;;  %v4256_v33 = vsel %vm993_vm11, 1, %v7212_v3  ;;  %vm1523_vm11 = vcmp.lt.s32.totalorder %v4035_v19, 15  ;;  %vm1529_vm1 = vcmp.lt.s32.totalorder %v4101_v37, 15  ;;  %vm1537_vm5 = vcmp.lt.s32.totalorder %v4206_v2, 15 }
  0x26   : > { %1100 = vperm.xlu2 %3823, %v4089_v34   ;;  %1094 = vperm.xlu0 %3816, %v4095_v36   ;;  %7518 = vst [vmem:[#allocation26_spill] sm:$0xff] %v4256_v33  ;;  %vm1536_vm7 = vcmp.lt.s32.totalorder %v4211_v4, 15 }
  0x27   : > { %1097 = vperm.xlu1 %3822, %v4092_v35   ;;  %7519 = vst [vmem:[#allocation27_spill] sm:$0xff] %v4259_v43 }
  0x28   : > { %7523 = vst [vmem:[#allocation31_spill] sm:$0xff] %v4308_v49 }
  0x29   : > { %7524 = vst [vmem:[#allocation32_spill] sm:$0xff] %v4311_v61 }
  0x2a   : > { %7528 = vst [vmem:[#allocation36_spill] sm:$0xff] %v4343_v1 }
  0x2b   : > { %7529 = vst [vmem:[#allocation37_spill] sm:$0xff] %v4346_v8 }
  0x2c   : > { %7535 = vst [vmem:[#allocation43_spill] sm:$0xff] %v4383_v26 }
  0x2e   : > { %1109 = vperm.xlu2 %3823, %v4121_v40   ;;  %1103 = vperm.xlu0 %3816, %v4127_v42  }
  0x2f   : > { %1106 = vperm.xlu1 %3822, %v4124_v41  }
  0x34   : > { %3759 = vmatmul.msk.bf16.gmra.mxu0 %vm468_vm6, %v449_v50  ;;  %v4272_v50 = vld [vmem:[%s7180_s0 + $0xe8] sm:$0xff] }
  0x35   : > { %3768 = vmatmul.msk.bf16.gmra.mxu3 %vm468_vm6, %v458_v51  ;;  %v4277_v51 = vld [vmem:[%s7180_s0 + $0xe0] sm:$0xff]  ;;  %vm996_vm14 = vcmp.ge.s32.totalorder %v4272_v50, 1  ;;  %vm1543_vm12 = vcmp.lt.s32.totalorder %v4272_v50, 15 }
  0x36   : > { %1118 = vperm.xlu2 %3823, %v4155_v52   ;;  %1112 = vperm.xlu0 %3816, %v4161_v54   ;;  %vm995_vm15 = vcmp.ge.s32.totalorder %v4277_v51, 1 }
  0x37   : > { %1115 = vperm.xlu1 %3822, %v4158_v53  }
  0x3e   : > { %1127 = vperm.xlu2 %3823, %v4187_v58   ;;  %1121 = vperm.xlu0 %3816, %v4193_v60  }
  0x3f   : > { %1124 = vperm.xlu1 %3822, %v4190_v59  }
  0x44   : > { %3760 = vmatmul.msk.bf16.gmra.mxu0 %vm468_vm6, %v450_v12  ;;  %v4287_v12 = vsel %vm997_vm13, 1, %v7212_v3  ;;  %vm1527_vm13 = vcmp.lt.s32.totalorder %v4113_v39, 15 }
  0x45   : > { %3769 = vmatmul.msk.bf16.gmra.mxu3 %vm468_vm6, %v459_v13  ;;  %7520 = vst [vmem:[#allocation28_spill] sm:$0xff] %v4287_v12  ;;  %v4290_v13 = vsel %vm996_vm14, 1, %v7212_v3  ;;  %vm1526_vm14 = vcmp.lt.s32.totalorder %v4066_v25, 15  ;;  %v4386_v29 = vsel %vm1527_vm13, 1, %v7212_v3  ;;  %vm1542_vm13 = vcmp.lt.s32.totalorder %v4277_v51, 15 }
  0x46   : > { %1136 = vperm.xlu2 %3823, %v4221_v14   ;;  %1130 = vperm.xlu0 %3816, %v4227_v27   ;;  %7521 = vst [vmem:[#allocation29_spill] sm:$0xff] %v4290_v13 }
  0x47   : > { %1133 = vperm.xlu1 %3822, %v4224_v16   ;;  %7536 = vst [vmem:[#allocation44_spill] sm:$0xff] %v4386_v29 }
  0x4e   : > { %1145 = vperm.xlu2 %3823, %v4253_v32   ;;  %1139 = vperm.xlu0 %3816, %v4259_v43   ;;  %v4293_v43 = vsel %vm995_vm15, 1, %v7212_v3  ;;  %vm1531_vm15 = vcmp.lt.s32.totalorder %v4140_v46, 15 }
  0x4f   : > { %1142 = vperm.xlu1 %3822, %v4256_v33   ;;  %7522 = vst [vmem:[#allocation30_spill] sm:$0xff] %v4293_v43 }
  0x54   : > { %3761 = vmatmul.msk.bf16.gmra.mxu0 %vm468_vm6, %v451_v10  ;;  %v426_v10 = vld [vmem:[%s4014_s20 + $0x58] sm:$0xff] }
  0x55   : > { %3770 = vmatmul.msk.bf16.gmra.mxu3 %vm468_vm6, %v460_v11  ;;  %v443_v11 = vld [vmem:[%s4014_s20 + $0xe0] sm:$0xff]  ;;  %v452_v9 = vpack.c.bf16 %v426_v10, %v425_v63  ;;  %v428_v63 = vld [vmem:[%s4014_s20 + $0x68] sm:$0xff] }
  0x56   : > { %1154 = vperm.xlu2 %3823, %v4287_v12   ;;  %1148 = vperm.xlu0 %3816, %v4293_v43   ;;  %v444_v43 = vld [vmem:[%s4014_s20 + $0xe8] sm:$0xff]  ;;  %v4324_v12 = vsel %vm1519_vm2, 1, %v7212_v3  ;;  %vm1534_vm2 = vcmp.lt.s32.totalorder %v4174_v56, 15  ;;  %v431_v56 = vld [vmem:[%s4014_s20 + $0x80] sm:$0xff] }
  0x57   : > { %1151 = vperm.xlu1 %3822, %v4290_v13   ;;  %v461_v13 = vpack.c.bf16 %v444_v43, %v443_v11  ;;  %7525 = vst [vmem:[#allocation33_spill] sm:$0xff] %v4324_v12  ;;  %v4349_v43 = vsel %vm1520_vm8, 1, %v7212_v3  ;;  %v462_v11 = vpack.c.bf16 %v446_v21, %v445_v20  ;;  %v430_v20 = vld [vmem:[%s4014_s20 + $0x78] sm:$0xff]  ;;  %vm1535_vm8 = vcmp.lt.s32.totalorder %v4167_v55, 15 }
  0x58   : > { %7530 = vst [vmem:[#allocation38_spill] sm:$0xff] %v4349_v43 }
  0x5e   : > { %1617 = vperm.xlu2 %3823, %v4308_v49   ;;  %1157 = vperm.xlu0 %3816, %v4311_v61   ;;  %v4327_v49 = vsel %vm1518_vm3, 1, %v7212_v3  ;;  %v4330_v61 = vsel %vm1517_vm4, 1, %v7212_v3  ;;  %vm1533_vm3 = vcmp.lt.s32.totalorder %v4179_v57, 15  ;;  %vm1532_vm4 = vcmp.lt.s32.totalorder %v4133_v44, 15  ;;  %v4444_v44 = vld [vmem:[%s7183_s3] ss:$0 sm:$0xff] }
  0x5f   : > { %3825 = vperm.xlu1 %3822, %v7212_v3   ;;  %7526 = vst [vmem:[#allocation34_spill] sm:$0xff] %v4327_v49 }
  0x60   : > { %7527 = vst [vmem:[#allocation35_spill] sm:$0xff] %v4330_v61 }
  0x64   : > { %3762 = vmatmul.msk.bf16.gmra.mxu0 %vm468_vm6, %v452_v9  ;;  %v4364_v9 = vsel %vm1525_vm9, 1, %v7212_v3  ;;  %vm1540_vm9 = vcmp.lt.s32.totalorder %v4240_v30, 15 }
  0x65   : > { %3771 = vmatmul.msk.bf16.gmra.mxu3 %vm468_vm6, %v461_v13  ;;  %v427_v13 = vld [vmem:[%s4014_s20 + $0x60] sm:$0xff]  ;;  %7531 = vst [vmem:[#allocation39_spill] sm:$0xff] %v4364_v9 }
  0x66   : > { %1626 = vperm.xlu2 %3823, %v4324_v12   ;;  %1620 = vperm.xlu0 %3816, %v4330_v61   ;;  %v453_v10 = vpack.c.bf16 %v428_v63, %v427_v13  ;;  %v4389_v13 = vsel %vm1526_vm14, 1, %v7212_v3  ;;  %v429_v63 = vld [vmem:[%s4014_s20 + $0x70] sm:$0xff]  ;;  %vm1541_vm14 = vcmp.lt.s32.totalorder %v4233_v28, 15 }
  0x67   : > { %1623 = vperm.xlu1 %3822, %v4327_v49   ;;  %7537 = vst [vmem:[#allocation45_spill] sm:$0xff] %v4389_v13  ;;  %v454_v21 = vpack.c.bf16 %v430_v20, %v429_v63  ;;  %v4428_v63 = vsel %vm1534_vm2, 1, %v7212_v3  ;;  %v4431_v20 = vsel %vm1533_vm3, 1, %v7212_v3  ;;  %vm1544_vm3 = vcmp.lt.s32.totalorder %v4265_v48, 15 }
  0x68   : > { %v4337_v0 = vpop.permute.xlu2 %1079  ;;  %7546 = vst [vmem:[#allocation54_spill] sm:$0xff] %v4428_v63 }
  0x69   : > { %7547 = vst [vmem:[#allocation55_spill] sm:$0xff] %v4431_v20 }
  0x6e   : > { %1635 = vperm.xlu2 %3823, %v4343_v1   ;;  %1629 = vperm.xlu0 %3816, %v4349_v43   ;;  %v4367_v1 = vsel %vm1524_vm10, 1, %v7212_v3  ;;  %v4370_v43 = vsel %vm1523_vm11, 1, %v7212_v3  ;;  %vm1539_vm10 = vcmp.lt.s32.totalorder %v4245_v31, 15  ;;  %vm1538_vm11 = vcmp.lt.s32.totalorder %v4199_v62, 15 }
  0x6f   : > { %1632 = vperm.xlu1 %3822, %v4346_v8   ;;  %7532 = vst [vmem:[#allocation40_spill] sm:$0xff] %v4367_v1  ;;  %v770_v31 = vlaneseq }
  0x70   : > { %v4358_v7 = vpop.permute.xlu2 %1082  ;;  %7533 = vst [vmem:[#allocation41_spill] sm:$0xff] %v4370_v43 }
  0x74   : > { %3763 = vmatmul.msk.bf16.gmra.mxu0 %vm468_vm6, %v453_v10  ;;  %v4406_v10 = vsel %vm1531_vm15, 1, %v7212_v3 }
  0x75   : > { %3772 = vmatmul.msk.bf16.gmra.mxu3 %vm468_vm6, %v462_v11  ;;  %7541 = vst [vmem:[#allocation49_spill] sm:$0xff] %v4406_v10  ;;  %v4409_v11 = vsel %vm1530_vm0, 1, %v7212_v3 }
  0x76   : > { %1644 = vperm.xlu2 %3823, %v4364_v9   ;;  %1638 = vperm.xlu0 %3816, %v4370_v43   ;;  %7542 = vst [vmem:[#allocation50_spill] sm:$0xff] %v4409_v11 }
  0x77   : > { %1641 = vperm.xlu1 %3822, %v4367_v1  }
  0x78   : > { %v4377_v19 = vpop.permute.xlu2 %1091 }
  0x79   : > { %7534 = vst [vmem:[#allocation42_spill] sm:$0xff] %v4377_v19  ;;  %v4412_v19 = vsel %vm1529_vm1, 1, %v7212_v3  ;;  %vm1545_vm1 = vcmp.lt.s32.totalorder %v4301_v45, 15 }
  0x7a   : > { %7543 = vst [vmem:[#allocation51_spill] sm:$0xff] %v4412_v19 }
  0x7e   : > { %1653 = vperm.xlu2 %3823, %v4383_v26   ;;  %1647 = vperm.xlu0 %3816, %v4389_v13  }
  0x7f   : > { %1650 = vperm.xlu1 %3822, %v4386_v29  }
  0x80   : > { %v4396_v38 = vpop.permute.xlu0 %3818  ;;  %v4398_v25 = vpop.permute.xlu2 %1100 }
  0x81   : > { %7538 = vst [vmem:[#allocation46_spill] sm:$0xff] %v4396_v38  ;;  %v4401_v39 = vpop.permute.xlu1 %1073 }
  0x82   : > { %7539 = vst [vmem:[#allocation47_spill] sm:$0xff] %v4398_v25  ;;  %v7551_v25 = vmov 0  }
  0x83   : > { %7540 = vst [vmem:[#allocation48_spill] sm:$0xff] %v4401_v39  ;;  %v4463_v2 = vsel %vm1535_vm8, 1, %v7551_v25  ;;  %v4488_v30 = vsel %vm1538_vm11, 1, %v7551_v25  ;;  %v4515_v51 = vsel %vm1541_vm14, 1, %v7551_v25  ;;  %vm1164_vm8 = vcmp.eq.s32.totalorder %v4337_v0, 1 }
  0x84   : > { %3764 = vmatmul.msk.bf16.gmra.mxu0 %vm468_vm6, %v454_v21  ;;  %v4434_v21 = vsel %vm1532_vm4, 1, %v7212_v3  ;;  %7554 = vst [vmem:[#allocation61_spill] sm:$0xff] %v4463_v2  ;;  %vm1165_vm11 = vcmp.eq.s32.totalorder %v4358_v7, 1 }
  0x85   : > { %7548 = vst [vmem:[#allocation56_spill] sm:$0xff] %v4434_v21 }
  0x86   : > { %1662 = vperm.xlu2 %3823, %v4406_v10   ;;  %1656 = vperm.xlu0 %3816, %v4412_v19   ;;  %v432_v10 = vld [vmem:[%s4014_s20 + $0x88] sm:$0xff]  ;;  %v4460_v19 = vsel %vm1536_vm7, 1, %v7551_v25  ;;  %7560 = vst [vmem:[#allocation67_spill] sm:$0xff] %v4488_v30 }
  0x87   : > { %1659 = vperm.xlu1 %3822, %v4409_v11   ;;  %7553 = vst [vmem:[#allocation60_spill] sm:$0xff] %v4460_v19 }
  0x88   : > { %v4418_v37 = vpop.permute.xlu2 %1109  ;;  %v4423_v47 = vpop.permute.xlu0 %1070  ;;  %7567 = vst [vmem:[#allocation74_spill] sm:$0xff] %v4515_v51 }
  0x89   : > { %7544 = vst [vmem:[#allocation52_spill] sm:$0xff] %v4418_v37  ;;  %v4421_v46 = vpop.permute.xlu1 %1076  ;;  %v4457_v37 = vsel %vm1537_vm5, 1, %v7551_v25 }
  0x8a   : > { %7545 = vst [vmem:[#allocation53_spill] sm:$0xff] %v4423_v47  ;;  %vm1163_vm5 = vcmp.eq.s32.totalorder %v4421_v46, 1 }
  0x8b   : > { %7552 = vst [vmem:[#allocation59_spill] sm:$0xff] %v4457_v37 }
  0x8e   : > { %1671 = vperm.xlu2 %3823, %v4428_v63   ;;  %1665 = vperm.xlu0 %3816, %v4434_v21   ;;  %v455_v63 = vpack.c.bf16 %v432_v10, %v431_v56 }
  0x8f   : > { %1668 = vperm.xlu1 %3822, %v4431_v20  }
  0x90   : > { %v4446_v57 = vpop.permute.xlu2 %1118  ;;  %v4451_v3 = vpop.permute.xlu0 %1085 }
  0x91   : > { %7549 = vst [vmem:[#allocation57_spill] sm:$0xff] %v4446_v57  ;;  %v4449_v11 = vpop.permute.xlu1 %1088  ;;  %v530_v20 = vpop.f32.mrf.mxu0 }
  0x92   : > { %7550 = vst [vmem:[#allocation58_spill] sm:$0xff] %v4449_v11  ;;  %v531_v21 = vadd.f32 %v4444_v44, %v530_v20 }
  0x94   : > { %v610_v57 = vadd.f32 3.0, %v531_v21  ;;  %3765 = vmatmul.msk.bf16.gmra.mxu0 %vm468_vm6, %v455_v63 }
  0x96   : > { %1680 = vperm.xlu2 %3823, %v4457_v37   ;;  %v642_v4 = vmax.f32 %v610_v57, 0.0  ;;  %1674 = vperm.xlu0 %3816, %v4463_v2   ;;  %v4485_v2 = vsel %vm1539_vm10, 1, %v7551_v25 }
  0x97   : > { %1677 = vperm.xlu1 %3822, %v4460_v19   ;;  %v4482_v19 = vsel %vm1540_vm9, 1, %v7551_v25  ;;  %7559 = vst [vmem:[#allocation66_spill] sm:$0xff] %v4485_v2 }
  0x98   : > { %v4469_v55 = vpop.permute.xlu2 %1127  ;;  %v674_v10 = vmin.f32 %v642_v4, 6.0  ;;  %v4472_v20 = vpop.f32.mrf.mxu3  ;;  %7558 = vst [vmem:[#allocation65_spill] sm:$0xff] %v4482_v19 }
  0x99   : > { %7555 = vst [vmem:[#allocation62_spill] sm:$0xff] %v4469_v55  ;;  %v4474_v56 = vpop.permute.xlu1 %1097  ;;  %v4478_v63 = vpop.permute.xlu0 %1094 }
  0x9a   : > { %7556 = vst [vmem:[#allocation63_spill] sm:$0xff] %v4474_v56  ;;  %v532_v57 = vpop.f32.mrf.mxu0  ;;  %v706_v4 = vmul.f32 %v674_v10, %v531_v21 }
  0x9b   : > { %7557 = vst [vmem:[#allocation64_spill] sm:$0xff] %v4478_v63  ;;  %v533_v37 = vadd.f32 %v4444_v44, %v532_v57 }
  0x9c   : > { %v4496_v26 = vmul.f32 0.16666667, %v706_v4  ;;  %v4509_v4 = vsel %vm1543_vm12, 1, %v7551_v25 }
  0x9d   : > { %v611_v56 = vadd.f32 3.0, %v533_v37  ;;  %7565 = vst [vmem:[#allocation72_spill] sm:$0xff] %v4509_v4 }
  0x9e   : > { %1689 = vperm.xlu2 %3823, %v4482_v19   ;;  %1683 = vperm.xlu0 %3816, %v4488_v30   ;;  %7562 = vst [vmem:[#allocation69_spill] sm:$0xff] %v4496_v26  ;;  %v4505_v19 = vshrl.u32 %v770_v31, 7  ;;  %v4512_v30 = vsel %vm1542_vm13, 1, %v7551_v25  ;;  %v4522_v31 = vld [vmem:[%s7180_s0] sm:$0xff] }
  0x9f   : > { %v643_v62 = vmax.f32 %v611_v56, 0.0  ;;  %1686 = vperm.xlu1 %3822, %v4485_v2   ;;  %7566 = vst [vmem:[#allocation73_spill] sm:$0xff] %v4512_v30  ;;  %vm967_vm2 = vcmp.ge.s32.totalorder %v4522_v31, 1 }
  0xa0   : > { %v4493_v57 = vpop.permute.xlu2 %1136  ;;  %v577_v9 = vpop.f32.mrf.mxu3  ;;  %7569 = vst [vmem:[#allocation76_spill] sm:$0xff] %v4522_v31  ;;  %vm902_vm15 = vcmp.lt.s32.totalorder %v4505_v19, 1  ;;  %vm1481_vm0 = vcmp.lt.s32.totalorder %v4505_v19, 7  ;;  %v4559_v43 = vsel %vm967_vm2, 1, %v7551_v25 }
  0xa1   : > { %7561 = vst [vmem:[#allocation68_spill] sm:$0xff] %v4493_v57  ;;  %v675_v13 = vmin.f32 %v643_v62, 6.0  ;;  %v4498_v63 = vpop.permute.xlu1 %1106  ;;  %v578_v21 = vadd.f32 %v4444_v44, %v577_v9  ;;  %v4503_v10 = vpop.permute.xlu0 %1103 }
  0xa2   : > { %7563 = vst [vmem:[#allocation70_spill] sm:$0xff] %v4498_v63  ;;  %v535_v56 = vpop.f32.mrf.mxu0 }
  0xa3   : > { %7564 = vst [vmem:[#allocation71_spill] sm:$0xff] %v4503_v10  ;;  %v707_v2 = vmul.f32 %v675_v13, %v533_v37  ;;  %v536_v50 = vadd.f32 %v4444_v44, %v535_v56  ;;  %v629_v62 = vadd.f32 3.0, %v578_v21 }
  0xa4   : > { %7577 = vst [vmem:[#allocation82_spill] sm:$0xff] %v4559_v43 }
  0xa5   : > { %v4517_v28 = vmul.f32 0.16666667, %v707_v2  ;;  %v612_v9 = vadd.f32 3.0, %v536_v50  ;;  %v661_v56 = vmax.f32 %v629_v62, 0.0 }
  0xa6   : > { %1698 = vperm.xlu2 %3823, %v4509_v4   ;;  %1692 = vperm.xlu0 %3816, %v4515_v51  }
  0xa7   : > { %7568 = vst [vmem:[#allocation75_spill] sm:$0xff] %v4517_v28  ;;  %v644_v10 = vmax.f32 %v612_v9, 0.0  ;;  %1695 = vperm.xlu1 %3822, %v4512_v30   ;;  %v7259_v2 = vrot.slane %v4517_v28, 1  ;;  %v871_v63 = vrot.slane %v4517_v28, 7  ;;  %v7572_v9 = vrot.slane %v4496_v26, 1 }
  0xa8   : > { %v4533_v29 = vpop.permute.xlu2 %1145  ;;  %v580_v37 = vpop.f32.mrf.mxu3  ;;  %v7574_v30 = vrot.slane %v4496_v26, 7  ;;  %v4636_v26 = vld [vmem:[%s7184_s4] sm:$0xff] }
  0xa9   : > { %7570 = vst [vmem:[#allocation77_spill] sm:$0xff] %v4533_v29  ;;  %v676_v62 = vmin.f32 %v644_v10, 6.0  ;;  %v4537_v13 = vpop.permute.xlu1 %1115  ;;  %v4546_v4 = vsel %vm1481_vm0, %v7572_v9, %v7259_v2  ;;  %v693_v10 = vmin.f32 %v661_v56, 6.0  ;;  %v581_v29 = vadd.f32 %v4444_v44, %v580_v37 }
  0xaa   : > { %7571 = vst [vmem:[#allocation78_spill] sm:$0xff] %v4537_v13  ;;  %v4552_v51 = vsel %vm902_vm15, %v7574_v30, %v871_v63  ;;  %v4555_v13 = vpop.permute.xlu0 %1112  ;;  %v537_v48 = vpop.f32.mrf.mxu0  ;;  %v4564_v2 = vsel %vm1545_vm1, 1, %v7551_v25  ;;  %v4567_v30 = vsel %vm1544_vm3, 1, %v7551_v25  ;;  %vm1166_vm1 = vcmp.eq.s32.totalorder %v4451_v3, 1 }
  0xab   : > { %7573 = vst [vmem:[#allocation79_spill] sm:$0xff] %v4546_v4  ;;  %v708_v57 = vmul.f32 %v676_v62, %v536_v50  ;;  %v538_v11 = vadd.f32 %v4444_v44, %v537_v48  ;;  %v630_v9 = vadd.f32 3.0, %v581_v29  ;;  %v4575_v50 = vld [vmem:[%s7180_s0 + $0x8] sm:$0xff] }
  0xac   : > { %7575 = vst [vmem:[#allocation80_spill] sm:$0xff] %v4552_v51  ;;  %vm968_vm4 = vcmp.ge.s32.totalorder %v4575_v50, 1 }
  0xad   : > { %7576 = vst [vmem:[#allocation81_spill] sm:$0xff] %v4555_v13  ;;  %v4569_v56 = vmul.f32 0.16666667, %v708_v57  ;;  %v613_v37 = vadd.f32 3.0, %v538_v11  ;;  %v725_v13 = vmul.f32 %v693_v10, %v578_v21  ;;  %v662_v1 = vmax.f32 %v630_v9, 0.0 }
  0xae   : > { %7578 = vst [vmem:[#allocation83_spill] sm:$0xff] %v4564_v2  ;;  %1868 = vperm.xlu2 %3823, %v4559_v43   ;;  %1701 = vperm.xlu0 %3816, %v4567_v30   ;;  %v4584_v21 = vadd.f32 %v4444_v44, %v4472_v20  ;;  %v4602_v12 = vsel %vm968_vm4, 1, %v7551_v25 }
  0xaf   : > { %7579 = vst [vmem:[#allocation84_spill] sm:$0xff] %v4567_v30  ;;  %v645_v62 = vmax.f32 %v613_v37, 0.0  ;;  %1704 = vperm.xlu1 %3822, %v4564_v2   ;;  %v872_v45 = vrot.slane %v4569_v56, 7  ;;  %v694_v48 = vmin.f32 %v662_v1, 6.0  ;;  %v4593_v2 = vmul.f32 0.16666667, %v725_v13 }
  0xb0   : > { %7580 = vst [vmem:[#allocation85_spill] sm:$0xff] %v4569_v56  ;;  %v4580_v57 = vpop.permute.xlu2 %1154  ;;  %v582_v9 = vpop.f32.mrf.mxu3 }
  0xb1   : > { %7581 = vst [vmem:[#allocation86_spill] sm:$0xff] %v4575_v50  ;;  %v677_v10 = vmin.f32 %v645_v62, 6.0  ;;  %v4586_v43 = vpop.permute.xlu1 %1124  ;;  %v4591_v37 = vsel %vm902_vm15, %v871_v63, %v872_v45  ;;  %v726_v30 = vmul.f32 %v694_v48, %v581_v29  ;;  %v583_v1 = vadd.f32 %v4444_v44, %v582_v9 }
  0xb2   : > { %7582 = vst [vmem:[#allocation87_spill] sm:$0xff] %v4580_v57  ;;  %v4596_v57 = vpop.permute.xlu0 %1121  ;;  %v540_v4 = vpop.f32.mrf.mxu0  ;;  %v628_v63 = vadd.f32 3.0, %v4584_v21  ;;  %v1195_v46 = vsel %vm1163_vm5, %v4591_v37, 0.0 }
  0xb3   : > { %7583 = vst [vmem:[#allocation88_spill] sm:$0xff] %v4586_v43  ;;  %v709_v20 = vmul.f32 %v677_v10, %v538_v11  ;;  %v541_v62 = vadd.f32 %v4444_v44, %v540_v4  ;;  %v4599_v55 = vmul.f32 0.16666667, %v726_v30  ;;  %v631_v43 = vadd.f32 3.0, %v583_v1 }
  0xb4   : > { %7584 = vst [vmem:[#allocation89_spill] sm:$0xff] %v4591_v37  ;;  %v7280_v11 = vrot.slane %v4593_v2, 7 }
  0xb5   : > { %7585 = vst [vmem:[#allocation90_spill] sm:$0xff] %v4593_v2  ;;  %v4605_v8 = vmul.f32 0.16666667, %v709_v20  ;;  %v614_v13 = vadd.f32 3.0, %v541_v62  ;;  %v663_v29 = vmax.f32 %v631_v43, 0.0  ;;  %v890_v48 = vrot.slane %v4599_v55, 7 }
  0xb6   : > { %7586 = vst [vmem:[#allocation91_spill] sm:$0xff] %v4596_v57  ;;  %1877 = vperm.xlu2 %3823, %v3985_v6   ;;  %1871 = vperm.xlu0 %3816, %v4602_v12   ;;  %v660_v20 = vmax.f32 %v628_v63, 0.0 }
  0xb7   : > { %7587 = vst [vmem:[#allocation92_spill] sm:$0xff] %v4599_v55  ;;  %v646_v10 = vmax.f32 %v614_v13, 0.0  ;;  %1874 = vperm.xlu1 %3822, %v4029_v18   ;;  %v7284_v4 = vrot.slane %v4605_v8, 7  ;;  %v695_v30 = vmin.f32 %v663_v29, 6.0  ;;  %v4619_v43 = vsel %vm902_vm15, %v7280_v11, %v890_v48 }
  0xb8   : > { %7588 = vst [vmem:[#allocation93_spill] sm:$0xff] %v4602_v12  ;;  %v4613_v9 = vpop.permute.xlu2 %1617  ;;  %v585_v6 = vpop.f32.mrf.mxu3  ;;  %v1451_v13 = vrot.slane %v4569_v56, 1  ;;  %v1452_v11 = vrot.slane %v4605_v8, 1  ;;  %v7604_v50 = vrot.slane %v4605_v8, 7 }
  0xb9   : > { %7589 = vst [vmem:[#allocation94_spill] sm:$0xff] %v4605_v8  ;;  %v678_v57 = vmin.f32 %v646_v10, 6.0  ;;  %v4621_v38 = vpop.permute.xlu1 %1133  ;;  %v4628_v29 = vsel %vm902_vm15, %v872_v45, %v7284_v4  ;;  %v727_v18 = vmul.f32 %v695_v30, %v583_v1  ;;  %v586_v12 = vadd.f32 %v4444_v44, %v585_v6 }
  0xba   : > { %7590 = vst [vmem:[#allocation95_spill] sm:$0xff] %v4613_v9  ;;  %v1131_v9 = vpop.permute.xlu0 %1130  ;;  %v542_v51 = vpop.f32.mrf.mxu0  ;;  %v4642_v45 = vsel %vm1481_vm0, %v1451_v13, %v1452_v11  ;;  %v692_v6 = vmin.f32 %v660_v20, 6.0  ;;  %v4655_v4 = vperm.slane %v4636_v26, 4  ;;  %v4659_v20 = vperm.slane %v4636_v26, 0 }
  0xbb   : > { %7591 = vst [vmem:[#allocation96_spill] sm:$0xff] %v4619_v43  ;;  %v710_v63 = vmul.f32 %v678_v57, %v541_v62  ;;  %v543_v10 = vadd.f32 %v4444_v44, %v542_v51  ;;  %v4638_v47 = vmul.f32 0.16666667, %v727_v18  ;;  %v632_v39 = vadd.f32 3.0, %v586_v12 }
  0xbc   : > { %7592 = vst [vmem:[#allocation97_spill] sm:$0xff] %v4628_v29  ;;  %v7596_v57 = vrot.slane %v4517_v28, 1  ;;  %vm1181_vm7 = vcmp.eq.s32.totalorder %v1131_v9, 1  ;;  %vm1182_vm9 = vcmp.eq.s32.totalorder %v4621_v38, 1 }
  0xbd   : > { %7593 = vst [vmem:[#allocation98_spill] sm:$0xff] %v4638_v47  ;;  %v4644_v1 = vmul.f32 0.16666667, %v710_v63  ;;  %v615_v30 = vadd.f32 3.0, %v543_v10  ;;  %v664_v62 = vmax.f32 %v632_v39, 0.0  ;;  %v7293_v18 = vrot.slane %v4638_v47, 7 }
  0xbe   : > { %7594 = vst [vmem:[#allocation99_spill] sm:$0xff] %v4642_v45  ;;  %v4650_v51 = vsel %vm1481_vm0, %v7596_v57, %v1451_v13  ;;  %1886 = vperm.xlu2 %3823, %v4023_v15   ;;  %1880 = vperm.xlu0 %3816, %v4026_v17   ;;  %v7631_v3 = vrot.slane %v4638_v47, 1 }
  0xbf   : > { %7595 = vst [vmem:[#allocation100_spill] sm:$0xff] %v4644_v1  ;;  %v647_v63 = vmax.f32 %v615_v30, 0.0  ;;  %1883 = vperm.xlu1 %3822, %v3982_v5   ;;  %v1453_v13 = vrot.slane %v4644_v1, 1  ;;  %v696_v39 = vmin.f32 %v664_v62, 6.0  ;;  %v4669_v57 = vsel %vm902_vm15, %v890_v48, %v7293_v18 }
  0xc0   : > { %7597 = vst [vmem:[#allocation101_spill] sm:$0xff] %v4650_v51  ;;  %v4671_v15 = vpop.permute.xlu2 %1626  ;;  %v842_v30 = vmul.f32 %v4655_v4, %v4644_v1  ;;  %v724_v5 = vmul.f32 %v692_v6, %v4584_v21  ;;  %v587_v51 = vpop.f32.mrf.mxu3  ;;  %v874_v37 = vrot.slane %v4644_v1, 7  ;;  %v4684_v48 = vperm.slane %v4636_v26, 1 }
  0xc1   : > { %7598 = vst [vmem:[#allocation102_spill] sm:$0xff] %v4669_v57  ;;  %v679_v17 = vmin.f32 %v647_v63, 6.0  ;;  %v4676_v28 = vpop.permute.xlu1 %1142  ;;  %v4680_v62 = vsel %vm1481_vm0, %v1452_v11, %v1453_v13  ;;  %v728_v18 = vmul.f32 %v696_v39, %v586_v12  ;;  %v588_v61 = vadd.f32 %v4444_v44, %v587_v51 }
  0xc2   : > { %7599 = vst [vmem:[#allocation103_spill] sm:$0xff] %v4676_v28  ;;  %v4687_v49 = vpop.permute.xlu0 %1139  ;;  %v545_v25 = vpop.f32.mrf.mxu0  ;;  %v1228_v21 = vmul.f32 %v4659_v20, %v1195_v46  ;;  %v1213_v6 = vsel %vm1181_vm7, %v4619_v43, 0.0  ;;  %v1389_v12 = vmul.f32 %v4684_v48, %v4569_v56  ;;  %v4698_v51 = vmul.f32 0.16666667, %v724_v5 }
  0xc3   : > { %7600 = vst [vmem:[#allocation104_spill] sm:$0xff] %v4680_v62  ;;  %v711_v11 = vmul.f32 %v679_v17, %v543_v10  ;;  %v546_v63 = vadd.f32 %v4444_v44, %v545_v25  ;;  %v4694_v1 = vmul.f32 0.16666667, %v728_v18  ;;  %v633_v28 = vadd.f32 3.0, %v588_v61 }
  0xc4   : > { %v1260_v31 = vadd.f32 %v1228_v21, %v842_v30  ;;  %7602 = vst [vmem:[#allocation106_spill] sm:$0xff] %v4698_v51  ;;  %v4706_v9 = vsel %vm902_vm15, %v7604_v50, %v874_v37  ;;  %v1246_v25 = vmul.f32 %v4659_v20, %v1213_v6  ;;  %v1407_v5 = vmul.f32 %v4684_v48, %v4599_v55 }
  0xc5   : > { %7601 = vst [vmem:[#allocation105_spill] sm:$0xff] %v4694_v1  ;;  %v4700_v39 = vmul.f32 0.16666667, %v711_v11  ;;  %v616_v46 = vadd.f32 3.0, %v546_v63  ;;  %v860_v17 = vmul.f32 %v4655_v4, %v4694_v1  ;;  %v665_v10 = vmax.f32 %v633_v28, 0.0 }
  0xc6   : > { %7605 = vst [vmem:[#allocation108_spill] sm:$0xff] %v4706_v9  ;;  %1895 = vperm.xlu2 %3823, %v4055_v22   ;;  %1889 = vperm.xlu0 %3816, %v4061_v24   ;;  %v1196_v30 = vsel %vm1164_vm8, %v4628_v29, 0.0  ;;  %v4725_v22 = vadd.f32 %v1389_v12, %v1260_v31  ;;  %v7313_v31 = vrot.slane %v4593_v2, 1  ;;  %vm1711_vm10 = vcmp.eq.s32.totalorder %v4671_v15, 1 }
  0xc7   : > { %7603 = vst [vmem:[#allocation107_spill] sm:$0xff] %v4700_v39  ;;  %v648_v18 = vmax.f32 %v616_v46, 0.0  ;;  %1892 = vperm.xlu1 %3822, %v4058_v23   ;;  %v1454_v50 = vrot.slane %v4700_v39, 1  ;;  %v1278_v21 = vadd.f32 %v1246_v25, %v860_v17  ;;  %v697_v28 = vmin.f32 %v665_v10, 6.0 }
  0xc8   : > { %v4721_v6 = vpop.permute.xlu2 %1635  ;;  %v843_v11 = vmul.f32 %v4655_v4, %v4700_v39  ;;  %v590_v43 = vpop.f32.mrf.mxu3  ;;  %v875_v17 = vrot.slane %v4700_v39, 7  ;;  %v1229_v12 = vmul.f32 %v4659_v20, %v1196_v30  ;;  %v1408_v15 = vmul.f32 %v4684_v48, %v4638_v47 }
  0xc9   : > { %7606 = vst [vmem:[#allocation109_spill] sm:$0xff] %v4721_v6  ;;  %v680_v46 = vmin.f32 %v648_v18, 6.0  ;;  %v4727_v23 = vpop.permute.xlu1 %1151  ;;  %v4731_v24 = vsel %vm1481_vm0, %v1453_v13, %v1454_v50  ;;  %v729_v25 = vmul.f32 %v697_v28, %v588_v61  ;;  %v591_v10 = vadd.f32 %v4444_v44, %v590_v43 }
  0xca   : > { %7607 = vst [vmem:[#allocation110_spill] sm:$0xff] %v4727_v23  ;;  %v4736_v6 = vpop.permute.xlu0 %1148  ;;  %v547_v29 = vpop.f32.mrf.mxu0  ;;  %v1214_v18 = vsel %vm1182_vm9, %v4669_v57, 0.0  ;;  %v4743_v23 = vadd.f32 %v1407_v5, %v1278_v21  ;;  %v7611_v61 = vrot.slane %v4698_v51, 1  ;;  %v1261_v28 = vadd.f32 %v1229_v12, %v843_v11 }
  0xcb   : > { %7608 = vst [vmem:[#allocation111_spill] sm:$0xff] %v4731_v24  ;;  %v712_v13 = vmul.f32 %v680_v46, %v546_v63  ;;  %v4745_v0 = vmul.f32 0.16666667, %v729_v25  ;;  %v634_v24 = vadd.f32 3.0, %v591_v10  ;;  %v4759_v38 = vsel %vm902_vm15, %v874_v37, %v875_v17 }
  0xcc   : > { %7609 = vst [vmem:[#allocation112_spill] sm:$0xff] %v4736_v6  ;;  %v4753_v43 = vsel %vm1481_vm0, %v7611_v61, %v7313_v31  ;;  %v1247_v63 = vmul.f32 %v4659_v20, %v1214_v18  ;;  %v7314_v5 = vrot.slane %v4694_v1, 7  ;;  %v1743_v31 = vsel %vm1711_vm10, %v4680_v62, 0.0 }
  0xcd   : > { %7610 = vst [vmem:[#allocation113_spill] sm:$0xff] %v4745_v0  ;;  %v4755_v30 = vmul.f32 0.16666667, %v712_v13  ;;  %v7315_v21 = vrot.slane %v4745_v0, 7  ;;  %v861_v46 = vmul.f32 %v4655_v4, %v4745_v0  ;;  %v666_v11 = vmax.f32 %v634_v24, 0.0 }
  0xce   : > { %7612 = vst [vmem:[#allocation114_spill] sm:$0xff] %v4753_v43  ;;  %1904 = vperm.xlu2 %3823, %v4089_v34   ;;  %1898 = vperm.xlu0 %3816, %v4095_v36   ;;  %v4801_v34 = vperm.slane %v4636_v26, 2  ;;  %vm1184_vm12 = vcmp.eq.s32.totalorder %v4687_v49, 1 }
  0xcf   : > { %7613 = vst [vmem:[#allocation115_spill] sm:$0xff] %v4755_v30  ;;  %1901 = vperm.xlu1 %3822, %v4092_v35   ;;  %v7320_v37 = vrot.slane %v4755_v30, 1  ;;  %v4777_v25 = vsel %vm902_vm15, %v7314_v5, %v7315_v21  ;;  %v1279_v18 = vadd.f32 %v1247_v63, %v861_v46  ;;  %v7327_v63 = vrot.slane %v4755_v30, 7 }
  0xd0   : > { %7614 = vst [vmem:[#allocation116_spill] sm:$0xff] %v4759_v38  ;;  %v4779_v12 = vpop.permute.xlu2 %1644  ;;  %v592_v24 = vpop.f32.mrf.mxu3  ;;  %v1390_v46 = vmul.f32 %v4684_v48, %v4605_v8  ;;  %v698_v35 = vmin.f32 %v666_v11, 6.0 }
  0xd1   : > { %7615 = vst [vmem:[#allocation117_spill] sm:$0xff] %v4777_v25  ;;  %v4783_v13 = vpop.permute.xlu1 %3825  ;;  %v4789_v61 = vsel %vm1481_vm0, %v1454_v50, %v7320_v37  ;;  %v593_v5 = vadd.f32 %v4444_v44, %v592_v24  ;;  %v4803_v50 = vadd.f32 %v1408_v15, %v1279_v18  ;;  %v1776_v37 = vmul.f32 %v4801_v34, %v1743_v31 }
  0xd2   : > { %7616 = vst [vmem:[#allocation118_spill] sm:$0xff] %v4779_v12  ;;  %v4793_v21 = vpop.permute.xlu0 %1157  ;;  %v4795_v12 = vpop.f32.mrf.mxu0  ;;  %v7329_v24 = vrot.slane %v4638_v47, 1  ;;  %v4813_v57 = vsel %vm902_vm15, %v875_v17, %v7327_v63  ;;  %v1422_v6 = vadd.f32 %v1390_v46, %v1261_v28  ;;  %v730_v11 = vmul.f32 %v698_v35, %v591_v10 }
  0xd3   : > { %7617 = vst [vmem:[#allocation119_spill] sm:$0xff] %v4783_v13  ;;  %v635_v36 = vadd.f32 3.0, %v593_v5  ;;  %v548_v18 = vadd.f32 %v4444_v44, %v547_v29  ;;  %v1197_v28 = vsel %vm1165_vm11, %v4706_v9, 0.0  ;;  %v844_v46 = vmul.f32 %v4655_v4, %v4755_v30 }
  0xd4   : > { %7618 = vst [vmem:[#allocation120_spill] sm:$0xff] %v4789_v61  ;;  %v4829_v35 = vadd.f32 %v1776_v37, %v1422_v6  ;;  %v1216_v63 = vsel %vm1184_vm12, %v4777_v25, 0.0 }
  0xd5   : > { %7619 = vst [vmem:[#allocation121_spill] sm:$0xff] %v4793_v21  ;;  %v667_v62 = vmax.f32 %v635_v36, 0.0  ;;  %v7328_v21 = vrot.slane %v4694_v1, 1  ;;  %v617_v6 = vadd.f32 3.0, %v548_v18 }
  0xd6   : > { %1913 = vperm.xlu2 %3823, %v4121_v40   ;;  %7620 = vst [vmem:[#allocation122_spill] sm:$0xff] %v4813_v57  ;;  %1907 = vperm.xlu0 %3816, %v4127_v42   ;;  %v1249_v40 = vmul.f32 %v4659_v20, %v1216_v63 }
  0xd7   : > { %1910 = vperm.xlu1 %3822, %v4124_v41   ;;  %v699_v36 = vmin.f32 %v667_v62, 6.0  ;;  %v4827_v17 = vsel %vm1481_vm0, %v7329_v24, %v7328_v21  ;;  %v4840_v21 = vmul.f32 0.16666667, %v730_v11  ;;  %v649_v41 = vmax.f32 %v617_v6, 0.0 }
  0xd8   : > { %v4819_v31 = vpop.permute.xlu2 %1653  ;;  %7622 = vst [vmem:[#allocation124_spill] sm:$0xff] %v4827_v17  ;;  %v595_v29 = vpop.f32.mrf.mxu3 }
  0xd9   : > { %7621 = vst [vmem:[#allocation123_spill] sm:$0xff] %v4819_v31  ;;  %v1624_v10 = vpop.permute.xlu1 %1623  ;;  %v731_v7 = vmul.f32 %v699_v36, %v593_v5  ;;  %v1230_v5 = vmul.f32 %v4659_v20, %v1197_v28  ;;  %v7343_v36 = vrot.slane %v4840_v21, 1  ;;  %v681_v31 = vmin.f32 %v649_v41, 6.0 }
  0xda   : > { %vm1710_vm13 = vcmp.eq.s32.totalorder %v1624_v10, 1  ;;  %v4833_v62 = vpop.permute.xlu0 %1620  ;;  %v4835_v15 = vpop.f32.mrf.mxu0  ;;  %7623 = vst [vmem:[#allocation125_spill] sm:$0xff] %v4840_v21  ;;  %v1410_v10 = vmul.f32 %v4684_v48, %v4745_v0 }
  0xdb   : > { %v1742_v37 = vsel %vm1710_vm13, %v4642_v45, 0.0  ;;  %v4843_v24 = vmul.f32 0.16666667, %v731_v7  ;;  %v4855_v7 = vadd.f32 %v1230_v5, %v844_v46 }
  0xdc   : > { %v1775_v49 = vmul.f32 %v4801_v34, %v1742_v37 }
  0xdd   : > { %7624 = vst [vmem:[#allocation126_spill] sm:$0xff] %v4843_v24  ;;  %v7342_v11 = vrot.slane %v4843_v24, 1  ;;  %v863_v45 = vmul.f32 %v4655_v4, %v4843_v24 }
  0xde   : > { %1922 = vperm.xlu2 %3823, %v4155_v52   ;;  %1916 = vperm.xlu0 %3816, %v4161_v54   ;;  %v4870_v52 = vadd.f32 %v1775_v49, %v4725_v22  ;;  %v596_v22 = vadd.f32 %v4444_v44, %v595_v29 }
  0xdf   : > { %1919 = vperm.xlu1 %3822, %v4158_v53   ;;  %v4867_v63 = vsel %vm1481_vm0, %v7343_v36, %v7342_v11  ;;  %v1281_v37 = vadd.f32 %v1249_v40, %v863_v45  ;;  %v713_v40 = vmul.f32 %v681_v31, %v548_v18 }
  0xe0   : > { %v4859_v28 = vpop.permute.xlu2 %1662  ;;  %7626 = vst [vmem:[#allocation128_spill] sm:$0xff] %v4867_v63  ;;  %v597_v46 = vpop.f32.mrf.mxu3  ;;  %v636_v29 = vadd.f32 3.0, %v596_v22 }
  0xe1   : > { %7625 = vst [vmem:[#allocation127_spill] sm:$0xff] %v4859_v28  ;;  %v4872_v6 = vpop.permute.xlu1 %1632  ;;  %v598_v5 = vadd.f32 %v4444_v44, %v597_v46  ;;  %v4879_v54 = vadd.f32 %v1410_v10, %v1281_v37  ;;  %v4895_v31 = vmul.f32 0.16666667, %v713_v40 }
  0xe2   : > { %v4875_v53 = vpop.permute.xlu0 %1629  ;;  %v4877_v28 = vpop.f32.mrf.mxu0  ;;  %vm1713_vm3 = vcmp.eq.s32.totalorder %v4872_v6, 1  ;;  %v7644_v6 = vld [vmem:[#allocation27_spill] sm:$0xff] }
  0xe3   : > { %v637_v42 = vadd.f32 3.0, %v598_v5  ;;  %7630 = vst [vmem:[#allocation132_spill] sm:$0xff] %v4895_v31  ;;  %v845_v40 = vmul.f32 %v4655_v4, %v4895_v31 }
  0xe5   : > { %v669_v25 = vmax.f32 %v637_v42, 0.0 }
  0xe6   : > { %1931 = vperm.xlu2 %3823, %v4187_v58   ;;  %1925 = vperm.xlu0 %3816, %v4193_v60  }
  0xe7   : > { %1928 = vperm.xlu1 %3822, %v4190_v59   ;;  %v701_v11 = vmin.f32 %v669_v25, 6.0  ;;  %v1469_v25 = vrot.slane %v4599_v55, 1 }
  0xe8   : > { %v1672_v45 = vpop.permute.xlu2 %1671  ;;  %v600_v49 = vpop.f32.mrf.mxu3 }
  0xe9   : > { %v4885_v46 = vpop.permute.xlu1 %1641  ;;  %vm1726_vm14 = vcmp.eq.s32.totalorder %v1672_v45, 1  ;;  %v601_v10 = vadd.f32 %v4444_v44, %v600_v49  ;;  %v733_v36 = vmul.f32 %v701_v11, %v598_v5  ;;  %v1198_v45 = vsel %vm1166_vm1, %v4759_v38, 0.0 }
  0xea   : > { %7627 = vst [vmem:[#allocation129_spill] sm:$0xff] %v4885_v46  ;;  %v4889_v41 = vsel %vm1726_vm14, %v4753_v43, 0.0  ;;  %v4891_v42 = vpop.permute.xlu0 %1638  ;;  %v4893_v18 = vpop.f32.mrf.mxu0  ;;  %v668_v49 = vmax.f32 %v636_v29, 0.0  ;;  %v4909_v11 = vsel %vm1481_vm0, %v1469_v25, %v7631_v3  ;;  %v7633_v5 = vrot.slane %v4593_v2, 1 }
  0xeb   : > { %7628 = vst [vmem:[#allocation130_spill] sm:$0xff] %v4889_v41  ;;  %v638_v37 = vadd.f32 3.0, %v601_v10 }
  0xec   : > { %7629 = vst [vmem:[#allocation131_spill] sm:$0xff] %v4891_v42  ;;  %v4915_v29 = vsel %vm1481_vm0, %v7633_v5, %v1469_v25  ;;  %v700_v42 = vmin.f32 %v668_v49, 6.0  ;;  %v1392_v5 = vmul.f32 %v4684_v48, %v4700_v39 }
  0xed   : > { %v670_v58 = vmax.f32 %v638_v37, 0.0  ;;  %7632 = vst [vmem:[#allocation133_spill] sm:$0xff] %v4909_v11 }
  0xee   : > { %1940 = vperm.xlu2 %3823, %v4221_v14   ;;  %1934 = vperm.xlu0 %3816, %v4227_v27   ;;  %7634 = vst [vmem:[#allocation134_spill] sm:$0xff] %v4915_v29 }
  0xef   : > { %1937 = vperm.xlu1 %3822, %v4224_v16   ;;  %v702_v43 = vmin.f32 %v670_v58, 6.0  ;;  %v1231_v16 = vmul.f32 %v4659_v20, %v1198_v45  ;;  %v4920_v58 = vmul.f32 0.16666667, %v733_v36  ;;  %v1472_v36 = vrot.slane %v4745_v0, 1 }
  0xf0   : > { %v1681_v59 = vpop.permute.xlu2 %1680  ;;  %v602_v37 = vpop.f32.mrf.mxu3 }
  0xf1   : > { %v4917_v14 = vpop.permute.xlu1 %1650  ;;  %vm1729_vm2 = vcmp.eq.s32.totalorder %v1681_v59, 1  ;;  %7636 = vst [vmem:[#allocation136_spill] sm:$0xff] %v4920_v58  ;;  %v734_v27 = vmul.f32 %v702_v43, %v601_v10  ;;  %v1263_v25 = vadd.f32 %v1231_v16, %v845_v40  ;;  %v1476_v59 = vrot.slane %v4920_v58, 1 }
  0xf2   : > { %7635 = vst [vmem:[#allocation135_spill] sm:$0xff] %v4917_v14  ;;  %v1761_v60 = vsel %vm1729_vm2, %v4827_v17, 0.0  ;;  %v4923_v41 = vpop.permute.xlu0 %1647  ;;  %v4925_v3 = vpop.f32.mrf.mxu0 }
  0xf3   : > { %7637 = vst [vmem:[#allocation137_spill] sm:$0xff] %v4923_v41  ;;  %v1794_v46 = vmul.f32 %v4801_v34, %v1761_v60  ;;  %v4930_v14 = vmul.f32 0.16666667, %v734_v27  ;;  %v7640_v60 = vrot.slane %v4840_v21, 1  ;;  %v7642_v27 = vrot.slane %v4694_v1, 1 }
  0xf5   : > { %7638 = vst [vmem:[#allocation138_spill] sm:$0xff] %v4930_v14  ;;  %v4935_v43 = vadd.f32 %v1794_v46, %v4803_v50  ;;  %v7357_v10 = vrot.slane %v4930_v14, 1  ;;  %v4944_v16 = vsel %vm1481_vm0, %v1472_v36, %v7640_v60  ;;  %v4950_v45 = vsel %vm1481_vm0, %v7642_v27, %v1472_v36 }
  0xf6   : > { %1949 = vperm.xlu2 %3823, %v4253_v32   ;;  %7641 = vst [vmem:[#allocation140_spill] sm:$0xff] %v4944_v16  ;;  %v732_v50 = vmul.f32 %v700_v42, %v596_v22  ;;  %1943 = vperm.xlu0 %3816, %v7644_v6   ;;  %v1424_v46 = vadd.f32 %v1392_v5, %v1263_v25  ;;  %v1745_v60 = vsel %vm1713_vm3, %v4789_v61, 0.0  ;;  %v7652_v6 = vld [vmem:[#allocation30_spill] sm:$0xff] }
  0xf7   : > { %7639 = vst [vmem:[#allocation139_spill] sm:$0xff] %v4935_v43  ;;  %1946 = vperm.xlu1 %3822, %v4256_v33   ;;  %v4958_v40 = vsel %vm1481_vm0, %v1476_v59, %v7357_v10  ;;  %v1778_v36 = vmul.f32 %v4801_v34, %v1745_v60  ;;  %v7650_v10 = vld [vmem:[#allocation28_spill] sm:$0xff]  ;;  %v7651_v33 = vld [vmem:[#allocation29_spill] sm:$0xff]  ;;  %v7656_v60 = vld [vmem:[#allocation86_spill] sm:$0xff] }
  0xf8   : > { %7643 = vst [vmem:[#allocation141_spill] sm:$0xff] %v4950_v45  ;;  %v1690_v49 = vpop.permute.xlu2 %1689  ;;  %v4961_v17 = vpop.f32.mrf.mxu3  ;;  %v4972_v5 = vmul.f32 0.16666667, %v732_v50  ;;  %vm1515_vm5 = vcmp.lt.s32.totalorder %v7656_v60, 15 }
  0xf9   : > { %7645 = vst [vmem:[#allocation142_spill] sm:$0xff] %v4958_v40  ;;  %v4963_v32 = vpop.permute.xlu1 %1659  ;;  %vm1732_vm4 = vcmp.eq.s32.totalorder %v1690_v49, 1  ;;  %v4990_v39 = vadd.f32 %v1778_v36, %v1424_v46 }
  0xfa   : > { %7646 = vst [vmem:[#allocation143_spill] sm:$0xff] %v4963_v32  ;;  %v4966_v22 = vsel %vm1732_vm4, %v4867_v63, 0.0  ;;  %v4968_v42 = vpop.permute.xlu0 %1656  ;;  %v4970_v25 = vpop.f32.mrf.mxu0  ;;  %v1475_v27 = vrot.slane %v4972_v5, 1  ;;  %v7654_v63 = vrot.slane %v4843_v24, 1 }
  0xfb   : > { %7647 = vst [vmem:[#allocation144_spill] sm:$0xff] %v4966_v22 }
  0xfc   : > { %7648 = vst [vmem:[#allocation145_spill] sm:$0xff] %v4968_v42  ;;  %v4981_v49 = vsel %vm1481_vm0, %v1475_v27, %v1476_v59  ;;  %v4987_v50 = vsel %vm1481_vm0, %v7654_v63, %v1475_v27  ;;  %v7661_v27 = vmov 0  }
  0xfd   : > { %7649 = vst [vmem:[#allocation146_spill] sm:$0xff] %v4972_v5  ;;  %v5004_v42 = vsel %vm1515_vm5, 1, %v7661_v27 }
  0xfe   : > { %1958 = vperm.xlu2 %3823, %v7650_v10   ;;  %1952 = vperm.xlu0 %3816, %v7652_v6   ;;  %7653 = vst [vmem:[#allocation28_spill] sm:$0xff] %v4981_v49 }
  0xff   : > { %1955 = vperm.xlu1 %3822, %v7651_v33   ;;  %7655 = vst [vmem:[#allocation147_spill] sm:$0xff] %v4987_v50  ;;  %v7658_v33 = vld [vmem:[#allocation76_spill] sm:$0xff] }
 0x100   : > { %v1699_v32 = vpop.permute.xlu2 %1698  ;;  %v607_v10 = vpop.f32.mrf.mxu3  ;;  %vm1514_vm8 = vcmp.lt.s32.totalorder %v7658_v33, 15  ;;  %7662 = vst [vmem:[#allocation149_spill] sm:$0xff] %v5004_v42  ;;  %v7664_v33 = vld [vmem:[#allocation32_spill] sm:$0xff] }
 0x101   : > { %v4992_v61 = vpop.permute.xlu1 %1668  ;;  %vm1735_vm7 = vcmp.eq.s32.totalorder %v1699_v32, 1  ;;  %v608_v59 = vadd.f32 %v4444_v44, %v607_v10  ;;  %v5007_v36 = vsel %vm1514_vm8, 1, %v7661_v27  ;;  %v603_v32 = vadd.f32 %v4444_v44, %v602_v37 }
 0x102   : > { %7657 = vst [vmem:[#allocation86_spill] sm:$0xff] %v4992_v61  ;;  %v4996_v6 = vpop.permute.xlu0 %1665  ;;  %v4998_v41 = vpop.f32.mrf.mxu0  ;;  %v5001_v63 = vsel %vm1735_vm7, %v4958_v40, 0.0 }
 0x103   : > { %7659 = vst [vmem:[#allocation76_spill] sm:$0xff] %v4996_v6  ;;  %v641_v46 = vadd.f32 3.0, %v608_v59  ;;  %v639_v40 = vadd.f32 3.0, %v603_v32 }
 0x104   : > { %7660 = vst [vmem:[#allocation148_spill] sm:$0xff] %v5001_v63 }
 0x105   : > { %7663 = vst [vmem:[#allocation150_spill] sm:$0xff] %v5007_v36  ;;  %v673_v60 = vmax.f32 %v641_v46, 0.0 }
 0x106   : > { %2128 = vperm.xlu2 %3823, %v5004_v42   ;;  %1961 = vperm.xlu0 %3816, %v7664_v33   ;;  %v7692_v42 = vrot.slane %v4920_v58, 7 }
 0x107   : > { %2125 = vperm.xlu1 %3822, %v5007_v36   ;;  %v705_v10 = vmin.f32 %v673_v60, 6.0  ;;  %v5026_v60 = vadd.f32 %v4444_v44, %v4795_v12  ;;  %v840_v12 = vmul.f32 %v4655_v4, %v4569_v56 }
 0x108   : > { %v5013_v6 = vpop.permute.xlu2 %1868 }
 0x109   : > { %7665 = vst [vmem:[#allocation32_spill] sm:$0xff] %v5013_v6  ;;  %v1678_v61 = vpop.permute.xlu1 %1677  ;;  %v737_v43 = vmul.f32 %v705_v10, %v608_v59  ;;  %v671_v6 = vmax.f32 %v639_v40, 0.0  ;;  %v7670_v10 = vld [vmem:[#allocation34_spill] sm:$0xff] }
 0x10a   : > { %vm1728_vm9 = vcmp.eq.s32.totalorder %v1678_v61, 1  ;;  %v1675_v63 = vpop.permute.xlu0 %1674  ;;  %v5015_v22 = vpop.f32.mrf.mxu0 }
 0x10b   : > { %7666 = vst [vmem:[#allocation151_spill] sm:$0xff] %v5015_v22  ;;  %v1760_v27 = vsel %vm1728_vm9, %v4909_v11, 0.0  ;;  %vm1727_vm10 = vcmp.eq.s32.totalorder %v1675_v63, 1  ;;  %v5018_v37 = vmul.f32 0.16666667, %v737_v43  ;;  %v7671_v63 = vld [vmem:[#allocation31_spill] sm:$0xff] }
 0x10c   : > { %v1793_v46 = vmul.f32 %v4801_v34, %v1760_v27  ;;  %v5022_v33 = vsel %vm1727_vm10, %v4915_v29, 0.0  ;;  %v7672_v43 = vld [vmem:[#allocation35_spill] sm:$0xff]  ;;  %v7673_v27 = vld [vmem:[#allocation48_spill] sm:$0xff]  ;;  %v7674_v11 = vld [vmem:[#allocation53_spill] sm:$0xff] }
 0x10d   : > { %7667 = vst [vmem:[#allocation152_spill] sm:$0xff] %v5018_v37  ;;  %v7377_v59 = vrot.slane %v5018_v37, 7  ;;  %vm1162_vm11 = vcmp.eq.s32.totalorder %v7673_v27, 1  ;;  %vm1161_vm12 = vcmp.eq.s32.totalorder %v7674_v11, 1  ;;  %v7675_v29 = vld [vmem:[#allocation69_spill] sm:$0xff] }
 0x10e   : > { %7668 = vst [vmem:[#allocation153_spill] sm:$0xff] %v5022_v33  ;;  %v5029_v61 = vadd.f32 %v1793_v46, %v4743_v23  ;;  %2137 = vperm.xlu2 %3823, %v7670_v10   ;;  %2131 = vperm.xlu0 %3816, %v7671_v63   ;;  %v7676_v40 = vrot.slane %v7675_v29, 7  ;;  %v703_v33 = vmin.f32 %v671_v6, 6.0  ;;  %v7681_v6 = vld [vmem:[#allocation80_spill] sm:$0xff] }
 0x10f   : > { %2134 = vperm.xlu1 %3822, %v7672_v43   ;;  %v7678_v43 = vld [vmem:[#allocation97_spill] sm:$0xff] }
 0x110   : > { %7669 = vst [vmem:[#allocation154_spill] sm:$0xff] %v5029_v61  ;;  %v5045_v23 = vsel %vm902_vm15, %v7377_v59, %v7676_v40  ;;  %v1878_v46 = vpop.permute.xlu2 %1877  ;;  %v618_v61 = vadd.f32 3.0, %v5026_v60  ;;  %v1387_v40 = vmul.f32 %v4684_v48, %v7675_v29  ;;  %v735_v36 = vmul.f32 %v703_v33, %v603_v32 }
 0x111   : > { %7677 = vst [vmem:[#allocation48_spill] sm:$0xff] %v5045_v23  ;;  %v1193_v10 = vsel %vm1161_vm12, %v5045_v23, 0.0  ;;  %v1687_v63 = vpop.permute.xlu1 %1686  ;;  %vm1966_vm13 = vcmp.eq.s32.totalorder %v1878_v46, 1  ;;  %v1194_v23 = vsel %vm1162_vm11, %v7681_v6, 0.0  ;;  %v7687_v46 = vld [vmem:[#allocation33_spill] sm:$0xff]  ;;  %v7689_v32 = vrot.slane %v4840_v21, 7 }
 0x112   : > { %v1226_v11 = vmul.f32 %v4659_v20, %v1193_v10  ;;  %vm1731_vm14 = vcmp.eq.s32.totalorder %v1687_v63, 1  ;;  %v1684_v56 = vpop.permute.xlu0 %1683  ;;  %v5051_v22 = vsel %vm1966_vm13, %v7678_v43, 0.0  ;;  %v5053_v37 = vpop.f32.mrf.mxu0  ;;  %v650_v29 = vmax.f32 %v618_v61, 0.0  ;;  %v7697_v6 = vld [vmem:[#allocation62_spill] sm:$0xff] }
 0x113   : > { %7679 = vst [vmem:[#allocation53_spill] sm:$0xff] %v5051_v22  ;;  %v1763_v59 = vsel %vm1731_vm14, %v4944_v16, 0.0  ;;  %vm1730_vm1 = vcmp.eq.s32.totalorder %v1684_v56, 1  ;;  %v7685_v16 = vld [vmem:[#allocation37_spill] sm:$0xff]  ;;  %v7688_v22 = vld [vmem:[#allocation38_spill] sm:$0xff]  ;;  %v1227_v61 = vmul.f32 %v4659_v20, %v1194_v23  ;;  %vm1180_vm8 = vcmp.eq.s32.totalorder %v7697_v6, 1 }
 0x114   : > { %7680 = vst [vmem:[#allocation155_spill] sm:$0xff] %v5053_v37  ;;  %v1258_v10 = vadd.f32 %v1226_v11, %v840_v12  ;;  %v1796_v63 = vmul.f32 %v4801_v34, %v1763_v59  ;;  %v5064_v43 = vsel %vm1730_vm1, %v4950_v45, 0.0  ;;  %v7683_v37 = vld [vmem:[#allocation46_spill] sm:$0xff]  ;;  %v7389_v12 = vrot.slane %v4972_v5, 7  ;;  %v7686_v11 = vld [vmem:[#allocation103_spill] sm:$0xff] }
 0x115   : > { %7682 = vst [vmem:[#allocation156_spill] sm:$0xff] %v5064_v43  ;;  %vm1185_vm2 = vcmp.eq.s32.totalorder %v7686_v11, 1  ;;  %v7694_v59 = vld [vmem:[#allocation95_spill] sm:$0xff]  ;;  %v5107_v45 = vmul.f32 0.16666667, %v735_v36  ;;  %vm1709_vm12 = vcmp.eq.s32.totalorder %v4833_v62, 1 }
 0x116   : > { %v5069_v56 = vadd.f32 %v1796_v63, %v4879_v54  ;;  %2146 = vperm.xlu2 %3823, %v7685_v16   ;;  %v5072_v27 = vadd.f32 %v1387_v40, %v1258_v10  ;;  %2140 = vperm.xlu0 %3816, %v7687_v46   ;;  %v7690_v54 = vrot.slane %v4745_v0, 7  ;;  %v841_v10 = vmul.f32 %v4655_v4, %v4605_v8  ;;  %v7700_v43 = vld [vmem:[#allocation79_spill] sm:$0xff] }
 0x117   : > { %2143 = vperm.xlu1 %3822, %v7688_v22   ;;  %v5098_v23 = vsel %vm902_vm15, %v7389_v12, %v7692_v42  ;;  %vm1708_vm3 = vcmp.eq.s32.totalorder %v7694_v59, 1  ;;  %v864_v0 = vmul.f32 %v4655_v4, %v4972_v5  ;;  %v5105_v63 = vadd.f32 %v4444_v44, %v4835_v15  ;;  %7695 = vst [vmem:[#allocation95_spill] sm:$0xff] %v5107_v45  ;;  %v7698_v15 = vld [vmem:[#allocation75_spill] sm:$0xff] }
 0x118   : > { %7684 = vst [vmem:[#allocation46_spill] sm:$0xff] %v5069_v56  ;;  %v5086_v33 = vsel %vm902_vm15, %v7690_v54, %v7689_v32  ;;  %v1887_v40 = vpop.permute.xlu2 %1886  ;;  %v682_v32 = vmin.f32 %v650_v29, 6.0  ;;  %v1388_v36 = vmul.f32 %v4684_v48, %v7698_v15  ;;  %v1259_v16 = vadd.f32 %v1227_v61, %v841_v10 }
 0x119   : > { %7691 = vst [vmem:[#allocation103_spill] sm:$0xff] %v5086_v33  ;;  %v1217_v11 = vsel %vm1185_vm2, %v5086_v33, 0.0  ;;  %v1696_v54 = vpop.permute.xlu1 %1695  ;;  %vm1969_vm4 = vcmp.eq.s32.totalorder %v1887_v40, 1  ;;  %v7703_v61 = vrot.slane %v4698_v51, 7  ;;  %v7705_v10 = vrot.slane %v4694_v1, 7 }
 0x11a   : > { %7693 = vst [vmem:[#allocation38_spill] sm:$0xff] %v5098_v23  ;;  %vm1734_vm5 = vcmp.eq.s32.totalorder %v1696_v54, 1  ;;  %v1693_v8 = vpop.permute.xlu0 %1692  ;;  %v5110_v56 = vsel %vm1969_vm4, %v4813_v57, 0.0  ;;  %v572_v42 = vpop.f32.mrf.mxu0  ;;  %v1250_v40 = vmul.f32 %v4659_v20, %v1217_v11  ;;  %v7701_v11 = vld [vmem:[#allocation40_spill] sm:$0xff]  ;;  %v7716_v6 = vrot.slane %v5107_v45, 1 }
 0x11b   : > { %7696 = vst [vmem:[#allocation157_spill] sm:$0xff] %v5110_v56  ;;  %v5113_v12 = vsel %vm1734_vm5, %v4981_v49, 0.0  ;;  %vm1733_vm7 = vcmp.eq.s32.totalorder %v1693_v8, 1  ;;  %v573_v29 = vadd.f32 %v4444_v44, %v572_v42  ;;  %v1740_v56 = vsel %vm1708_vm3, %v7700_v43, 0.0 }
 0x11c   : > { %v5121_v54 = vsel %vm1733_vm7, %v4987_v50, 0.0  ;;  %v5127_v46 = vadd.f32 %v1250_v40, %v864_v0  ;;  %v619_v44 = vadd.f32 3.0, %v5105_v63  ;;  %v859_v42 = vmul.f32 %v4655_v4, %v4638_v47 }
 0x11d   : > { %7699 = vst [vmem:[#allocation62_spill] sm:$0xff] %v5121_v54  ;;  %v627_v49 = vadd.f32 3.0, %v573_v29  ;;  %v7702_v50 = vrot.slane %v4593_v2, 7  ;;  %v7706_v0 = vrot.slane %v4638_v47, 7  ;;  %v5150_v8 = vperm.slane %v4636_v26, 7  ;;  %v7710_v54 = vld [vmem:[#allocation41_spill] sm:$0xff] }
 0x11e   : > { %2155 = vperm.xlu2 %3823, %v7701_v11   ;;  %v714_v43 = vmul.f32 %v682_v32, %v5026_v60  ;;  %v7709_v11 = vld [vmem:[#allocation36_spill] sm:$0xff]  ;;  %vm1712_vm2 = vcmp.eq.s32.totalorder %v4875_v53, 1  ;;  %v7737_v53 = vrot.slane %v4895_v31, 7 }
 0x11f   : > { %v5139_v59 = vsel %vm902_vm15, %v7703_v61, %v7702_v50  ;;  %v5147_v40 = vsel %vm902_vm15, %v7706_v0, %v7705_v10  ;;  %7708 = vst [vmem:[#allocation160_spill] sm:$0xff] %v5150_v8  ;;  %v659_v15 = vmax.f32 %v627_v49, 0.0  ;;  %2149 = vperm.xlu0 %3816, %v7709_v11   ;;  %2152 = vperm.xlu1 %3822, %v7710_v54   ;;  %v7711_v61 = vld [vmem:[#allocation58_spill] sm:$0xff]  ;;  %v7712_v47 = vld [vmem:[#allocation68_spill] sm:$0xff]  ;;  %v7717_v54 = vrot.slane %v4930_v14, 1 }
 0x120   : > { %7704 = vst [vmem:[#allocation158_spill] sm:$0xff] %v5139_v59  ;;  %v1212_v50 = vsel %vm1180_vm8, %v5139_v59, 0.0  ;;  %vm1167_vm9 = vcmp.eq.s32.totalorder %v7711_v61, 1  ;;  %vm1183_vm10 = vcmp.eq.s32.totalorder %v7712_v47, 1  ;;  %v5160_v10 = vpop.permute.xlu2 %1895  ;;  %v5163_v8 = vadd.f32 %v1388_v36, %v1259_v16  ;;  %v7715_v60 = vld [vmem:[#allocation88_spill] sm:$0xff] }
 0x121   : > { %7707 = vst [vmem:[#allocation159_spill] sm:$0xff] %v5147_v40  ;;  %v1245_v0 = vmul.f32 %v4659_v20, %v1212_v50  ;;  %vm1179_vm11 = vcmp.eq.s32.totalorder %v7715_v60, 1  ;;  %v1773_v49 = vmul.f32 %v4801_v34, %v1740_v56  ;;  %v691_v32 = vmin.f32 %v659_v15, 6.0  ;;  %v5167_v11 = vpop.permute.xlu1 %1704 }
 0x122   : > { %7713 = vst [vmem:[#allocation58_spill] sm:$0xff] %v5160_v10  ;;  %v5175_v47 = vsel %vm1481_vm0, %v7717_v54, %v7716_v6  ;;  %v1215_v61 = vsel %vm1183_vm10, %v5147_v40, 0.0  ;;  %v651_v50 = vmax.f32 %v619_v44, 0.0  ;;  %v1199_v36 = vsel %vm1167_vm9, %v4813_v57, 0.0  ;;  %v7721_v6 = vld [vmem:[#allocation100_spill] sm:$0xff] }
 0x123   : > { %7714 = vst [vmem:[#allocation68_spill] sm:$0xff] %v5163_v8  ;;  %v1702_v8 = vpop.permute.xlu0 %1701  ;;  %v1277_v56 = vadd.f32 %v1245_v0, %v859_v42  ;;  %v5180_v15 = vmul.f32 0.16666667, %v714_v43  ;;  %v723_v10 = vmul.f32 %v691_v32, %v573_v29  ;;  %v862_v54 = vmul.f32 %v4655_v4, %v4840_v21  ;;  %v7723_v0 = vld [vmem:[#allocation44_spill] sm:$0xff] }
 0x124   : > { %7718 = vst [vmem:[#allocation88_spill] sm:$0xff] %v5175_v47  ;;  %vm1736_vm13 = vcmp.eq.s32.totalorder %v1702_v8, 1  ;;  %v1248_v44 = vmul.f32 %v4659_v20, %v1215_v61  ;;  %v1391_v16 = vmul.f32 %v4684_v48, %v7721_v6  ;;  %v1232_v57 = vmul.f32 %v4659_v20, %v1199_v36  ;;  %v7724_v6 = vld [vmem:[#allocation64_spill] sm:$0xff]  ;;  %v7725_v36 = vld [vmem:[#allocation101_spill] sm:$0xff] }
 0x125   : > { %7719 = vst [vmem:[#allocation161_spill] sm:$0xff] %v5180_v15  ;;  %v5184_v59 = vsel %vm1736_vm13, %v5175_v47, 0.0  ;;  %v5192_v42 = vmul.f32 0.16666667, %v723_v10  ;;  %v1406_v29 = vmul.f32 %v4684_v48, %v4593_v2  ;;  %v683_v8 = vmin.f32 %v651_v50, 6.0  ;;  %v7727_v50 = vld [vmem:[#allocation45_spill] sm:$0xff] }
 0x126   : > { %7720 = vst [vmem:[#allocation162_spill] sm:$0xff] %v5184_v59  ;;  %2164 = vperm.xlu2 %3823, %v7723_v0   ;;  %v1280_v32 = vadd.f32 %v1248_v44, %v862_v54  ;;  %v5199_v47 = vadd.f32 %v1391_v16, %v4855_v7  ;;  %v1409_v61 = vmul.f32 %v4684_v48, %v4694_v1  ;;  %vm1169_vm14 = vcmp.eq.s32.totalorder %v7724_v6, 1  ;;  %v7726_v59 = vld [vmem:[#allocation39_spill] sm:$0xff]  ;;  %v5217_v16 = vld [vmem:[%s7183_s3] ss:$0 sm:$0xff] }
 0x127   : > { %7722 = vst [vmem:[#allocation163_spill] sm:$0xff] %v5192_v42  ;;  %v1741_v10 = vsel %vm1709_vm12, %v7725_v36, 0.0  ;;  %v846_v43 = vmul.f32 %v4655_v4, %v5180_v15  ;;  %2158 = vperm.xlu0 %3816, %v7726_v59   ;;  %2161 = vperm.xlu1 %3822, %v7727_v50   ;;  %v5212_v7 = vadd.f32 %v1406_v29, %v1277_v56  ;;  %v7731_v44 = vrot.slane %v4698_v51, 7  ;;  %v7735_v59 = vld [vmem:[#allocation89_spill] sm:$0xff] }
 0x128   : > { %v5221_v62 = vadd.f32 %v5217_v16, %v4877_v28  ;;  %v5225_v36 = vpop.permute.xlu2 %1904  ;;  %v5227_v0 = vadd.f32 %v1409_v61, %v1280_v32  ;;  %v5231_v56 = vadd.f32 %v5217_v16, %v4893_v18  ;;  %v5235_v29 = vadd.f32 %v5217_v16, %v4925_v3 }
 0x129   : > { %7728 = vst [vmem:[#allocation64_spill] sm:$0xff] %v5212_v7  ;;  %v1875_v54 = vpop.permute.xlu1 %1874  ;;  %v858_v28 = vmul.f32 %v4655_v4, %v4599_v55  ;;  %v7732_v1 = vrot.slane %v5192_v42, 7  ;;  %v715_v61 = vmul.f32 %v683_v8, %v5105_v63  ;;  %v5249_v18 = vperm.slane %v4636_v26, 3  ;;  %v7745_v42 = vld [vmem:[#allocation109_spill] sm:$0xff] }
 0x12a   : > { %7729 = vst [vmem:[#allocation164_spill] sm:$0xff] %v5225_v36  ;;  %vm1965_vm1 = vcmp.eq.s32.totalorder %v1875_v54, 1  ;;  %v1264_v36 = vadd.f32 %v1232_v57, %v846_v43  ;;  %v1805_v63 = vadd.f32 %v1773_v49, %v5072_v27  ;;  %v895_v8 = vrot.slane %v4843_v24, 7  ;;  %v7740_v27 = vld [vmem:[#allocation111_spill] sm:$0xff] }
 0x12b   : > { %7730 = vst [vmem:[#allocation165_spill] sm:$0xff] %v5227_v0  ;;  %v5245_v32 = vsel %vm902_vm15, %v7732_v1, %v7731_v44  ;;  %v5251_v3 = vpop.permute.xlu0 %1871  ;;  %v1997_v50 = vsel %vm1965_vm1, %v7735_v59, 0.0  ;;  %v620_v44 = vadd.f32 3.0, %v5221_v62  ;;  %v621_v54 = vadd.f32 3.0, %v5231_v56  ;;  %v7742_v59 = vld [vmem:[#allocation82_spill] sm:$0xff] }
 0x12c   : > { %7733 = vst [vmem:[#allocation166_spill] sm:$0xff] %v5245_v32  ;;  %v1211_v55 = vsel %vm1179_vm11, %v5245_v32, 0.0  ;;  %v2030_v26 = vmul.f32 %v5249_v18, %v1997_v50  ;;  %v622_v60 = vadd.f32 3.0, %v5235_v29  ;;  %v7736_v2 = vrot.slane %v5180_v15, 7 }
 0x12d   : > { %7734 = vst [vmem:[#allocation167_spill] sm:$0xff] %v5251_v3  ;;  %v1244_v1 = vmul.f32 %v4659_v20, %v1211_v55  ;;  %v5275_v43 = vmul.f32 0.16666667, %v715_v61  ;;  %v1744_v49 = vsel %vm1712_vm2, %v7740_v27, 0.0  ;;  %v7743_v0 = vrot.slane %v4840_v21, 7 }
 0x12e   : > { %v5271_v57 = vsel %vm902_vm15, %v7737_v53, %v7736_v2  ;;  %v5278_v50 = vadd.f32 %v2030_v26, %v1805_v63  ;;  %2446 = vperm.xlu2 %3823, %v7742_v59   ;;  %vm1714_vm3 = vcmp.eq.s32.totalorder %v7745_v42, 1  ;;  %v5291_v61 = vmul.f32 %v4801_v34, %v1741_v10  ;;  %v7748_v63 = vld [vmem:[#allocation51_spill] sm:$0xff]  ;;  %v7749_v59 = vld [vmem:[#allocation77_spill] sm:$0xff] }
 0x12f   : > { %7738 = vst [vmem:[#allocation168_spill] sm:$0xff] %v5271_v57  ;;  %v5273_v55 = vadd.f32 %v1244_v1, %v858_v28  ;;  %v5285_v40 = vsel %vm902_vm15, %v7743_v0, %v895_v8  ;;  %v7747_v1 = vld [vmem:[#allocation43_spill] sm:$0xff]  ;;  %2170 = vperm.xlu1 %3822, %v7748_v63   ;;  %vm1186_vm4 = vcmp.eq.s32.totalorder %v7749_v59, 1  ;;  %v652_v26 = vmax.f32 %v620_v44, 0.0  ;;  %v7774_v59 = vld [vmem:[#allocation42_spill] sm:$0xff] }
 0x130   : > { %7739 = vst [vmem:[#allocation169_spill] sm:$0xff] %v5275_v43  ;;  %2167 = vperm.xlu0 %3816, %v7747_v1   ;;  %v5296_v53 = vpop.permute.xlu2 %1913  ;;  %v1201_v0 = vsel %vm1169_vm14, %v5271_v57, 0.0  ;;  %v7751_v2 = vrot.slane %v4895_v31, 1  ;;  %v7752_v28 = vrot.slane %v4755_v30, 1  ;;  %v1393_v63 = vmul.f32 %v4684_v48, %v4755_v30  ;;  %v7761_v42 = vld [vmem:[#allocation3_spill] sm:$0xff] }
 0x131   : > { %7741 = vst [vmem:[#allocation170_spill] sm:$0xff] %v5278_v50  ;;  %v1777_v50 = vmul.f32 %v4801_v34, %v1744_v49  ;;  %v7754_v44 = vrot.slane %v5180_v15, 1  ;;  %v653_v57 = vmax.f32 %v621_v54, 0.0  ;;  %v654_v27 = vmax.f32 %v622_v60, 0.0 }
 0x132   : > { %7744 = vst [vmem:[#allocation82_spill] sm:$0xff] %v5285_v40  ;;  %v5307_v10 = vsel %vm1481_vm0, %v7752_v28, %v7751_v2  ;;  %v7755_v1 = vmov %v7751_v2  ;;  %v7757_v28 = vrot.slane %v4895_v31, 7  ;;  %v7758_v3 = vrot.slane %v4755_v30, 7 }
 0x133   : > { %7746 = vst [vmem:[#allocation109_spill] sm:$0xff] %v5291_v61  ;;  %v5318_v6 = vsel %vm1481_vm0, %v7755_v1, %v7754_v44  ;;  %v7416_v61 = vrot.slane %v5275_v43, 1  ;;  %v1881_v2 = vpop.permute.xlu0 %1880  ;;  %v1425_v7 = vadd.f32 %v1393_v63, %v1264_v36  ;;  %v5331_v54 = vmul.f32 %v4659_v20, %v1201_v0 }
 0x134   : > { %7750 = vst [vmem:[#allocation77_spill] sm:$0xff] %v5296_v53  ;;  %v1884_v53 = vpop.permute.xlu1 %1883  ;;  %v5327_v49 = vsel %vm902_vm15, %v7758_v3, %v7757_v28  ;;  %vm1967_vm7 = vcmp.eq.s32.totalorder %v1881_v2, 1  ;;  %v1746_v60 = vsel %vm1714_vm3, %v5307_v10, 0.0  ;;  %v684_v1 = vmin.f32 %v652_v26, 6.0 }
 0x135   : > { %7753 = vst [vmem:[#allocation171_spill] sm:$0xff] %v5307_v10  ;;  %vm1968_vm5 = vcmp.eq.s32.totalorder %v1884_v53, 1  ;;  %v5338_v53 = vadd.f32 %v5217_v16, %v4970_v25  ;;  %v1999_v3 = vsel %vm1967_vm7, %v4706_v9, 0.0  ;;  %v685_v36 = vmin.f32 %v653_v57, 6.0  ;;  %v7779_v9 = vld [vmem:[#allocation5_spill] sm:$0xff]  ;;  %v7792_v10 = vld [vmem:[#allocation144_spill] sm:$0xff] }
 0x136   : > { %7756 = vst [vmem:[#allocation172_spill] sm:$0xff] %v5318_v6  ;;  %v2000_v13 = vsel %vm1968_vm5, %v4759_v38, 0.0  ;;  %v686_v63 = vmin.f32 %v654_v27, 6.0  ;;  %v2032_v2 = vmul.f32 %v5249_v18, %v1999_v3  ;;  %v5344_v0 = vadd.f32 %v1777_v50, %v5199_v47  ;;  %2455 = vperm.xlu2 %3823, %v7761_v42   ;;  %v7768_v3 = vld [vmem:[#allocation112_spill] sm:$0xff]  ;;  %v7769_v42 = vld [vmem:[#allocation129_spill] sm:$0xff] }
 0x137   : > { %7759 = vst [vmem:[#allocation173_spill] sm:$0xff] %v5327_v49  ;;  %v2033_v44 = vmul.f32 %v5249_v18, %v2000_v13  ;;  %v7762_v26 = vrot.slane %v4972_v5, 7  ;;  %v1411_v13 = vmul.f32 %v4684_v48, %v4840_v21  ;;  %v1779_v57 = vmul.f32 %v4801_v34, %v1746_v60  ;;  %v7767_v60 = vld [vmem:[#allocation6_spill] sm:$0xff] }
 0x138   : > { %v7764_v47 = vrot.slane %v5180_v15, 1  ;;  %v5369_v27 = vadd.f32 %v5217_v16, %v4961_v17  ;;  %v5373_v50 = vadd.f32 %v2032_v2, %v4870_v52  ;;  %2452 = vperm.xlu1 %3822, %v7767_v60   ;;  %vm1187_vm8 = vcmp.eq.s32.totalorder %v7768_v3, 1  ;;  %v7771_v60 = vld [vmem:[#allocation131_spill] sm:$0xff]  ;;  %v7790_v3 = vld [vmem:[#allocation102_spill] sm:$0xff] }
 0x139   : > { %v5347_v28 = vadd.f32 %v2033_v44, %v4829_v35  ;;  %v5354_v25 = vsel %vm902_vm15, %v895_v8, %v7762_v26  ;;  %v7766_v44 = vld [vmem:[#allocation93_spill] sm:$0xff]  ;;  %vm1716_vm9 = vcmp.eq.s32.totalorder %v7769_v42, 1  ;;  %v623_v26 = vadd.f32 3.0, %v5338_v53 }
 0x13a   : > { %7763 = vst [vmem:[#allocation3_spill] sm:$0xff] %v5354_v25  ;;  %v5365_v35 = vsel %vm1481_vm0, %v7764_v47, %v7416_v61  ;;  %2449 = vperm.xlu0 %3816, %v7766_v44   ;;  %v1923_v47 = vpop.permute.xlu2 %1922  ;;  %v5381_v61 = vadd.f32 %v1411_v13, %v5127_v46  ;;  %v5383_v17 = vadd.f32 %v1779_v57, %v1425_v7  ;;  %v1218_v44 = vsel %vm1186_vm4, %v5285_v40, 0.0 }
 0x13b   : > { %7760 = vst [vmem:[#allocation174_spill] sm:$0xff] %v5347_v28  ;;  %v716_v8 = vmul.f32 %v684_v1, %v5221_v62  ;;  %vm1981_vm10 = vcmp.eq.s32.totalorder %v1923_v47, 1  ;;  %v1405_v2 = vmul.f32 %v4684_v48, %v4698_v51  ;;  %vm1715_vm11 = vcmp.eq.s32.totalorder %v7771_v60, 1  ;;  %v1890_v7 = vpop.permute.xlu0 %1889  ;;  %v7773_v62 = vld [vmem:[#allocation130_spill] sm:$0xff] }
 0x13c   : > { %7765 = vst [vmem:[#allocation175_spill] sm:$0xff] %v5365_v35  ;;  %v5386_v52 = vpop.permute.xlu1 %1892  ;;  %v717_v21 = vmul.f32 %v685_v36, %v5231_v56  ;;  %v718_v46 = vmul.f32 %v686_v63, %v5235_v29  ;;  %v5397_v13 = vsel %vm1981_vm10, %v5245_v32, 0.0  ;;  %v1791_v1 = vmul.f32 %v4801_v34, %v7773_v62 }
 0x13d   : > { %7770 = vst [vmem:[#allocation93_spill] sm:$0xff] %v5383_v17  ;;  %v640_v57 = vadd.f32 3.0, %v5369_v27  ;;  %vm1970_vm12 = vcmp.eq.s32.totalorder %v1890_v7, 1  ;;  %v1437_v47 = vadd.f32 %v1405_v2, %v5273_v55  ;;  %vm1168_vm13 = vcmp.eq.s32.totalorder %v7774_v59, 1  ;;  %v7775_v55 = vld [vmem:[#allocation110_spill] sm:$0xff]  ;;  %v7796_v17 = vld [vmem:[#allocation35_spill] sm:$0xff] }
 0x13e   : > { %7772 = vst [vmem:[#allocation6_spill] sm:$0xff] %v5397_v13  ;;  %v655_v30 = vmax.f32 %v623_v26, 0.0  ;;  %v2002_v60 = vsel %vm1970_vm12, %v5327_v49, 0.0  ;;  %v865_v56 = vmul.f32 %v4655_v4, %v4920_v58  ;;  %v1251_v29 = vmul.f32 %v4659_v20, %v1218_v44  ;;  %2458 = vperm.xlu2 %3823, %v7779_v9  }
 0x13f   : > { %v1748_v36 = vsel %vm1716_vm9, %v5365_v35, 0.0  ;;  %v1747_v63 = vsel %vm1715_vm11, %v5318_v6, 0.0  ;;  %v2035_v7 = vmul.f32 %v5249_v18, %v2002_v60  ;;  %v5413_v62 = vadd.f32 %v1791_v1, %v1437_v47  ;;  %v7781_v1 = vld [vmem:[#allocation150_spill] sm:$0xff]  ;;  %v7782_v47 = vld [vmem:[#allocation149_spill] sm:$0xff] }
 0x140   : > { %vm1188_vm14 = vcmp.eq.s32.totalorder %v7775_v55, 1  ;;  %v5416_v26 = vmul.f32 0.16666667, %v716_v8  ;;  %v5418_v2 = vmul.f32 0.16666667, %v717_v21  ;;  %v1283_v44 = vadd.f32 %v1251_v29, %v865_v56  ;;  %2899 = vperm.xlu1 %3822, %v7782_v47  }
 0x141   : > { %v5420_v32 = vmul.f32 0.16666667, %v718_v46  ;;  %v672_v38 = vmax.f32 %v640_v57, 0.0  ;;  %v5425_v42 = vadd.f32 %v5217_v16, %v4998_v41  ;;  %v5428_v60 = vadd.f32 %v2035_v7, %v4990_v39  ;;  %v7783_v46 = vld [vmem:[#allocation151_spill] sm:$0xff]  ;;  %v7786_v7 = vld [vmem:[#allocation70_spill] sm:$0xff] }
 0x142   : > { %7776 = vst [vmem:[#allocation112_spill] sm:$0xff] %v5416_v26  ;;  %2896 = vperm.xlu0 %3816, %v7781_v1   ;;  %v1412_v21 = vmul.f32 %v4684_v48, %v4843_v24  ;;  %v5435_v8 = vmul.f32 %v4801_v34, %v1748_v36  ;;  %v687_v9 = vmin.f32 %v655_v30, 6.0  ;;  %v5439_v57 = vadd.f32 %v5217_v16, %v7783_v46  ;;  %v1932_v39 = vpop.permute.xlu2 %1931 }
 0x143   : > { %7777 = vst [vmem:[#allocation129_spill] sm:$0xff] %v5418_v2  ;;  %v5443_v41 = vmul.f32 %v4655_v4, %v5275_v43  ;;  %v5446_v56 = vmul.f32 %v4801_v34, %v1747_v63  ;;  %vm1984_vm1 = vcmp.eq.s32.totalorder %v1932_v39, 1  ;;  %v1219_v36 = vsel %vm1187_vm8, %v5354_v25, 0.0  ;;  %v5466_v24 = vpop.permute.xlu0 %1898 }
 0x144   : > { %7778 = vst [vmem:[#allocation131_spill] sm:$0xff] %v5420_v32  ;;  %v5448_v29 = vpop.permute.xlu1 %1901  ;;  %v5453_v30 = vadd.f32 %v1412_v21, %v1283_v44  ;;  %vm1173_vm2 = vcmp.eq.s32.totalorder %v7786_v7, 1  ;;  %v7787_v47 = vrot.slane %v5275_v43, 7  ;;  %v7788_v46 = vrot.slane %v5180_v15, 7 }
 0x145   : > { %7780 = vst [vmem:[#allocation130_spill] sm:$0xff] %v5428_v60  ;;  %v5469_v35 = vsel %vm1984_vm1, %v7790_v3, 0.0  ;;  %v704_v44 = vmin.f32 %v672_v38, 6.0  ;;  %v624_v21 = vadd.f32 3.0, %v5425_v42  ;;  %v881_v1 = vrot.slane %v5418_v2, 7  ;;  %v7793_v38 = vld [vmem:[#allocation155_spill] sm:$0xff] }
 0x146   : > { %7784 = vst [vmem:[#allocation42_spill] sm:$0xff] %v5446_v56  ;;  %v5463_v63 = vsel %vm902_vm15, %v7788_v46, %v7787_v47  ;;  %v848_v28 = vmul.f32 %v4655_v4, %v5416_v26  ;;  %v625_v47 = vadd.f32 3.0, %v5439_v57  ;;  %v866_v46 = vmul.f32 %v4655_v4, %v4930_v14  ;;  %2905 = vperm.xlu2 %3823, %v7796_v17  }
 0x147   : > { %7785 = vst [vmem:[#allocation110_spill] sm:$0xff] %v5448_v29  ;;  %v719_v29 = vmul.f32 %v687_v9, %v5338_v53  ;;  %v1252_v39 = vmul.f32 %v4659_v20, %v1219_v36  ;;  %v1797_v3 = vmul.f32 %v4801_v34, %v7792_v10  ;;  %v1200_v13 = vsel %vm1168_vm13, %v5327_v49, 0.0  ;;  %v7797_v49 = vld [vmem:[#allocation31_spill] sm:$0xff]  ;;  %v7798_v53 = vld [vmem:[#allocation2_spill] sm:$0xff] }
 0x148   : > { %7789 = vst [vmem:[#allocation5_spill] sm:$0xff] %v5463_v63  ;;  %v7794_v60 = vrot.slane %v5420_v32, 7  ;;  %v656_v59 = vmax.f32 %v624_v21, 0.0  ;;  %2461 = vperm.xlu1 %3822, %v7798_v53   ;;  %v1220_v9 = vsel %vm1188_vm14, %v5098_v23, 0.0  ;;  %v7800_v6 = vrot.slane %v4920_v58, 7 }
 0x149   : > { %7791 = vst [vmem:[#allocation150_spill] sm:$0xff] %v5469_v35  ;;  %v5484_v35 = vadd.f32 %v5217_v16, %v7793_v38  ;;  %v1284_v10 = vadd.f32 %v1252_v39, %v866_v46  ;;  %v1413_v16 = vmul.f32 %v4684_v48, %v4972_v5  ;;  %v736_v38 = vmul.f32 %v704_v44, %v5369_v27  ;;  %v7802_v39 = vld [vmem:[#allocation87_spill] sm:$0xff] }
 0x14a   : > { %v5495_v36 = vsel %vm902_vm15, %v881_v1, %v7794_v60  ;;  %2902 = vperm.xlu0 %3816, %v7797_v49   ;;  %v7799_v60 = vrot.slane %v4930_v14, 7  ;;  %vm1189_vm3 = vcmp.eq.s32.totalorder %v7802_v39, 1  ;;  %v5515_v27 = vmul.f32 0.16666667, %v719_v29  ;;  %v1941_v49 = vpop.permute.xlu2 %1940 }
 0x14b   : > { %7795 = vst [vmem:[#allocation149_spill] sm:$0xff] %v5495_v36  ;;  %v657_v44 = vmax.f32 %v625_v47, 0.0  ;;  %v867_v21 = vmul.f32 %v4655_v4, %v5107_v45  ;;  %v5519_v46 = vadd.f32 %v1413_v16, %v1284_v10  ;;  %v626_v55 = vadd.f32 3.0, %v5484_v35  ;;  %v7807_v16 = vld [vmem:[#allocation52_spill] sm:$0xff] }
 0x14c   : > { %v5512_v17 = vsel %vm902_vm15, %v7800_v6, %v7799_v60  ;;  %7803 = vst [vmem:[#allocation70_spill] sm:$0xff] %v5515_v27  ;;  %v1266_v53 = vadd.f32 %v5331_v54, %v848_v28  ;;  %v5523_v5 = vpop.permute.xlu1 %1910  ;;  %vm1987_vm4 = vcmp.eq.s32.totalorder %v1941_v49, 1  ;;  %v5526_v6 = vadd.f32 %v1797_v3, %v5381_v61  ;;  %v5530_v60 = vpop.permute.xlu0 %1907 }
 0x14d   : > { %7801 = vst [vmem:[#allocation151_spill] sm:$0xff] %v5512_v17  ;;  %v1233_v29 = vmul.f32 %v4659_v20, %v1200_v13  ;;  %v880_v47 = vrot.slane %v5416_v26, 7  ;;  %v5533_v56 = vsel %vm1987_vm4, %v5086_v33, 0.0  ;;  %v1253_v10 = vmul.f32 %v4659_v20, %v1220_v9 }
 0x14e   : > { %7804 = vst [vmem:[#allocation144_spill] sm:$0xff] %v5526_v6  ;;  %vm1174_vm5 = vcmp.eq.s32.totalorder %v7807_v16, 1  ;;  %v7808_v54 = vrot.slane %v5418_v2, 1  ;;  %v7809_v28 = vrot.slane %v5416_v26, 1  ;;  %v688_v13 = vmin.f32 %v656_v59, 6.0  ;;  %v7812_v2 = vld [vmem:[#allocation148_spill] sm:$0xff] }
 0x14f   : > { %7805 = vst [vmem:[#allocation155_spill] sm:$0xff] %v5530_v60  ;;  %v1205_v3 = vsel %vm1173_vm2, %v5495_v36, 0.0  ;;  %v1395_v49 = vmul.f32 %v4684_v48, %v5180_v15  ;;  %v5550_v33 = vmul.f32 0.16666667, %v736_v38  ;;  %v689_v9 = vmin.f32 %v657_v44, 6.0  ;;  %v7814_v44 = vld [vmem:[#allocation9_spill] sm:$0xff] }
 0x150   : > { %7806 = vst [vmem:[#allocation35_spill] sm:$0xff] %v5533_v56  ;;  %v5543_v61 = vsel %vm1481_vm0, %v7809_v28, %v7808_v54  ;;  %v1285_v60 = vadd.f32 %v1253_v10, %v867_v21  ;;  %v1800_v26 = vmul.f32 %v4801_v34, %v7812_v2  ;;  %v658_v6 = vmax.f32 %v626_v55, 0.0  ;;  %2467 = vperm.xlu2 %3823, %v7814_v44   ;;  %v7815_v55 = vld [vmem:[#allocation121_spill] sm:$0xff]  ;;  %v7818_v28 = vld [vmem:[#allocation4_spill] sm:$0xff] }
 0x151   : > { %7810 = vst [vmem:[#allocation31_spill] sm:$0xff] %v5543_v61  ;;  %v5556_v54 = vadd.f32 %v1233_v29, %v5443_v41  ;;  %v5560_v7 = vsel %vm902_vm15, %v880_v47, %v881_v1  ;;  %v5564_v38 = vmul.f32 %v4659_v20, %v1205_v3  ;;  %v899_v21 = vrot.slane %v5107_v45, 7  ;;  %v7819_v3 = vld [vmem:[#allocation34_spill] sm:$0xff] }
 0x152   : > { %7811 = vst [vmem:[#allocation2_spill] sm:$0xff] %v5550_v33  ;;  %v1414_v2 = vmul.f32 %v4684_v48, %v4920_v58  ;;  %vm1190_vm7 = vcmp.eq.s32.totalorder %v7815_v55, 1  ;;  %v720_v41 = vmul.f32 %v688_v13, %v5425_v42  ;;  %v7816_v29 = vrot.slane %v5275_v43, 7  ;;  %2464 = vperm.xlu0 %3816, %v7818_v28   ;;  %2908 = vperm.xlu1 %3822, %v7819_v3   ;;  %v1950_v28 = vpop.permute.xlu2 %1949 }
 0x153   : > { %7813 = vst [vmem:[#allocation87_spill] sm:$0xff] %v5560_v7  ;;  %v1427_v10 = vadd.f32 %v1395_v49, %v1266_v53  ;;  %v7820_v44 = vunpack.i.l.bf16 %v7683_v37  ;;  %v721_v59 = vmul.f32 %v689_v9, %v5439_v57  ;;  %v7823_v42 = vrot.slane %v5550_v33, 1 }
 0x154   : > { %v5576_v1 = vsel %vm902_vm15, %v7816_v29, %v880_v47  ;;  %v7824_v13 = vrot.slane %v5107_v45, 1  ;;  %v7826_v53 = vrot.slane %v5515_v27, 7  ;;  %v7827_v49 = vrot.slane %v5420_v32, 7  ;;  %v5605_v9 = vpop.permute.xlu1 %1919 }
 0x155   : > { %7817 = vst [vmem:[#allocation52_spill] sm:$0xff] %v5576_v1  ;;  %vm5582_vm8 = vcmp.eq.s32.totalorder %v7820_v44, 1  ;;  %v1446_v3 = vadd.f32 %v1414_v2, %v1285_v60  ;;  %v690_v44 = vmin.f32 %v658_v6, 6.0  ;;  %v1799_v57 = vmul.f32 %v4801_v34, %v5113_v12 }
 0x156   : > { %v5593_v47 = vsel %vm1481_vm0, %v7824_v13, %v7823_v42  ;;  %v5601_v29 = vsel %vm902_vm15, %v7827_v49, %v7826_v53  ;;  %7829 = vst [vmem:[#allocation121_spill] sm:$0xff] %v5605_v9  ;;  %vm1990_vm9 = vcmp.eq.s32.totalorder %v1950_v28, 1  ;;  %v1221_v42 = vsel %vm1189_vm3, %v5512_v17, 0.0  ;;  %v5610_v13 = vpop.permute.xlu0 %1916  ;;  %v7834_v49 = vld [vmem:[#allocation153_spill] sm:$0xff]  ;;  %v7835_v28 = vld [vmem:[#allocation32_spill] sm:$0xff] }
 0x157   : > { %7825 = vst [vmem:[#allocation148_spill] sm:$0xff] %v5593_v47  ;;  %v5613_v58 = vsel %vm1990_vm9, %v5098_v23, 0.0  ;;  %v7832_v60 = vrot.slane %v4930_v14, 7  ;;  %v5622_v12 = vadd.f32 %v1800_v26, %v1446_v3  ;;  %v5624_v2 = vmul.f32 0.16666667, %v720_v41  ;;  %v7837_v3 = vld [vmem:[#allocation48_spill] sm:$0xff] }
 0x158   : > { %7828 = vst [vmem:[#allocation9_spill] sm:$0xff] %v5601_v29  ;;  %v1792_v39 = vmul.f32 %v4801_v34, %v7834_v49  ;;  %vm1963_vm10 = vcmp.eq.s32.totalorder %v7835_v28, 1  ;;  %v5630_v23 = vadd.f32 %v5435_v8, %v1427_v10  ;;  %v5632_v15 = vmul.f32 0.16666667, %v721_v59  ;;  %2914 = vperm.xlu2 %3823, %v7688_v22   ;;  %v7840_v10 = vld [vmem:[#allocation152_spill] sm:$0xff] }
 0x159   : > { %7830 = vst [vmem:[#allocation4_spill] sm:$0xff] %v5610_v13  ;;  %v5620_v6 = vsel %vm902_vm15, %v7832_v60, %v899_v21  ;;  %v1206_v53 = vsel %vm1174_vm5, %v5601_v29, 0.0  ;;  %v868_v26 = vmul.f32 %v4655_v4, %v5550_v33  ;;  %v1254_v41 = vmul.f32 %v4659_v20, %v1221_v42  ;;  %v7848_v29 = vld [vmem:[#allocation96_spill] sm:$0xff] }
 0x15a   : > { %7831 = vst [vmem:[#allocation34_spill] sm:$0xff] %v5613_v58  ;;  %v1995_v60 = vsel %vm1963_vm10, %v7837_v3, 0.0  ;;  %v722_v49 = vmul.f32 %v690_v44, %v5484_v35  ;;  %vm1737_vm11 = vcmp.eq.s32.totalorder %v5167_v11, 1  ;;  %v1222_v8 = vsel %vm1190_vm7, %v5620_v6, 0.0  ;;  %v7841_v44 = vld [vmem:[#allocation33_spill] sm:$0xff]  ;;  %v7842_v3 = vld [vmem:[#allocation8_spill] sm:$0xff] }
 0x15b   : > { %7833 = vst [vmem:[#allocation176_spill] sm:$0xff] %v5620_v6  ;;  %v7838_v16 = vrot.slane %v5550_v33, 7  ;;  %v869_v42 = vmul.f32 %v4655_v4, %v7840_v10  ;;  %v1286_v28 = vadd.f32 %v1254_v41, %v868_v26  ;;  %v5656_v35 = vadd.f32 %v1799_v57, %v5519_v46  ;;  %2911 = vperm.xlu0 %3816, %v7841_v44   ;;  %v1959_v26 = vpop.permute.xlu2 %1958 }
 0x15c   : > { %7836 = vst [vmem:[#allocation153_spill] sm:$0xff] %v5632_v15  ;;  %v852_v11 = vmul.f32 %v4655_v4, %v5624_v2  ;;  %v884_v55 = vrot.slane %v5624_v2, 7  ;;  %v1239_v22 = vmul.f32 %v4659_v20, %v1206_v53  ;;  %2470 = vperm.xlu1 %3822, %v7842_v3   ;;  %v1769_v46 = vsel %vm1737_vm11, %v5593_v47, 0.0  ;;  %v1929_v58 = vpop.permute.xlu1 %1928  ;;  %v7886_v47 = vld [vmem:[#allocation139_spill] sm:$0xff] }
 0x15d   : > { %v5651_v59 = vsel %vm902_vm15, %v899_v21, %v7838_v16  ;;  %v1415_v21 = vmul.f32 %v4684_v48, %v4930_v14  ;;  %v5667_v16 = vmul.f32 %v5249_v18, %v1995_v60  ;;  %v885_v57 = vrot.slane %v5632_v15, 7  ;;  %v7843_v60 = vld [vmem:[#allocation119_spill] sm:$0xff] }
 0x15e   : > { %7839 = vst [vmem:[#allocation32_spill] sm:$0xff] %v5651_v59  ;;  %v1255_v41 = vmul.f32 %v4659_v20, %v1222_v8  ;;  %v853_v53 = vmul.f32 %v4655_v4, %v5632_v15  ;;  %v1191_v3 = vsel %vm5582_vm8, %v5651_v59, 0.0  ;;  %vm1993_vm12 = vcmp.eq.s32.totalorder %v1959_v26, 1  ;;  %v1926_v8 = vpop.permute.xlu0 %1925 }
 0x15f   : > { %v5677_v44 = vadd.f32 %v1415_v21, %v1286_v28  ;;  %v7844_v14 = vunpack.i.l.bf16 %v7843_v60  ;;  %v5685_v13 = vmul.f32 0.16666667, %v722_v49  ;;  %vm1983_vm14 = vcmp.eq.s32.totalorder %v1929_v58, 1  ;;  %v7849_v28 = vld [vmem:[#allocation69_spill] sm:$0xff]  ;;  %v7851_v49 = vld [vmem:[#allocation158_spill] sm:$0xff] }
 0x160   : > { %v5688_v9 = vsel %vm1993_vm12, %v5651_v59, 0.0  ;;  %v1287_v15 = vadd.f32 %v1255_v41, %v869_v42  ;;  %v1802_v56 = vmul.f32 %v4801_v34, %v1769_v46  ;;  %v2015_v26 = vsel %vm1983_vm14, %v7848_v29, 0.0  ;;  %v7853_v41 = vld [vmem:[#allocation156_spill] sm:$0xff]  ;;  %v7854_v59 = vld [vmem:[#allocation53_spill] sm:$0xff] }
 0x161   : > { %vm5681_vm13 = vcmp.eq.s32.totalorder %v7844_v14, 1  ;;  %7847 = vst [vmem:[#allocation33_spill] sm:$0xff] %v5688_v9  ;;  %vm1982_vm1 = vcmp.eq.s32.totalorder %v1926_v8, 1  ;;  %v838_v21 = vmul.f32 %v4655_v4, %v7849_v28  ;;  %v7850_v14 = vld [vmem:[#allocation91_spill] sm:$0xff]  ;;  %v2048_v36 = vmul.f32 %v5249_v18, %v2015_v26  ;;  %v7856_v9 = vld [vmem:[#allocation64_spill] sm:$0xff]  ;;  %v7858_v26 = vld [vmem:[#allocation57_spill] sm:$0xff] }
 0x162   : > { %vm1178_vm2 = vcmp.eq.s32.totalorder %v7850_v14, 1  ;;  %v5697_v43 = vsel %vm1982_vm1, %v7851_v49, 0.0  ;;  %v1224_v58 = vmul.f32 %v4659_v20, %v1191_v3  ;;  %v1416_v42 = vmul.f32 %v4684_v48, %v5107_v45  ;;  %v7859_v49 = vld [vmem:[#allocation58_spill] sm:$0xff]  ;;  %v7889_v14 = vld [vmem:[#allocation77_spill] sm:$0xff] }
 0x163   : > { %7852 = vst [vmem:[#allocation8_spill] sm:$0xff] %v5697_v43  ;;  %v1795_v46 = vmul.f32 %v4801_v34, %v7853_v41  ;;  %v2031_v8 = vmul.f32 %v5249_v18, %v7854_v59  ;;  %v5707_v29 = vadd.f32 %v5564_v38, %v852_v11  ;;  %v5710_v7 = vadd.f32 %v1792_v39, %v7856_v9  ;;  %v7863_v59 = vld [vmem:[#allocation12_spill] sm:$0xff]  ;;  %v7864_v11 = vld [vmem:[#allocation167_spill] sm:$0xff] }
 0x164   : > { %vm1177_vm3 = vcmp.eq.s32.totalorder %v7858_v26, 1  ;;  %vm1972_vm4 = vcmp.eq.s32.totalorder %v7859_v49, 1  ;;  %v7860_v3 = vrot.slane %v5515_v27, 7  ;;  %v5721_v41 = vadd.f32 %v2048_v36, %v5413_v62  ;;  %2476 = vperm.xlu2 %3823, %v7863_v59   ;;  %v7866_v43 = vld [vmem:[#allocation7_spill] sm:$0xff]  ;;  %v5735_v36 = vpop.permute.xlu2 %2128 }
 0x165   : > { %7855 = vst [vmem:[#allocation119_spill] sm:$0xff] %v5707_v29  ;;  %v1448_v38 = vadd.f32 %v1416_v42, %v1287_v15  ;;  %vm1964_vm5 = vcmp.eq.s32.totalorder %v7864_v11, 1  ;;  %v5727_v9 = vsel %vm902_vm15, %v884_v55, %v885_v57  ;;  %v886_v39 = vrot.slane %v5685_v13, 7  ;;  %2473 = vperm.xlu0 %3816, %v7866_v43  }
 0x166   : > { %7857 = vst [vmem:[#allocation69_spill] sm:$0xff] %v5710_v7  ;;  %v5718_v45 = vsel %vm902_vm15, %v7860_v3, %v884_v55  ;;  %v7867_v7 = vld [vmem:[#allocation37_spill] sm:$0xff]  ;;  %v7457_v3 = vrot.slane %v7840_v10, 1  ;;  %v5733_v29 = vadd.f32 %v1239_v22, %v853_v53  ;;  %v1256_v62 = vadd.f32 %v1224_v58, %v838_v21  ;;  %v7871_v55 = vld [vmem:[#allocation62_spill] sm:$0xff]  ;;  %v1938_v22 = vpop.permute.xlu1 %1937  ;;  %v7875_v21 = vld [vmem:[#allocation80_spill] sm:$0xff] }
 0x167   : > { %7861 = vst [vmem:[#allocation91_spill] sm:$0xff] %v5718_v45  ;;  %2917 = vperm.xlu1 %3822, %v7867_v7   ;;  %v5737_v15 = vadd.f32 %v1802_v56, %v1448_v38  ;;  %v5740_v42 = vmul.f32 0.0, %v4684_v48  ;;  %v1798_v59 = vmul.f32 %v4801_v34, %v7871_v55  ;;  %v2004_v7 = vsel %vm1972_vm4, %v5463_v63, 0.0  ;;  %v7876_v38 = vld [vmem:[#allocation163_spill] sm:$0xff]  ;;  %v1935_v55 = vpop.permute.xlu0 %1934  ;;  %v7879_v63 = vld [vmem:[#allocation109_spill] sm:$0xff] }
 0x168   : > { %7862 = vst [vmem:[#allocation156_spill] sm:$0xff] %v5721_v41  ;;  %v7872_v41 = vld [vmem:[#allocation157_spill] sm:$0xff]  ;;  %v7873_v53 = vrot.slane %v5550_v33, 1  ;;  %v5760_v58 = vsel %vm1964_vm5, %v7875_v21, 0.0  ;;  %vm1986_vm7 = vcmp.eq.s32.totalorder %v1938_v22, 1  ;;  %v5778_v11 = vsel %vm902_vm15, %v885_v57, %v886_v39 }
 0x169   : > { %7865 = vst [vmem:[#allocation53_spill] sm:$0xff] %v5727_v9  ;;  %v2034_v43 = vmul.f32 %v5249_v18, %v7872_v41  ;;  %v7877_v41 = vrot.slane %v7876_v38, 7  ;;  %vm1985_vm9 = vcmp.eq.s32.totalorder %v1935_v55, 1  ;;  %v7885_v55 = vld [vmem:[#allocation165_spill] sm:$0xff]  ;;  %vm1973_vm10 = vcmp.eq.s32.totalorder %v5466_v24, 1 }
 0x16a   : > { %7868 = vst [vmem:[#allocation64_spill] sm:$0xff] %v5733_v29  ;;  %v5755_v56 = vsel %vm1481_vm0, %v7873_v53, %v7457_v3  ;;  %v7880_v29 = vunpack.i.h.bf16 %v7683_v37  ;;  %v7883_v3 = vld [vmem:[#allocation117_spill] sm:$0xff]  ;;  %v1417_v37 = vadd.f32 %v5740_v42, %v1256_v62  ;;  %v5795_v61 = vadd.f32 %v1795_v46, %v7885_v55  ;;  %v7894_v55 = vld [vmem:[#allocation11_spill] sm:$0xff] }
 0x16b   : > { %7869 = vst [vmem:[#allocation57_spill] sm:$0xff] %v5735_v36  ;;  %v5766_v49 = vsel %vm902_vm15, %v886_v39, %v7877_v41  ;;  %v7878_v36 = vld [vmem:[#allocation68_spill] sm:$0xff]  ;;  %v2018_v21 = vsel %vm1986_vm7, %v7883_v3, 0.0  ;;  %v1738_v22 = vsel %vm5681_vm13, %v5755_v56, 0.0  ;;  %v1394_v62 = vmul.f32 %v4684_v48, %v4895_v31 }
 0x16c   : > { %7870 = vst [vmem:[#allocation58_spill] sm:$0xff] %v5737_v15  ;;  %v1806_v15 = vadd.f32 %v7879_v63, %v7878_v36  ;;  %vm5772_vm8 = vcmp.eq.s32.totalorder %v7880_v29, 1  ;;  %v2051_v41 = vmul.f32 %v5249_v18, %v2018_v21  ;;  %v7884_v63 = vld [vmem:[#allocation159_spill] sm:$0xff]  ;;  %v1771_v29 = vmul.f32 %v4801_v34, %v1738_v22 }
 0x16d   : > { %7874 = vst [vmem:[#allocation12_spill] sm:$0xff] %v5755_v56  ;;  %v2017_v36 = vsel %vm1985_vm9, %v7884_v63, 0.0  ;;  %v1210_v57 = vsel %vm1178_vm2, %v5766_v49, 0.0  ;;  %v7888_v56 = vld [vmem:[#allocation41_spill] sm:$0xff]  ;;  %vm1978_vm11 = vcmp.eq.s32.totalorder %v7889_v14, 1  ;;  %v7890_v63 = vld [vmem:[#allocation90_spill] sm:$0xff]  ;;  %v2037_v53 = vmul.f32 %v5249_v18, %v2004_v7 }
 0x16e   : > { %v2050_v39 = vmul.f32 %v5249_v18, %v2017_v36  ;;  %v5792_v3 = vadd.f32 %v2031_v8, %v1806_v15  ;;  %v5799_v21 = vadd.f32 %v2051_v41, %v7886_v47  ;;  %2923 = vperm.xlu2 %3823, %v7888_v56   ;;  %v1803_v22 = vadd.f32 %v1771_v29, %v1417_v37  ;;  %v7891_v15 = vld [vmem:[#allocation154_spill] sm:$0xff]  ;;  %v7893_v41 = vld [vmem:[#allocation36_spill] sm:$0xff]  ;;  %v2138_v29 = vpop.permute.xlu2 %2137 }
 0x16f   : > { %v857_v8 = vmul.f32 %v4655_v4, %v7890_v63  ;;  %v1209_v46 = vsel %vm1177_vm3, %v5778_v11, 0.0  ;;  %2920 = vperm.xlu0 %3816, %v7893_v41   ;;  %2479 = vperm.xlu1 %3822, %v7894_v55   ;;  %vm1971_vm12 = vcmp.eq.s32.totalorder %v5386_v52, 1  ;;  %v1243_v56 = vmul.f32 %v4659_v20, %v1210_v57  ;;  %v1947_v57 = vpop.permute.xlu1 %1946  ;;  %v7908_v7 = vld [vmem:[#allocation46_spill] sm:$0xff] }
 0x170   : > { %7887 = vst [vmem:[#allocation167_spill] sm:$0xff] %v5799_v21  ;;  %v5811_v36 = vadd.f32 %v2050_v39, %v7891_v15  ;;  %v856_v37 = vmul.f32 %v4655_v4, %v4698_v51  ;;  %v5820_v47 = vadd.f32 %v5667_v16, %v1803_v22  ;;  %v2005_v26 = vsel %vm1973_vm10, %v5576_v1, 0.0  ;;  %v5828_v39 = vld [vmem:[%s7184_s4] sm:$0xff]  ;;  %v1944_v22 = vpop.permute.xlu0 %1943  ;;  %v7899_v21 = vld [vmem:[#allocation111_spill] sm:$0xff] }
 0x171   : > { %v5831_v15 = vperm.slane %v5828_v39, 5  ;;  %vm2224_vm13 = vcmp.eq.s32.totalorder %v2138_v29, 1  ;;  %v7896_v41 = vrot.slane %v7840_v10, 7  ;;  %v7897_v55 = vrot.slane %v5550_v33, 7 }
 0x172   : > { %7892 = vst [vmem:[#allocation7_spill] sm:$0xff] %v5811_v36  ;;  %v1242_v24 = vmul.f32 %v4659_v20, %v1209_v46  ;;  %vm1989_vm14 = vcmp.eq.s32.totalorder %v1947_v57, 1  ;;  %v2256_v36 = vsel %vm2224_vm13, %v7899_v21, 0.0  ;;  %v1426_v63 = vadd.f32 %v1394_v62, %v5556_v54 }
 0x173   : > { %7895 = vst [vmem:[#allocation37_spill] sm:$0xff] %v5820_v47  ;;  %v5839_v16 = vsel %vm902_vm15, %v7897_v55, %v7896_v41  ;;  %v7900_v47 = vld [vmem:[#allocation168_spill] sm:$0xff]  ;;  %v2021_v31 = vsel %vm1989_vm14, %v5354_v25, 0.0  ;;  %vm1988_vm1 = vcmp.eq.s32.totalorder %v1944_v22, 1  ;;  %v2289_v33 = vmul.f32 %v5831_v15, %v2256_v36 }
 0x174   : > { %7898 = vst [vmem:[#allocation62_spill] sm:$0xff] %v5839_v16  ;;  %v2003_v29 = vsel %vm1971_vm12, %v7900_v47, 0.0  ;;  %v2038_v41 = vmul.f32 %v5249_v18, %v2005_v26  ;;  %v2054_v55 = vmul.f32 %v5249_v18, %v2021_v31  ;;  %v2020_v46 = vsel %vm1988_vm1, %v5285_v40, 0.0  ;;  %v7916_v40 = vld [vmem:[#allocation123_spill] sm:$0xff] }
 0x175   : > { %v1192_v57 = vsel %vm5772_vm8, %v5839_v16, 0.0  ;;  %v2053_v54 = vmul.f32 %v5249_v18, %v2020_v46  ;;  %v5857_v52 = vadd.f32 %v2289_v33, %v5373_v50  ;;  %v5860_v62 = vadd.f32 %v2034_v43, %v5344_v0  ;;  %v7904_v33 = vld [vmem:[#allocation144_spill] sm:$0xff]  ;;  %v7906_v0 = vld [vmem:[#allocation15_spill] sm:$0xff]  ;;  %v7907_v43 = vld [vmem:[#allocation162_spill] sm:$0xff] }
 0x176   : > { %v5863_v36 = vadd.f32 %v1798_v59, %v5453_v30  ;;  %v7901_v26 = vunpack.i.h.bf16 %v7843_v60  ;;  %v2036_v22 = vmul.f32 %v5249_v18, %v2003_v29  ;;  %vm1977_vm2 = vcmp.eq.s32.totalorder %v5523_v5, 1  ;;  %2485 = vperm.xlu2 %3823, %v7906_v0   ;;  %v7910_v46 = vld [vmem:[#allocation10_spill] sm:$0xff] }
 0x177   : > { %v5875_v50 = vadd.f32 %v2054_v55, %v7904_v33  ;;  %v1801_v30 = vmul.f32 %v4801_v34, %v7907_v43  ;;  %v5882_v60 = vmul.f32 %v5249_v18, %v5760_v58  ;;  %v5887_v59 = vsel %vm1978_vm11, %v5727_v9, 0.0  ;;  %2482 = vperm.xlu0 %3816, %v7910_v46   ;;  %v7911_v55 = vld [vmem:[#allocation40_spill] sm:$0xff]  ;;  %v2147_v43 = vpop.permute.xlu2 %2146  ;;  %v1956_v46 = vpop.permute.xlu1 %1955 }
 0x178   : > { %vm5867_vm15 = vcmp.eq.s32.totalorder %v7901_v26, 1  ;;  %v5890_v29 = vadd.f32 %v2053_v54, %v7908_v7  ;;  %2926 = vperm.xlu1 %3822, %v7911_v55   ;;  %v7912_v26 = vld [vmem:[#allocation86_spill] sm:$0xff]  ;;  %v7913_v33 = vld [vmem:[#allocation76_spill] sm:$0xff]  ;;  %v5896_v0 = vadd.f32 %v1243_v56, %v857_v8  ;;  %v1274_v58 = vadd.f32 %v1242_v24, %v856_v37  ;;  %v1953_v8 = vpop.permute.xlu0 %1952  ;;  %v7918_v24 = vld [vmem:[#allocation93_spill] sm:$0xff] }
 0x179   : > { %7905 = vst [vmem:[#allocation157_spill] sm:$0xff] %v5875_v50  ;;  %vm1725_vm3 = vcmp.eq.s32.totalorder %v7912_v26, 1  ;;  %vm1724_vm4 = vcmp.eq.s32.totalorder %v7913_v33, 1  ;;  %v7914_v50 = vld [vmem:[#allocation75_spill] sm:$0xff]  ;;  %v1225_v25 = vmul.f32 %v4659_v20, %v1192_v57  ;;  %v2070_v54 = vadd.f32 %v2038_v41, %v5630_v23  ;;  %v7915_v55 = vld [vmem:[#allocation42_spill] sm:$0xff]  ;;  %v7917_v56 = vld [vmem:[#allocation172_spill] sm:$0xff] }
 0x17a   : > { %7909 = vst [vmem:[#allocation68_spill] sm:$0xff] %v5890_v29  ;;  %v839_v14 = vmul.f32 %v4655_v4, %v7914_v50  ;;  %v2009_v7 = vsel %vm1977_vm2, %v5718_v45, 0.0  ;;  %vm2227_vm5 = vcmp.eq.s32.totalorder %v2147_v43, 1  ;;  %v1812_v29 = vadd.f32 %v7915_v55, %v1426_v63 }
 0x17b   : > { %vm1720_vm7 = vcmp.eq.s32.totalorder %v7916_v40, 1  ;;  %vm1992_vm8 = vcmp.eq.s32.totalorder %v1956_v46, 1  ;;  %v2259_v37 = vsel %vm2227_vm5, %v7917_v56, 0.0  ;;  %v5909_v50 = vadd.f32 %v2036_v22, %v7918_v24  ;;  %v7922_v24 = vld [vmem:[#allocation145_spill] sm:$0xff] }
 0x17c   : > { %v2024_v23 = vsel %vm1992_vm8, %v5620_v6, 0.0  ;;  %vm1991_vm9 = vcmp.eq.s32.totalorder %v1953_v8, 1  ;;  %v2292_v5 = vmul.f32 %v5831_v15, %v2259_v37  ;;  %v1462_v41 = vrot.slane %v5515_v27, 1  ;;  %v7923_v37 = vld [vmem:[#allocation130_spill] sm:$0xff] }
 0x17d   : > { %v2057_v63 = vmul.f32 %v5249_v18, %v2024_v23  ;;  %v2023_v43 = vsel %vm1991_vm9, %v5512_v17, 0.0  ;;  %v1257_v46 = vadd.f32 %v1225_v25, %v839_v14  ;;  %v7919_v55 = vrot.slane %v7849_v28, 1  ;;  %v7925_v28 = vld [vmem:[#allocation45_spill] sm:$0xff] }
 0x17e   : > { %v7920_v56 = vrot.slane %v7840_v10, 1  ;;  %vm1721_vm10 = vcmp.eq.s32.totalorder %v7922_v24, 1  ;;  %v2056_v8 = vmul.f32 %v5249_v18, %v2023_v43  ;;  %v5928_v57 = vadd.f32 %v2292_v5, %v7923_v37  ;;  %2932 = vperm.xlu2 %3823, %v7925_v28   ;;  %v7926_v43 = vld [vmem:[#allocation63_spill] sm:$0xff]  ;;  %v7929_v5 = vld [vmem:[#allocation14_spill] sm:$0xff] }
 0x17f   : > { %v5930_v6 = vadd.f32 %v2037_v53, %v1812_v29  ;;  %v7466_v23 = vrot.slane %v5685_v13, 1  ;;  %v5934_v25 = vadd.f32 %v2057_v63, %v5622_v12  ;;  %v1466_v14 = vrot.slane %v7876_v38, 1  ;;  %v7928_v29 = vld [vmem:[#allocation39_spill] sm:$0xff]  ;;  %v5974_v31 = vpop.permute.xlu1 %2125 }
 0x180   : > { %v5923_v22 = vsel %vm1481_vm0, %v7920_v56, %v7919_v55  ;;  %v1403_v56 = vmul.f32 %v4684_v48, %v5685_v13  ;;  %v5941_v55 = vadd.f32 %v1801_v30, %v5677_v44  ;;  %vm1170_vm11 = vcmp.eq.s32.totalorder %v7926_v43, 1  ;;  %2929 = vperm.xlu0 %3816, %v7928_v29   ;;  %2488 = vperm.xlu1 %3822, %v7929_v5   ;;  %v2156_v30 = vpop.permute.xlu2 %2155  ;;  %v7935_v10 = vld [vmem:[#allocation47_spill] sm:$0xff] }
 0x181   : > { %7921 = vst [vmem:[#allocation109_spill] sm:$0xff] %v5923_v22  ;;  %v5945_v53 = vadd.f32 %v2056_v8, %v5656_v35  ;;  %v7930_v63 = vrot.slane %v5420_v32, 1  ;;  %v1739_v44 = vsel %vm5867_vm15, %v5923_v22, 0.0  ;;  %v1399_v35 = vmul.f32 %v4684_v48, %v5420_v32 }
 0x182   : > { %7924 = vst [vmem:[#allocation165_spill] sm:$0xff] %v5934_v25  ;;  %v5965_v8 = vsel %vm1481_vm0, %v7466_v23, %v1466_v14  ;;  %v7932_v28 = vrot.slane %v4698_v51, 1  ;;  %v1418_v5 = vadd.f32 %v5740_v42, %v1257_v46  ;;  %vm2230_vm12 = vcmp.eq.s32.totalorder %v2156_v30, 1  ;;  %v7939_v51 = vld [vmem:[#allocation119_spill] sm:$0xff] }
 0x183   : > { %7927 = vst [vmem:[#allocation139_spill] sm:$0xff] %v5945_v53  ;;  %v5954_v37 = vsel %vm1481_vm0, %v7930_v63, %v1462_v41  ;;  %v1400_v63 = vmul.f32 %v4684_v48, %v5515_v27  ;;  %v1756_v12 = vsel %vm1724_vm4, %v5965_v8, 0.0  ;;  %vm1171_vm13 = vcmp.eq.s32.totalorder %v7935_v10, 1 }
 0x184   : > { %7931 = vst [vmem:[#allocation41_spill] sm:$0xff] %v5965_v8  ;;  %v5971_v29 = vsel %vm1481_vm0, %v1466_v14, %v7932_v28  ;;  %v1962_v14 = vpop.permute.xlu0 %1961  ;;  %v7936_v28 = vld [vmem:[#allocation31_spill] sm:$0xff]  ;;  %v1789_v42 = vmul.f32 %v4801_v34, %v1756_v12  ;;  %v1435_v46 = vadd.f32 %v1403_v56, %v1274_v58  ;;  %v1772_v30 = vmul.f32 %v4801_v34, %v1739_v44 }
 0x185   : > { %7933 = vst [vmem:[#allocation77_spill] sm:$0xff] %v5971_v29  ;;  %v1757_v23 = vsel %vm1725_vm3, %v5971_v29, 0.0  ;;  %v2262_v22 = vsel %vm2230_vm12, %v7936_v28, 0.0  ;;  %vm1994_vm14 = vcmp.eq.s32.totalorder %v1962_v14, 1  ;;  %v7937_v33 = vrot.slane %v5624_v2, 1 }
 0x186   : > { %7934 = vst [vmem:[#allocation154_spill] sm:$0xff] %v5974_v31  ;;  %v2295_v25 = vmul.f32 %v5831_v15, %v2262_v22  ;;  %v1752_v26 = vsel %vm1720_vm7, %v5954_v37, 0.0  ;;  %v2026_v17 = vsel %vm1994_vm14, %v5839_v16, 0.0  ;;  %v1431_v12 = vadd.f32 %v1399_v35, %v7939_v51  ;;  %v7942_v35 = vld [vmem:[#allocation64_spill] sm:$0xff]  ;;  %v7961_v31 = vld [vmem:[#allocation18_spill] sm:$0xff] }
 0x187   : > { %v5993_v53 = vsel %vm1481_vm0, %v1462_v41, %v7937_v33  ;;  %v6000_v58 = vadd.f32 %v1789_v42, %v1435_v46  ;;  %v1804_v56 = vadd.f32 %v1772_v30, %v1418_v5  ;;  %v2042_v44 = vmul.f32 %v5249_v18, %v2009_v7  ;;  %v7941_v33 = vld [vmem:[#allocation44_spill] sm:$0xff]  ;;  %v7944_v7 = vld [vmem:[#allocation71_spill] sm:$0xff]  ;;  %v7948_v46 = vld [vmem:[#allocation13_spill] sm:$0xff] }
 0x188   : > { %7938 = vst [vmem:[#allocation36_spill] sm:$0xff] %v5993_v53  ;;  %v2059_v22 = vmul.f32 %v5249_v18, %v2026_v17  ;;  %v6004_v14 = vadd.f32 %v2295_v25, %v2070_v54  ;;  %v1404_v41 = vmul.f32 %v4684_v48, %v7876_v38  ;;  %2935 = vperm.xlu2 %3823, %v7941_v33   ;;  %v1753_v40 = vsel %vm1721_vm10, %v5993_v53, 0.0  ;;  %v7945_v17 = vld [vmem:[#allocation58_spill] sm:$0xff]  ;;  %v7973_v53 = vld [vmem:[#allocation120_spill] sm:$0xff] }
 0x189   : > { %v1785_v51 = vmul.f32 %v4801_v34, %v1752_v26  ;;  %v1432_v42 = vadd.f32 %v1400_v63, %v7942_v35  ;;  %v6015_v5 = vadd.f32 %v5882_v60, %v1804_v56  ;;  %vm1172_vm1 = vcmp.eq.s32.totalorder %v7944_v7, 1  ;;  %v7947_v25 = vld [vmem:[#allocation50_spill] sm:$0xff]  ;;  %2491 = vperm.xlu1 %3822, %v7948_v46   ;;  %v7950_v26 = vld [vmem:[#allocation137_spill] sm:$0xff]  ;;  %v6030_v56 = vpop.permute.xlu2 %2164  ;;  %v7955_v7 = vld [vmem:[#allocation99_spill] sm:$0xff] }
 0x18a   : > { %7940 = vst [vmem:[#allocation11_spill] sm:$0xff] %v6004_v14  ;;  %v6019_v54 = vadd.f32 %v2059_v22, %v7945_v17  ;;  %2173 = vperm.xlu0 %3816, %v7947_v25   ;;  %v1790_v30 = vmul.f32 %v4801_v34, %v1757_v23  ;;  %v1436_v24 = vadd.f32 %v1404_v41, %v5896_v0  ;;  %v7949_v33 = vld [vmem:[#allocation78_spill] sm:$0xff]  ;;  %vm1718_vm2 = vcmp.eq.s32.totalorder %v7950_v26, 1  ;;  %v7951_v63 = vld [vmem:[#allocation5_spill] sm:$0xff]  ;;  %v2135_v23 = vpop.permute.xlu1 %2134  ;;  %v7972_v14 = vld [vmem:[#allocation171_spill] sm:$0xff] }
 0x18b   : > { %7943 = vst [vmem:[#allocation144_spill] sm:$0xff] %v6015_v5  ;;  %vm1176_vm15 = vcmp.eq.s32.totalorder %v7949_v33, 1  ;;  %v1202_v60 = vsel %vm1170_vm11, %v7951_v63, 0.0  ;;  %v1817_v22 = vadd.f32 %v1785_v51, %v1431_v12  ;;  %v7952_v35 = vld [vmem:[#allocation129_spill] sm:$0xff]  ;;  %v2043_v46 = vmul.f32 %v5249_v18, %v5887_v59  ;;  %v7954_v59 = vld [vmem:[#allocation104_spill] sm:$0xff] }
 0x18c   : > { %7946 = vst [vmem:[#allocation15_spill] sm:$0xff] %v6019_v54  ;;  %v849_v17 = vmul.f32 %v4655_v4, %v7952_v35  ;;  %v1786_v0 = vmul.f32 %v4801_v34, %v1753_v40  ;;  %v6037_v41 = vadd.f32 %v1790_v30, %v1436_v24  ;;  %v1750_v26 = vsel %vm1718_vm2, %v7936_v28, 0.0  ;;  %v7953_v54 = vld [vmem:[#allocation87_spill] sm:$0xff]  ;;  %v2132_v16 = vpop.permute.xlu0 %2131  ;;  %v7957_v28 = vld [vmem:[#allocation118_spill] sm:$0xff] }
 0x18d   : > { %v1204_v43 = vsel %vm1172_vm1, %v7953_v54, 0.0  ;;  %vm2223_vm3 = vcmp.eq.s32.totalorder %v2135_v23, 1  ;;  %v6043_v12 = vadd.f32 %v2042_v44, %v1817_v22  ;;  %v1203_v51 = vsel %vm1171_vm13, %v5576_v1, 0.0  ;;  %v7956_v44 = vld [vmem:[#allocation81_spill] sm:$0xff]  ;;  %v7958_v1 = vld [vmem:[#allocation43_spill] sm:$0xff] }
 0x18e   : > { %vm2222_vm4 = vcmp.eq.s32.totalorder %v2132_v16, 1  ;;  %v2255_v8 = vsel %vm2223_vm3, %v7954_v59, 0.0  ;;  %v1818_v40 = vadd.f32 %v1786_v0, %v1432_v42  ;;  %v851_v30 = vmul.f32 %v4655_v4, %v5515_v27 }
 0x18f   : > { %v850_v24 = vmul.f32 %v4655_v4, %v5420_v32  ;;  %v2254_v29 = vsel %vm2222_vm4, %v7955_v7, 0.0  ;;  %v2288_v23 = vmul.f32 %v5831_v15, %v2255_v8  ;;  %vm1175_vm5 = vcmp.eq.s32.totalorder %v7956_v44, 1 }
 0x190   : > { %v1235_v22 = vmul.f32 %v4659_v20, %v1202_v60  ;;  %v2287_v10 = vmul.f32 %v5831_v15, %v2254_v29  ;;  %v6058_v16 = vadd.f32 %v2043_v46, %v1818_v40  ;;  %vm1717_vm7 = vcmp.eq.s32.totalorder %v7957_v28, 1  ;;  %2938 = vperm.xlu2 %3823, %v7958_v1   ;;  %v7959_v29 = vld [vmem:[#allocation170_spill] sm:$0xff]  ;;  %v7960_v40 = vld [vmem:[#allocation49_spill] sm:$0xff] }
 0x191   : > { %v1237_v42 = vmul.f32 %v4659_v20, %v1204_v43  ;;  %v1236_v0 = vmul.f32 %v4659_v20, %v1203_v51  ;;  %v6064_v27 = vadd.f32 %v2288_v23, %v5792_v3  ;;  %v6068_v8 = vmul.f32 %v4801_v34, %v1750_v26  ;;  %2494 = vperm.xlu1 %3822, %v7961_v31   ;;  %v7962_v43 = vld [vmem:[#allocation164_spill] sm:$0xff]  ;;  %v2447_v26 = vpop.permute.xlu2 %2446  ;;  %v7963_v23 = vld [vmem:[#allocation6_spill] sm:$0xff]  ;;  %v7966_v31 = vld [vmem:[#allocation169_spill] sm:$0xff] }
 0x192   : > { %v1267_v44 = vadd.f32 %v1235_v22, %v849_v17  ;;  %v1207_v60 = vsel %vm1175_vm5, %v5718_v45, 0.0  ;;  %v6072_v46 = vadd.f32 %v2287_v10, %v7959_v29  ;;  %2176 = vperm.xlu0 %3816, %v7960_v40   ;;  %vm1975_vm8 = vcmp.eq.s32.totalorder %v7962_v43, 1  ;;  %v2144_v10 = vpop.permute.xlu1 %2143  ;;  %v7964_v29 = vld [vmem:[#allocation112_spill] sm:$0xff] }
 0x193   : > { %v1208_v3 = vsel %vm1176_vm15, %v5727_v9, 0.0  ;;  %v1269_v1 = vadd.f32 %v1237_v42, %v851_v30  ;;  %v1268_v51 = vadd.f32 %v1236_v0, %v850_v24  ;;  %v2046_v17 = vmul.f32 %v5249_v18, %v7963_v23  ;;  %v7969_v42 = vld [vmem:[#allocation89_spill] sm:$0xff] }
 0x194   : > { %v854_v22 = vmul.f32 %v4655_v4, %v5685_v13  ;;  %vm2541_vm9 = vcmp.eq.s32.totalorder %v2447_v26, 1  ;;  %v7965_v45 = vrot.slane %v7964_v29, 1  ;;  %v7967_v47 = vrot.slane %v7966_v31, 1  ;;  %v2141_v24 = vpop.permute.xlu0 %2140  ;;  %v7971_v23 = vld [vmem:[#allocation149_spill] sm:$0xff] }
 0x195   : > { %v855_v33 = vmul.f32 %v4655_v4, %v7876_v38  ;;  %v1240_v30 = vmul.f32 %v4659_v20, %v1207_v60  ;;  %vm2226_vm10 = vcmp.eq.s32.totalorder %v2144_v10, 1  ;;  %v6096_v0 = vsel %vm2541_vm9, %v7969_v42, 0.0  ;;  %v7974_v10 = vld [vmem:[#allocation110_spill] sm:$0xff]  ;;  %v7976_v38 = vld [vmem:[#allocation155_spill] sm:$0xff] }
 0x196   : > { %v6090_v43 = vsel %vm1481_vm0, %v7967_v47, %v7965_v45  ;;  %7970 = vst [vmem:[#allocation46_spill] sm:$0xff] %v6096_v0  ;;  %v2007_v26 = vsel %vm1975_vm8, %v7971_v23, 0.0  ;;  %v1241_v9 = vmul.f32 %v4659_v20, %v1208_v3  ;;  %vm2225_vm11 = vcmp.eq.s32.totalorder %v2141_v24, 1  ;;  %v7978_v0 = vld [vmem:[#allocation51_spill] sm:$0xff] }
 0x197   : > { %7968 = vst [vmem:[#allocation162_spill] sm:$0xff] %v6090_v43  ;;  %v2258_v21 = vsel %vm2226_vm10, %v7972_v14, 0.0  ;;  %v2257_v45 = vsel %vm2225_vm11, %v7973_v53, 0.0  ;;  %v1749_v4 = vsel %vm1717_vm7, %v6090_v43, 0.0  ;;  %v1396_v60 = vmul.f32 %v4684_v48, %v7966_v31  ;;  %v7992_v14 = vld [vmem:[#allocation121_spill] sm:$0xff]  ;;  %v7994_v23 = vld [vmem:[#allocation127_spill] sm:$0xff] }
 0x198   : > { %v2291_v47 = vmul.f32 %v5831_v15, %v2258_v21  ;;  %vm1974_vm12 = vcmp.eq.s32.totalorder %v7974_v10, 1  ;;  %v6109_v42 = vadd.f32 %v1240_v30, %v854_v22  ;;  %v2290_v20 = vmul.f32 %v5831_v15, %v2257_v45  ;;  %2941 = vperm.xlu2 %3823, %v7978_v0   ;;  %v7979_v10 = vld [vmem:[#allocation135_spill] sm:$0xff]  ;;  %v7980_v22 = vld [vmem:[#allocation174_spill] sm:$0xff]  ;;  %v7982_v45 = vld [vmem:[#allocation56_spill] sm:$0xff] }
 0x199   : > { %v6113_v3 = vadd.f32 %v2046_v17, %v6000_v58  ;;  %v6116_v24 = vmul.f32 %v5249_v18, %v2007_v26  ;;  %v6118_v21 = vadd.f32 %v1241_v9, %v855_v33  ;;  %vm1976_vm13 = vcmp.eq.s32.totalorder %v7976_v38, 1  ;;  %v7983_v58 = vld [vmem:[#allocation17_spill] sm:$0xff]  ;;  %v7986_v0 = vld [vmem:[#allocation150_spill] sm:$0xff] }
 0x19a   : > { %v6122_v28 = vadd.f32 %v2291_v47, %v5860_v62  ;;  %vm1719_vm14 = vcmp.eq.s32.totalorder %v7979_v10, 1  ;;  %v6127_v30 = vadd.f32 %v2290_v20, %v7980_v22  ;;  %2179 = vperm.xlu0 %3816, %v7982_v45   ;;  %2497 = vperm.xlu1 %3822, %v7983_v58   ;;  %v1782_v17 = vmul.f32 %v4801_v34, %v1749_v4  ;;  %v2456_v47 = vpop.permute.xlu2 %2455  ;;  %v7987_v58 = vld [vmem:[#allocation9_spill] sm:$0xff] }
 0x19b   : > { %7975 = vst [vmem:[#allocation10_spill] sm:$0xff] %v6113_v3  ;;  %v7984_v9 = vrot.slane %v5420_v32, 1  ;;  %v7985_v38 = vrot.slane %v7952_v35, 1  ;;  %v2006_v33 = vsel %vm1974_vm12, %v7953_v54, 0.0  ;;  %v2049_v26 = vmul.f32 %v5249_v18, %v7986_v0  ;;  %v2153_v32 = vpop.permute.xlu1 %2152  ;;  %v7988_v54 = vld [vmem:[#allocation116_spill] sm:$0xff] }
 0x19c   : > { %7977 = vst [vmem:[#allocation40_spill] sm:$0xff] %v6122_v28  ;;  %v1428_v20 = vadd.f32 %v1396_v60, %v1267_v44  ;;  %v1397_v22 = vmul.f32 %v4684_v48, %v7964_v29  ;;  %v2008_v4 = vsel %vm1976_vm13, %v7987_v58, 0.0  ;;  %v6147_v3 = vperm.slane %v5828_v39, 6  ;;  %v7989_v60 = vld [vmem:[#allocation153_spill] sm:$0xff]  ;;  %v7990_v29 = vld [vmem:[#allocation107_spill] sm:$0xff] }
 0x19d   : > { %7981 = vst [vmem:[#allocation86_spill] sm:$0xff] %v6127_v30  ;;  %v6138_v62 = vsel %vm1481_vm0, %v7985_v38, %v7984_v9  ;;  %vm2544_vm1 = vcmp.eq.s32.totalorder %v2456_v47, 1  ;;  %v1398_v9 = vmul.f32 %v4684_v48, %v7952_v35  ;;  %v2150_v38 = vpop.permute.xlu0 %2149  ;;  %vm2229_vm15 = vcmp.eq.s32.totalorder %v2153_v32, 1  ;;  %v7991_v47 = vld [vmem:[#allocation160_spill] sm:$0xff]  ;;  %v7993_v35 = vld [vmem:[#allocation175_spill] sm:$0xff] }
 0x19e   : > { %v2576_v31 = vsel %vm2544_vm1, %v7988_v54, 0.0  ;;  %v1751_v44 = vsel %vm1719_vm14, %v6138_v62, 0.0  ;;  %v1464_v0 = vrot.slane %v7989_v60, 1  ;;  %vm2228_vm2 = vcmp.eq.s32.totalorder %v2150_v38, 1 }
 0x19f   : > { %v2261_v58 = vsel %vm2229_vm15, %v6090_v43, 0.0  ;;  %v2609_v39 = vmul.f32 %v6147_v3, %v2576_v31  ;;  %v2770_v28 = vmul.f32 %v7991_v47, %v7990_v29  ;;  %vm1980_vm3 = vcmp.eq.s32.totalorder %v7992_v14, 1  ;;  %v7995_v43 = vld [vmem:[#allocation69_spill] sm:$0xff]  ;;  %v7996_v29 = vld [vmem:[#allocation35_spill] sm:$0xff] }
 0x1a0   : > { %v2260_v32 = vsel %vm2228_vm2, %v7993_v35, 0.0  ;;  %v2294_v54 = vmul.f32 %v5831_v15, %v2261_v58  ;;  %v1429_v30 = vadd.f32 %v1397_v22, %v1268_v51  ;;  %vm1723_vm4 = vcmp.eq.s32.totalorder %v7994_v23, 1  ;;  %2944 = vperm.xlu2 %3823, %v7947_v25  }
 0x1a1   : > { %v2293_v10 = vmul.f32 %v5831_v15, %v2260_v32  ;;  %v2641_v38 = vadd.f32 %v2609_v39, %v6064_v27  ;;  %v1430_v5 = vadd.f32 %v1398_v9, %v1269_v1  ;;  %v6167_v7 = vadd.f32 %v2049_v26, %v7995_v43  ;;  %v7998_v27 = vld [vmem:[#allocation143_spill] sm:$0xff]  ;;  %v8001_v9 = vld [vmem:[#allocation4_spill] sm:$0xff] }
 0x1a2   : > { %v2039_v31 = vmul.f32 %v5249_v18, %v2006_v33  ;;  %v2052_v59 = vmul.f32 %v5249_v18, %v7996_v29  ;;  %v6173_v35 = vadd.f32 %v2294_v54, %v5930_v6  ;;  %v7997_v51 = vrot.slane %v5624_v2, 1  ;;  %v7999_v43 = vld [vmem:[#allocation55_spill] sm:$0xff]  ;;  %v8000_v33 = vld [vmem:[#allocation16_spill] sm:$0xff]  ;;  %v2459_v32 = vpop.permute.xlu2 %2458 }
 0x1a3   : > { %vm1722_vm5 = vcmp.eq.s32.totalorder %v7998_v27, 1  ;;  %v6184_v1 = vadd.f32 %v2293_v10, %v5909_v50  ;;  %2182 = vperm.xlu0 %3816, %v7999_v43   ;;  %2500 = vperm.xlu1 %3822, %v8000_v33   ;;  %v1784_v6 = vmul.f32 %v4801_v34, %v1751_v44  ;;  %v2802_v26 = vadd.f32 %v2770_v28, %v2641_v38  ;;  %v2162_v50 = vpop.permute.xlu1 %2161  ;;  %v8002_v28 = vld [vmem:[#allocation122_spill] sm:$0xff] }
 0x1a4   : > { %v6180_v22 = vsel %vm1481_vm0, %v7997_v51, %v1464_v0  ;;  %v2041_v25 = vmul.f32 %v5249_v18, %v2008_v4  ;;  %v2012_v58 = vsel %vm1980_vm3, %v5766_v49, 0.0  ;;  %vm1979_vm7 = vcmp.eq.s32.totalorder %v8001_v9, 1 }
 0x1a5   : > { %v1814_v39 = vadd.f32 %v1782_v17, %v1428_v20  ;;  %v1816_v54 = vadd.f32 %v1784_v6, %v1430_v5  ;;  %v1815_v10 = vadd.f32 %v6068_v8, %v1429_v30  ;;  %vm2545_vm8 = vcmp.eq.s32.totalorder %v2459_v32, 1  ;;  %v2159_v51 = vpop.permute.xlu0 %2158 }
 0x1a6   : > { %v1754_v29 = vsel %vm1722_vm5, %v6180_v22, 0.0  ;;  %vm2232_vm9 = vcmp.eq.s32.totalorder %v2162_v50, 1  ;;  %v2577_v44 = vsel %vm2545_vm8, %v8002_v28, 0.0  ;;  %v8003_v4 = vrot.slane %v5685_v13, 1 }
 0x1a7   : > { %v1401_v17 = vmul.f32 %v4684_v48, %v5624_v2  ;;  %vm2231_vm10 = vcmp.eq.s32.totalorder %v2159_v51, 1  ;;  %v2264_v5 = vsel %vm2232_vm9, %v5954_v37, 0.0  ;;  %v2610_v8 = vmul.f32 %v6147_v3, %v2577_v44  ;;  %v8006_v51 = vld [vmem:[#allocation34_spill] sm:$0xff] }
 0x1a8   : > { %v6201_v14 = vsel %vm1481_vm0, %v1464_v0, %v8003_v4  ;;  %v1402_v30 = vmul.f32 %v4684_v48, %v7989_v60  ;;  %v2071_v20 = vadd.f32 %v2039_v31, %v1814_v39  ;;  %v2263_v38 = vsel %vm2231_vm10, %v6138_v62, 0.0  ;;  %2947 = vperm.xlu2 %3823, %v7960_v40  }
 0x1a9   : > { %v2072_v27 = vadd.f32 %v6116_v24, %v1815_v10  ;;  %v2297_v19 = vmul.f32 %v5831_v15, %v2264_v5  ;;  %v2296_v0 = vmul.f32 %v5831_v15, %v2263_v38  ;;  %v6214_v33 = vadd.f32 %v2610_v8, %v5857_v52 }
 0x1aa   : > { %v6216_v6 = vadd.f32 %v2041_v25, %v1816_v54  ;;  %v6219_v32 = vadd.f32 %v2052_v59, %v5795_v61  ;;  %v2011_v48 = vsel %vm1979_vm7, %v5778_v11, 0.0  ;;  %v1755_v24 = vsel %vm1723_vm4, %v6201_v14, 0.0  ;;  %v8004_v25 = vld [vmem:[#allocation54_spill] sm:$0xff]  ;;  %v8005_v61 = vld [vmem:[#allocation21_spill] sm:$0xff]  ;;  %v6238_v59 = vld [vmem:[%s7184_s4 + $0x8] ss:$0 sm:$0xff]  ;;  %v2906_v54 = vpop.permute.xlu2 %2905 }
 0x1ab   : > { %v6224_v31 = vadd.f32 %v2297_v19, %v2072_v27  ;;  %v1433_v52 = vadd.f32 %v1401_v17, %v6109_v42  ;;  %v6231_v39 = vadd.f32 %v2296_v0, %v2071_v20  ;;  %2185 = vperm.xlu0 %3816, %v8004_v25   ;;  %2503 = vperm.xlu1 %3822, %v8005_v61   ;;  %v2171_v50 = vpop.permute.xlu1 %2170  ;;  %vm2994_vm0 = vcmp.eq.s32.totalorder %v2906_v54, 1  ;;  %v8007_v0 = vld [vmem:[#allocation61_spill] sm:$0xff] }
 0x1ac   : > { %v1434_v9 = vadd.f32 %v1402_v30, %v6118_v21  ;;  %v1787_v40 = vmul.f32 %v4801_v34, %v1754_v29  ;;  %v2045_v23 = vmul.f32 %v5249_v18, %v2012_v58  ;;  %v2044_v42 = vmul.f32 %v5249_v18, %v2011_v48  ;;  %v8008_v48 = vld [vmem:[#allocation20_spill] sm:$0xff] }
 0x1ad   : > { %v1788_v10 = vmul.f32 %v4801_v34, %v1755_v24  ;;  %v2055_v28 = vmul.f32 %v5249_v18, %v8006_v51  ;;  %v2168_v44 = vpop.permute.xlu0 %2167  ;;  %vm2235_vm11 = vcmp.eq.s32.totalorder %v2171_v50, 1  ;;  %v3026_v4 = vsel %vm2994_vm0, %v7973_v53, 0.0  ;;  %v8014_v51 = vld [vmem:[#allocation100_spill] sm:$0xff] }
 0x1ae   : > { %v1819_v17 = vadd.f32 %v1787_v40, %v1433_v52  ;;  %vm2234_vm12 = vcmp.eq.s32.totalorder %v2168_v44, 1  ;;  %v2267_v21 = vsel %vm2235_vm11, %v6201_v14, 0.0  ;;  %v3059_v29 = vmul.f32 %v6238_v59, %v3026_v4  ;;  %v8009_v52 = vld [vmem:[#allocation8_spill] sm:$0xff]  ;;  %v8011_v40 = vld [vmem:[#allocation57_spill] sm:$0xff] }
 0x1af   : > { %v1820_v58 = vadd.f32 %v1788_v10, %v1434_v9  ;;  %v2266_v5 = vsel %vm2234_vm12, %v6180_v22, 0.0  ;;  %v2300_v8 = vmul.f32 %v5831_v15, %v2267_v21  ;;  %v6264_v27 = vadd.f32 %v2055_v28, %v5863_v36  ;;  %v8015_v44 = vld [vmem:[#allocation101_spill] sm:$0xff] }
 0x1b0   : > { %v2299_v34 = vmul.f32 %v5831_v15, %v2266_v5  ;;  %v6253_v30 = vadd.f32 %v3059_v29, %v2802_v26  ;;  %v6255_v20 = vadd.f32 %v2044_v42, %v1819_v17  ;;  %2950 = vperm.xlu2 %3823, %v7982_v45   ;;  %v2047_v61 = vmul.f32 %v5249_v18, %v8009_v52  ;;  %v8013_v42 = vld [vmem:[#allocation97_spill] sm:$0xff]  ;;  %v8016_v29 = vld [vmem:[#allocation60_spill] sm:$0xff] }
 0x1b1   : > { %v6257_v38 = vadd.f32 %v2045_v23, %v1820_v58  ;;  %v6260_v53 = vadd.f32 %v2300_v8, %v6058_v16  ;;  %v8010_v16 = vld [vmem:[#allocation33_spill] sm:$0xff]  ;;  %vm2221_vm1 = vcmp.eq.s32.totalorder %v8011_v40, 1  ;;  %v2769_v28 = vmul.f32 %v7991_v47, %v8014_v51  ;;  %v8017_v58 = vld [vmem:[#allocation19_spill] sm:$0xff]  ;;  %v8021_v52 = vld [vmem:[#allocation36_spill] sm:$0xff] }
 0x1b2   : > { %v6267_v19 = vadd.f32 %v2299_v34, %v6043_v12  ;;  %v2468_v26 = vpop.permute.xlu2 %2467  ;;  %v2058_v9 = vmul.f32 %v5249_v18, %v8010_v16  ;;  %v8012_v12 = vld [vmem:[#allocation108_spill] sm:$0xff]  ;;  %v6292_v17 = vadd.f32 %v2047_v61, %v6037_v41  ;;  %vm2233_vm3 = vcmp.eq.s32.totalorder %v6030_v56, 1  ;;  %v8022_v16 = vld [vmem:[#allocation59_spill] sm:$0xff] }
 0x1b3   : > { %2188 = vperm.xlu0 %3816, %v8007_v0   ;;  %2506 = vperm.xlu1 %3822, %v8008_v48   ;;  %v2453_v24 = vpop.permute.xlu1 %2452  ;;  %vm2548_vm13 = vcmp.eq.s32.totalorder %v2468_v26, 1  ;;  %v8020_v26 = vld [vmem:[#allocation144_spill] sm:$0xff]  ;;  %v2265_v61 = vsel %vm2233_vm3, %v8021_v52, 0.0  ;;  %v8024_v40 = vld [vmem:[#allocation115_spill] sm:$0xff] }
 0x1b4   : > { %vm2543_vm14 = vcmp.eq.s32.totalorder %v2453_v24, 1  ;;  %v2580_v36 = vsel %vm2548_vm13, %v7951_v63, 0.0  ;;  %v2253_v63 = vsel %vm2221_vm1, %v8015_v44, 0.0  ;;  %v6295_v21 = vadd.f32 %v2058_v9, %v5941_v55  ;;  %v8023_v9 = vld [vmem:[#allocation24_spill] sm:$0xff] }
 0x1b5   : > { %v2450_v45 = vpop.permute.xlu0 %2449  ;;  %v2575_v54 = vsel %vm2543_vm14, %v8012_v12, 0.0  ;;  %v2613_v23 = vmul.f32 %v6147_v3, %v2580_v36  ;;  %v2298_v56 = vmul.f32 %v5831_v15, %v2265_v61  ;;  %v2771_v12 = vmul.f32 %v7991_v47, %v8024_v40 }
 0x1b6   : > { %vm2542_vm15 = vcmp.eq.s32.totalorder %v2450_v45, 1  ;;  %v2608_v10 = vmul.f32 %v6147_v3, %v2575_v54 }
 0x1b7   : > { %v6280_v50 = vsel %vm2542_vm15, %v8013_v42, 0.0  ;;  %v6286_v18 = vadd.f32 %v2613_v23, %v5928_v57  ;;  %v2286_v57 = vmul.f32 %v5831_v15, %v2253_v63  ;;  %v8025_v23 = vld [vmem:[#allocation149_spill] sm:$0xff]  ;;  %v8027_v63 = vld [vmem:[#allocation111_spill] sm:$0xff] }
 0x1b8   : > { %v2640_v4 = vadd.f32 %v2608_v10, %v6072_v46  ;;  %2953 = vperm.xlu2 %3823, %v7999_v43   ;;  %v8018_v46 = vld [vmem:[#allocation104_spill] sm:$0xff]  ;;  %v8019_v43 = vld [vmem:[#allocation99_spill] sm:$0xff]  ;;  %v8026_v10 = vld [vmem:[#allocation173_spill] sm:$0xff] }
 0x1b9   : > { %v6308_v24 = vadd.f32 %v2286_v57, %v8020_v26 }
 0x1ba   : > { %v2915_v5 = vpop.permute.xlu2 %2914  ;;  %v2801_v8 = vadd.f32 %v2769_v28, %v2640_v4  ;;  %v2803_v28 = vadd.f32 %v2771_v12, %v6214_v33  ;;  %v8031_v33 = vld [vmem:[#allocation23_spill] sm:$0xff] }
 0x1bb   : > { %2191 = vperm.xlu0 %3816, %v8016_v29   ;;  %2509 = vperm.xlu1 %3822, %v8017_v58   ;;  %v2900_v34 = vpop.permute.xlu1 %2899  ;;  %vm2997_vm10 = vcmp.eq.s32.totalorder %v2915_v5, 1  ;;  %v8032_v12 = vld [vmem:[#allocation171_spill] sm:$0xff]  ;;  %v8037_v5 = vld [vmem:[#allocation40_spill] sm:$0xff] }
 0x1bc   : > { %vm2992_vm2 = vcmp.eq.s32.totalorder %v2900_v34, 1  ;;  %v8028_v34 = vld [vmem:[#allocation11_spill] sm:$0xff] }
 0x1bd   : > { %v2897_v48 = vpop.permute.xlu0 %2896  ;;  %v6302_v41 = vsel %vm2992_vm2, %v8018_v46, 0.0  ;;  %v2330_v46 = vadd.f32 %v2298_v56, %v6216_v6 }
 0x1be   : > { %vm2991_vm4 = vcmp.eq.s32.totalorder %v2897_v48, 1 }
 0x1bf   : > { %v6305_v55 = vsel %vm2991_vm4, %v8019_v43, 0.0  ;;  %v8029_v43 = vld [vmem:[#allocation86_spill] sm:$0xff] }
 0x1c0   : > { %2956 = vperm.xlu2 %3823, %v8004_v25  }
 0x1c2   : > { %v2477_v45 = vpop.permute.xlu2 %2476 }
 0x1c3   : > { %2194 = vperm.xlu0 %3816, %v8022_v16   ;;  %2512 = vperm.xlu1 %3822, %v8023_v9   ;;  %v2462_v36 = vpop.permute.xlu1 %2461  ;;  %vm2551_vm5 = vcmp.eq.s32.totalorder %v2477_v45, 1  ;;  %v8030_v9 = vld [vmem:[#allocation67_spill] sm:$0xff] }
 0x1c4   : > { %vm2546_vm7 = vcmp.eq.s32.totalorder %v2462_v36, 1  ;;  %v2583_v42 = vsel %vm2551_vm5, %v8025_v23, 0.0  ;;  %v8033_v23 = vld [vmem:[#allocation168_spill] sm:$0xff] }
 0x1c5   : > { %v2903_v54 = vpop.permute.xlu0 %2902  ;;  %v2578_v51 = vsel %vm2546_vm7, %v8026_v10, 0.0  ;;  %v2616_v25 = vmul.f32 %v6147_v3, %v2583_v42  ;;  %v8034_v42 = vld [vmem:[#allocation154_spill] sm:$0xff] }
 0x1c6   : > { %vm2993_vm8 = vcmp.eq.s32.totalorder %v2903_v54, 1  ;;  %v2611_v58 = vmul.f32 %v6147_v3, %v2578_v51  ;;  %vm2220_vm11 = vcmp.eq.s32.totalorder %v8034_v42, 1  ;;  %v8036_v51 = vld [vmem:[#allocation175_spill] sm:$0xff] }
 0x1c7   : > { %v3025_v4 = vsel %vm2993_vm8, %v8027_v63, 0.0  ;;  %v6325_v48 = vadd.f32 %v2616_v25, %v8028_v34  ;;  %v3029_v25 = vsel %vm2997_vm10, %v8036_v51, 0.0  ;;  %v8040_v34 = vld [vmem:[#allocation79_spill] sm:$0xff]  ;;  %v8044_v51 = vld [vmem:[#allocation172_spill] sm:$0xff] }
 0x1c8   : > { %v3058_v57 = vmul.f32 %v6238_v59, %v3025_v4  ;;  %v2643_v26 = vadd.f32 %v2611_v58, %v8029_v43  ;;  %2959 = vperm.xlu2 %3823, %v8007_v0   ;;  %v8038_v58 = vld [vmem:[#allocation66_spill] sm:$0xff]  ;;  %v2252_v43 = vsel %vm2220_vm11, %v8040_v34, 0.0 }
 0x1ca   : > { %v6330_v61 = vadd.f32 %v3058_v57, %v2801_v8  ;;  %v2924_v45 = vpop.permute.xlu2 %2923  ;;  %v8035_v8 = vld [vmem:[#allocation161_spill] sm:$0xff]  ;;  %v8039_v57 = vld [vmem:[#allocation22_spill] sm:$0xff] }
 0x1cb   : > { %2197 = vperm.xlu0 %3816, %v8030_v9   ;;  %2515 = vperm.xlu1 %3822, %v8031_v33   ;;  %v2909_v36 = vpop.permute.xlu1 %2908  ;;  %v2773_v10 = vmul.f32 %v7991_v47, %v8035_v8  ;;  %vm3000_vm15 = vcmp.eq.s32.totalorder %v2924_v45, 1 }
 0x1cc   : > { %vm2995_vm9 = vcmp.eq.s32.totalorder %v2909_v36, 1  ;;  %v3062_v36 = vmul.f32 %v6238_v59, %v3029_v25 }
 0x1cd   : > { %v2465_v40 = vpop.permute.xlu0 %2464  ;;  %v3027_v54 = vsel %vm2995_vm9, %v8032_v12, 0.0  ;;  %v8041_v12 = vld [vmem:[#allocation132_spill] sm:$0xff] }
 0x1ce   : > { %vm2547_vm0 = vcmp.eq.s32.totalorder %v2465_v40, 1  ;;  %v3060_v56 = vmul.f32 %v6238_v59, %v3027_v54  ;;  %v2772_v54 = vmul.f32 %v7991_v47, %v8041_v12 }
 0x1cf   : > { %v2579_v6 = vsel %vm2547_vm0, %v8033_v23, 0.0 }
 0x1d0   : > { %v2612_v0 = vmul.f32 %v6147_v3, %v2579_v6  ;;  %v6342_v63 = vadd.f32 %v3060_v56, %v2803_v28  ;;  %2962 = vperm.xlu2 %3823, %v8016_v29   ;;  %v8042_v29 = vld [vmem:[#allocation53_spill] sm:$0xff]  ;;  %v2285_v56 = vmul.f32 %v5831_v15, %v2252_v43 }
 0x1d2   : > { %v2644_v4 = vadd.f32 %v2612_v0, %v8037_v5  ;;  %v2486_v33 = vpop.permute.xlu2 %2485  ;;  %v8043_v0 = vld [vmem:[#allocation52_spill] sm:$0xff] }
 0x1d3   : > { %2200 = vperm.xlu0 %3816, %v8038_v58   ;;  %2518 = vperm.xlu1 %3822, %v8039_v57   ;;  %v2471_v23 = vpop.permute.xlu1 %2470  ;;  %vm2554_vm12 = vcmp.eq.s32.totalorder %v2486_v33, 1 }
 0x1d4   : > { %v2805_v40 = vadd.f32 %v2773_v10, %v2644_v4  ;;  %vm2549_vm13 = vcmp.eq.s32.totalorder %v2471_v23, 1  ;;  %v2586_v6 = vsel %vm2554_vm12, %v8042_v29, 0.0  ;;  %v2804_v4 = vadd.f32 %v2772_v54, %v2643_v26  ;;  %v8047_v23 = vld [vmem:[#allocation37_spill] sm:$0xff] }
 0x1d5   : > { %v2912_v28 = vpop.permute.xlu0 %2911  ;;  %v2581_v8 = vsel %vm2549_vm13, %v8043_v0, 0.0  ;;  %v2619_v25 = vmul.f32 %v6147_v3, %v2586_v6  ;;  %v8048_v29 = vld [vmem:[#allocation169_spill] sm:$0xff] }
 0x1d6   : > { %v6354_v42 = vadd.f32 %v3062_v36, %v2805_v40  ;;  %vm2996_vm14 = vcmp.eq.s32.totalorder %v2912_v28, 1  ;;  %v2614_v10 = vmul.f32 %v6147_v3, %v2581_v8  ;;  %v8045_v36 = vld [vmem:[#allocation65_spill] sm:$0xff]  ;;  %v8046_v40 = vld [vmem:[#allocation27_spill] sm:$0xff]  ;;  %v2317_v28 = vadd.f32 %v2285_v56, %v8047_v23  ;;  %v8053_v23 = vld [vmem:[#allocation26_spill] sm:$0xff] }
 0x1d7   : > { %v3028_v5 = vsel %vm2996_vm14, %v8044_v51, 0.0  ;;  %v2651_v12 = vadd.f32 %v2619_v25, %v2330_v46  ;;  %v2774_v0 = vmul.f32 %v7991_v47, %v8048_v29  ;;  %v8051_v56 = vld [vmem:[#allocation129_spill] sm:$0xff]  ;;  %v2780_v29 = vmul.f32 %v7991_v47, %v7989_v60 }
 0x1d8   : > { %v3061_v57 = vmul.f32 %v6238_v59, %v3028_v5  ;;  %v2646_v33 = vadd.f32 %v2614_v10, %v6184_v1  ;;  %2965 = vperm.xlu2 %3823, %v8022_v16   ;;  %v8049_v1 = vld [vmem:[#allocation162_spill] sm:$0xff]  ;;  %v8050_v16 = vld [vmem:[#allocation87_spill] sm:$0xff]  ;;  %v2776_v25 = vmul.f32 %v7991_v47, %v8051_v56 }
 0x1d9   : > { %v2806_v51 = vadd.f32 %v2774_v0, %v6286_v18 }
 0x1da   : > { %v6363_v43 = vadd.f32 %v3061_v57, %v2804_v4  ;;  %v2933_v6 = vpop.permute.xlu2 %2932  ;;  %v3032_v4 = vsel %vm3000_vm15, %v6138_v62, 0.0 }
 0x1db   : > { %2203 = vperm.xlu0 %3816, %v8045_v36   ;;  %2521 = vperm.xlu1 %3822, %v8046_v40   ;;  %v2918_v26 = vpop.permute.xlu1 %2917  ;;  %v8052_v40 = vld [vmem:[#allocation74_spill] sm:$0xff]  ;;  %v3065_v0 = vmul.f32 %v6238_v59, %v3032_v4  ;;  %vm3003_vm8 = vcmp.eq.s32.totalorder %v2933_v6, 1 }
 0x1dc   : > { %vm2998_vm1 = vcmp.eq.s32.totalorder %v2918_v26, 1 }
 0x1dd   : > { %v2474_v54 = vpop.permute.xlu0 %2473  ;;  %v3030_v46 = vsel %vm2998_vm1, %v8049_v1, 0.0 }
 0x1de   : > { %vm2550_vm2 = vcmp.eq.s32.totalorder %v2474_v54, 1  ;;  %v3063_v5 = vmul.f32 %v6238_v59, %v3030_v46  ;;  %v8054_v54 = vld [vmem:[#allocation112_spill] sm:$0xff] }
 0x1df   : > { %v2582_v8 = vsel %vm2550_vm2, %v8050_v16, 0.0  ;;  %v2775_v62 = vmul.f32 %v7991_v47, %v8054_v54 }
 0x1e0   : > { %v2615_v10 = vmul.f32 %v6147_v3, %v2582_v8  ;;  %v6378_v57 = vadd.f32 %v3063_v5, %v2806_v51  ;;  %2968 = vperm.xlu2 %3823, %v8030_v9   ;;  %v8055_v9 = vld [vmem:[#allocation46_spill] sm:$0xff]  ;;  %v8056_v51 = vld [vmem:[#allocation9_spill] sm:$0xff]  ;;  %v8057_v5 = vld [vmem:[#allocation31_spill] sm:$0xff] }
 0x1e1   : > { %v2606_v16 = vmul.f32 %v6147_v3, %v8055_v9 }
 0x1e2   : > { %v2647_v45 = vadd.f32 %v2615_v10, %v6173_v35  ;;  %v2936_v18 = vpop.permute.xlu2 %2935 }
 0x1e3   : > { %2206 = vperm.xlu0 %3816, %v8052_v40   ;;  %2524 = vperm.xlu1 %3822, %v8053_v23   ;;  %v2480_v1 = vpop.permute.xlu1 %2479  ;;  %vm3004_vm3 = vcmp.eq.s32.totalorder %v2936_v18, 1  ;;  %v2807_v18 = vadd.f32 %v2775_v62, %v2646_v33 }
 0x1e4   : > { %v2808_v26 = vadd.f32 %v2776_v25, %v2647_v45  ;;  %vm2552_vm4 = vcmp.eq.s32.totalorder %v2480_v1, 1  ;;  %v3036_v35 = vsel %vm3004_vm3, %v6201_v14, 0.0  ;;  %v2812_v25 = vadd.f32 %v2780_v29, %v2651_v12  ;;  %v8058_v45 = vld [vmem:[#allocation85_spill] sm:$0xff]  ;;  %v8061_v29 = vld [vmem:[#allocation131_spill] sm:$0xff] }
 0x1e5   : > { %v2921_v46 = vpop.permute.xlu0 %2920  ;;  %v2584_v60 = vsel %vm2552_vm4, %v8056_v51, 0.0  ;;  %v3069_v4 = vmul.f32 %v6238_v59, %v3036_v35  ;;  %v2767_v23 = vmul.f32 %v7991_v47, %v8058_v45  ;;  %v8059_v1 = vld [vmem:[#allocation73_spill] sm:$0xff]  ;;  %v2638_v12 = vadd.f32 %v2606_v16, %v2317_v28 }
 0x1e6   : > { %v6392_v8 = vadd.f32 %v3065_v0, %v2808_v26  ;;  %vm2999_vm5 = vcmp.eq.s32.totalorder %v2921_v46, 1  ;;  %v2617_v56 = vmul.f32 %v6147_v3, %v2584_v60  ;;  %v8060_v46 = vld [vmem:[#allocation25_spill] sm:$0xff]  ;;  %v2777_v35 = vmul.f32 %v7991_v47, %v8061_v29 }
 0x1e7   : > { %v3031_v10 = vsel %vm2999_vm5, %v8057_v5, 0.0  ;;  %v6402_v0 = vadd.f32 %v3069_v4, %v2812_v25  ;;  %v6411_v62 = vadd.f32 %v2767_v23, %v2638_v12  ;;  %v2779_v16 = vmul.f32 %v7991_v47, %v5624_v2  ;;  %v8064_v4 = vld [vmem:[#allocation30_spill] sm:$0xff] }
 0x1e8   : > { %v3064_v14 = vmul.f32 %v6238_v59, %v3031_v10  ;;  %v2649_v54 = vadd.f32 %v2617_v56, %v6231_v39  ;;  %2971 = vperm.xlu2 %3823, %v8038_v58   ;;  %v8062_v58 = vld [vmem:[#allocation91_spill] sm:$0xff]  ;;  %v2809_v5 = vadd.f32 %v2777_v35, %v6325_v48  ;;  %v3035_v56 = vsel %vm3003_vm8, %v6180_v22, 0.0 }
 0x1e9   : > { %v3068_v45 = vmul.f32 %v6238_v59, %v3035_v56 }
 0x1ea   : > { %v6405_v26 = vadd.f32 %v3064_v14, %v2807_v18  ;;  %v2939_v9 = vpop.permute.xlu2 %2938  ;;  %v8065_v18 = vld [vmem:[#allocation70_spill] sm:$0xff] }
 0x1eb   : > { %2209 = vperm.xlu0 %3816, %v8059_v1   ;;  %2527 = vperm.xlu1 %3822, %v8060_v46   ;;  %v2927_v33 = vpop.permute.xlu1 %2926  ;;  %v2778_v14 = vmul.f32 %v7991_v47, %v8065_v18  ;;  %vm3005_vm0 = vcmp.eq.s32.totalorder %v2939_v9, 1  ;;  %v8066_v46 = vld [vmem:[#allocation77_spill] sm:$0xff] }
 0x1ec   : > { %vm3001_vm7 = vcmp.eq.s32.totalorder %v2927_v33, 1  ;;  %v2781_v33 = vmul.f32 %v7991_v47, %v5685_v13 }
 0x1ed   : > { %v2483_v51 = vpop.permute.xlu0 %2482  ;;  %v3033_v39 = vsel %vm3001_vm7, %v5954_v37, 0.0  ;;  %v8063_v37 = vld [vmem:[#allocation72_spill] sm:$0xff] }
 0x1ee   : > { %vm2553_vm9 = vcmp.eq.s32.totalorder %v2483_v51, 1  ;;  %v3066_v10 = vmul.f32 %v6238_v59, %v3033_v39  ;;  %v8067_v51 = vld [vmem:[#allocation41_spill] sm:$0xff] }
 0x1ef   : > { %v2585_v60 = vsel %vm2553_vm9, %v8062_v58, 0.0  ;;  %v3037_v39 = vsel %vm3005_vm0, %v8067_v51, 0.0  ;;  %v2810_v58 = vadd.f32 %v2778_v14, %v2649_v54 }
 0x1f0   : > { %v2618_v28 = vmul.f32 %v6147_v3, %v2585_v60  ;;  %v6421_v25 = vadd.f32 %v3066_v10, %v2809_v5  ;;  %2974 = vperm.xlu2 %3823, %v8045_v36   ;;  %v8068_v10 = vld [vmem:[#allocation84_spill] sm:$0xff] }
 0x1f2   : > { %v2650_v6 = vadd.f32 %v2618_v28, %v6224_v31  ;;  %v2942_v48 = vpop.permute.xlu2 %2941 }
 0x1f3   : > { %2212 = vperm.xlu0 %3816, %v8063_v37   ;;  %2530 = vperm.xlu1 %3822, %v8064_v4   ;;  %v2489_v2 = vpop.permute.xlu1 %2488  ;;  %vm3006_vm10 = vcmp.eq.s32.totalorder %v2942_v48, 1 }
 0x1f4   : > { %v2811_v23 = vadd.f32 %v2779_v16, %v2650_v6  ;;  %vm2555_vm11 = vcmp.eq.s32.totalorder %v2489_v2, 1  ;;  %v3038_v36 = vsel %vm3006_vm10, %v8066_v46, 0.0  ;;  %v8070_v6 = vld [vmem:[#allocation114_spill] sm:$0xff] }
 0x1f5   : > { %v2930_v22 = vpop.permute.xlu0 %2929  ;;  %v2587_v31 = vsel %vm2555_vm11, %v5778_v11, 0.0  ;;  %v8069_v11 = vld [vmem:[#allocation29_spill] sm:$0xff] }
 0x1f6   : > { %v6431_v12 = vadd.f32 %v3068_v45, %v2811_v23  ;;  %vm3002_vm12 = vcmp.eq.s32.totalorder %v2930_v22, 1  ;;  %v2620_v35 = vmul.f32 %v6147_v3, %v2587_v31  ;;  %v8071_v45 = vld [vmem:[#allocation163_spill] sm:$0xff]  ;;  %v8073_v31 = vmov 0  }
 0x1f7   : > { %v3034_v29 = vsel %vm3002_vm12, %v8021_v52, 0.0  ;;  %v3070_v52 = vmul.f32 %v6238_v59, %v3037_v39  ;;  %v2782_v23 = vmul.f32 %v7991_v47, %v8071_v45  ;;  %v8072_v22 = vld [vmem:[#allocation83_spill] sm:$0xff]  ;;  %v3056_v45 = vmul.f32 %v6238_v59, %v6305_v55 }
 0x1f8   : > { %v3067_v9 = vmul.f32 %v6238_v59, %v3034_v29  ;;  %v2652_v60 = vadd.f32 %v2620_v35, %v6267_v19  ;;  %2977 = vperm.xlu2 %3823, %v8052_v40  }
 0x1fa   : > { %v6442_v5 = vadd.f32 %v3067_v9, %v2810_v58  ;;  %v2813_v28 = vadd.f32 %v2781_v33, %v2652_v60  ;;  %v2945_v16 = vpop.permute.xlu2 %2944  ;;  %v2607_v33 = vmul.f32 %v6147_v3, %v6280_v50  ;;  %v8076_v60 = vld [vmem:[#allocation166_spill] sm:$0xff] }
 0x1fb   : > { %2215 = vperm.xlu0 %3816, %v8068_v10   ;;  %2533 = vperm.xlu1 %3822, %v8069_v11   ;;  %v2492_v13 = vpop.permute.xlu1 %2491  ;;  %vm3007_vm13 = vcmp.eq.s32.totalorder %v2945_v16, 1  ;;  %v8077_v16 = vld [vmem:[#allocation106_spill] sm:$0xff] }
 0x1fc   : > { %v6447_v56 = vadd.f32 %v3070_v52, %v2813_v28  ;;  %vm2556_vm14 = vcmp.eq.s32.totalorder %v2492_v13, 1  ;;  %v3039_v19 = vsel %vm3007_vm13, %v8070_v6, 0.0  ;;  %v2639_v52 = vadd.f32 %v2607_v33, %v6308_v24 }
 0x1fd   : > { %v2174_v54 = vpop.permute.xlu0 %2173  ;;  %v2588_v40 = vsel %vm2556_vm14, %v5766_v49, 0.0  ;;  %v3071_v49 = vmul.f32 %v6238_v59, %v3038_v36  ;;  %v2783_v13 = vmul.f32 %v7991_v47, %v8077_v16  ;;  %v3057_v24 = vmul.f32 %v6238_v59, %v6302_v41 }
 0x1fe   : > { %vm2236_vm1 = vcmp.eq.s32.totalorder %v2174_v54, 1  ;;  %v2621_v48 = vmul.f32 %v6147_v3, %v2588_v40 }
 0x1ff   : > { %v2268_v4 = vsel %vm2236_vm1, %v8067_v51, 0.0  ;;  %vm3316_vm1 = vcmask 261120  }
 0x200   : > { %v2301_v18 = vmul.f32 %v5831_v15, %v2268_v4  ;;  %v2653_v14 = vadd.f32 %v2621_v48, %v6260_v53  ;;  %2980 = vperm.xlu2 %3823, %v8059_v1   ;;  %v8074_v1 = vld [vmem:[#allocation134_spill] sm:$0xff]  ;;  %v3072_v4 = vmul.f32 %v6238_v59, %v3039_v19 }
 0x202   : > { %v2333_v2 = vadd.f32 %v2301_v18, %v6255_v20  ;;  %v2814_v29 = vadd.f32 %v2782_v23, %v2653_v14  ;;  %v2948_v35 = vpop.permute.xlu2 %2947  ;;  %v8075_v20 = vld [vmem:[#allocation94_spill] sm:$0xff] }
 0x203   : > { %2218 = vperm.xlu0 %3816, %v8072_v22   ;;  %3830 = vperm.xlu1 %3822, %v8073_v31   ;;  %v2495_v51 = vpop.permute.xlu1 %2494  ;;  %vm3008_vm15 = vcmp.eq.s32.totalorder %v2948_v35, 1  ;;  %v2768_v9 = vmul.f32 %v7991_v47, %v8075_v20  ;;  %v8080_v35 = vld [vmem:[#allocation10_spill] sm:$0xff] }
 0x204   : > { %v6464_v39 = vadd.f32 %v3071_v49, %v2814_v29  ;;  %vm2557_vm2 = vcmp.eq.s32.totalorder %v2495_v51, 1  ;;  %v3040_v58 = vsel %vm3008_vm15, %v8074_v1, 0.0  ;;  %v8079_v49 = vld [vmem:[#allocation90_spill] sm:$0xff] }
 0x205   : > { %v2177_v53 = vpop.permute.xlu0 %2176  ;;  %v2589_v10 = vsel %vm2557_vm2, %v8076_v60, 0.0  ;;  %v2800_v40 = vadd.f32 %v2768_v9, %v2639_v52  ;;  %v2784_v29 = vmul.f32 %v7991_v47, %v8079_v49  ;;  %v3073_v51 = vmul.f32 %v6238_v59, %v3040_v58  ;;  %v8082_v52 = vld [vmem:[#allocation133_spill] sm:$0xff]  ;;  %v8085_v49 = vld [vmem:[#allocation124_spill] sm:$0xff] }
 0x206   : > { %vm2237_vm3 = vcmp.eq.s32.totalorder %v2177_v53, 1  ;;  %v2622_v11 = vmul.f32 %v6147_v3, %v2589_v10  ;;  %v8081_v10 = vld [vmem:[#allocation96_spill] sm:$0xff] }
 0x207   : > { %v2269_v36 = vsel %vm2237_vm3, %v8066_v46, 0.0  ;;  %v6493_v55 = vadd.f32 %v3057_v24, %v2800_v40  ;;  %v8083_v40 = vld [vmem:[#allocation92_spill] sm:$0xff] }
 0x208   : > { %v2302_v50 = vmul.f32 %v5831_v15, %v2269_v36  ;;  %v2654_v28 = vadd.f32 %v2622_v11, %v2333_v2 }
 0x20a   : > { %v2334_v54 = vadd.f32 %v2302_v50, %v6257_v38  ;;  %v2815_v46 = vadd.f32 %v2783_v13, %v2654_v28  ;;  %v2951_v48 = vpop.permute.xlu2 %2950  ;;  %v8078_v38 = vld [vmem:[#allocation158_spill] sm:$0xff] }
 0x20b   : > { %2983 = vperm.xlu0 %3816, %v8063_v37   ;;  %3835 = vperm.xlu1 %3822, %v8073_v31   ;;  %v6491_v31 = vadd.f32 %v3056_v45, %v6411_v62  ;;  %vm3009_vm7 = vcmp.eq.s32.totalorder %v2951_v48, 1 }
 0x20c   : > { %v2498_v23 = vpop.permute.xlu1 %2497  ;;  %v6484_v18 = vadd.f32 %v3072_v4, %v2815_v46  ;;  %v3041_v28 = vsel %vm3009_vm7, %v8082_v52, 0.0  ;;  %v2785_v4 = vmul.f32 %v7991_v47, %v8083_v40 }
 0x20d   : > { %v2180_v14 = vpop.permute.xlu0 %2179  ;;  %vm2558_vm4 = vcmp.eq.s32.totalorder %v2498_v23, 1 }
 0x20e   : > { %vm2238_vm5 = vcmp.eq.s32.totalorder %v2180_v14, 1  ;;  %v2590_v37 = vsel %vm2558_vm4, %v8078_v38, 0.0 }
 0x20f   : > { %v2270_v2 = vsel %vm2238_vm5, %v8070_v6, 0.0  ;;  %v2623_v19 = vmul.f32 %v6147_v3, %v2590_v37  ;;  %v6502_v6 = vld [vmem:[%s7185_s5] ss:$0 sm:$0xff] }
 0x210   : > { %v2303_v22 = vmul.f32 %v5831_v15, %v2270_v2  ;;  %v3127_v50 = vadd.f32 %v6502_v6, %v6253_v30  ;;  %v3126_v13 = vadd.f32 %v6502_v6, %v6330_v61  ;;  %v3130_v61 = vadd.f32 %v6502_v6, %v6354_v42 }
 0x211   : > { %v2655_v41 = vadd.f32 %v2623_v19, %v2334_v54  ;;  %v3128_v37 = vadd.f32 %v6502_v6, %v6342_v63  ;;  %v8087_v63 = vld [vmem:[#allocation156_spill] sm:$0xff] }
 0x212   : > { %v2335_v33 = vadd.f32 %v2303_v22, %v8080_v35  ;;  %v2954_v20 = vpop.permute.xlu2 %2953  ;;  %v3159_v24 = vadd.f32 3.0, %v3127_v50  ;;  %v3158_v30 = vadd.f32 3.0, %v3126_v13 }
 0x213   : > { %v2816_v53 = vadd.f32 %v2784_v29, %v2655_v41  ;;  %vm3010_vm10 = vcmp.eq.s32.totalorder %v2954_v20, 1  ;;  %v3162_v20 = vadd.f32 3.0, %v3130_v61 }
 0x214   : > { %v3191_v41 = vmax.f32 %v3159_v24, 0.0  ;;  %v3042_v29 = vsel %vm3010_vm10, %v8085_v49, 0.0  ;;  %v6543_v24 = vadd.f32 %v6502_v6, %v6378_v57 }
 0x215   : > { %v2501_v9 = vpop.permute.xlu1 %2500  ;;  %v6504_v62 = vadd.f32 %v3073_v51, %v2816_v53  ;;  %v2183_v60 = vpop.permute.xlu0 %2182  ;;  %v8086_v53 = vld [vmem:[#allocation98_spill] sm:$0xff] }
 0x216   : > { %vm2559_vm8 = vcmp.eq.s32.totalorder %v2501_v9, 1  ;;  %vm2239_vm9 = vcmp.eq.s32.totalorder %v2183_v60, 1  ;;  %v2786_v42 = vmul.f32 %v7991_v47, %v8086_v53  ;;  %v3160_v9 = vadd.f32 3.0, %v3128_v37 }
 0x217   : > { %v2591_v36 = vsel %vm2559_vm8, %v8081_v10, 0.0  ;;  %v2271_v11 = vsel %vm2239_vm9, %v8074_v1, 0.0  ;;  %v3074_v1 = vmul.f32 %v6238_v59, %v3041_v28  ;;  %v3075_v10 = vmul.f32 %v6238_v59, %v3042_v29 }
 0x218   : > { %v2624_v58 = vmul.f32 %v6147_v3, %v2591_v36  ;;  %v2304_v16 = vmul.f32 %v5831_v15, %v2271_v11 }
 0x21a   : > { %v2656_v54 = vadd.f32 %v2624_v58, %v2335_v33  ;;  %v2336_v46 = vadd.f32 %v2304_v16, %v6292_v17  ;;  %v2957_v45 = vpop.permute.xlu2 %2956  ;;  %v8084_v17 = vld [vmem:[#allocation102_spill] sm:$0xff]  ;;  %v3190_v33 = vmax.f32 %v3158_v30, 0.0  ;;  %v3223_v58 = vmin.f32 %v3191_v41, 6.0  ;;  %v8090_v41 = vld [vmem:[#allocation105_spill] sm:$0xff] }
 0x21b   : > { %vm3011_vm12 = vcmp.eq.s32.totalorder %v2957_v45, 1  ;;  %v2787_v29 = vmul.f32 %v7991_v47, %v8090_v41 }
 0x21c   : > { %v2817_v48 = vadd.f32 %v2785_v4, %v2656_v54  ;;  %v3222_v16 = vmin.f32 %v3190_v33, 6.0  ;;  %v3194_v4 = vmax.f32 %v3162_v20, 0.0  ;;  %v3255_v30 = vmul.f32 %v3223_v58, %v3127_v50 }
 0x21d   : > { %v2504_v23 = vpop.permute.xlu1 %2503  ;;  %v2186_v38 = vpop.permute.xlu0 %2185 }
 0x21e   : > { %v6519_v14 = vadd.f32 %v3074_v1, %v2817_v48  ;;  %vm2560_vm0 = vcmp.eq.s32.totalorder %v2504_v23, 1  ;;  %vm2240_vm11 = vcmp.eq.s32.totalorder %v2186_v38, 1  ;;  %v8088_v1 = vld [vmem:[#allocation159_spill] sm:$0xff] }
 0x21f   : > { %v2592_v2 = vsel %vm2560_vm0, %v8084_v17, 0.0  ;;  %v2272_v19 = vsel %vm2240_vm11, %v8082_v52, 0.0  ;;  %v6536_v52 = vadd.f32 %v6502_v6, %v6363_v43  ;;  %v8089_v17 = vld [vmem:[#allocation141_spill] sm:$0xff] }
 0x220   : > { %v2625_v22 = vmul.f32 %v6147_v3, %v2592_v2  ;;  %v2305_v35 = vmul.f32 %v5831_v15, %v2272_v19  ;;  %v3043_v45 = vsel %vm3011_vm12, %v8089_v17, 0.0  ;;  %v3254_v19 = vmul.f32 %v3222_v16, %v3126_v13 }
 0x221   : > { %v3161_v38 = vadd.f32 3.0, %v6536_v52 }
 0x222   : > { %v2657_v51 = vadd.f32 %v2625_v22, %v2336_v46  ;;  %v2337_v60 = vadd.f32 %v2305_v35, %v8087_v63  ;;  %v2960_v11 = vpop.permute.xlu2 %2959  ;;  %v3192_v46 = vmax.f32 %v3160_v9, 0.0  ;;  %v3226_v35 = vmin.f32 %v3194_v4, 6.0 }
 0x223   : > { %v3193_v20 = vmax.f32 %v3161_v38, 0.0  ;;  %v6557_v13 = vmul.f32 0.16666667, %v3254_v19  ;;  %vm3012_vm15 = vcmp.eq.s32.totalorder %v2960_v11, 1 }
 0x224   : > { %v2818_v36 = vadd.f32 %v2786_v42, %v2657_v51  ;;  %v3224_v33 = vmin.f32 %v3192_v46, 6.0  ;;  %v3076_v51 = vmul.f32 %v6238_v59, %v3043_v45  ;;  %v6555_v42 = vmul.f32 0.16666667, %v3255_v30 }
 0x225   : > { %v2507_v28 = vpop.permute.xlu1 %2506  ;;  %v2189_v40 = vpop.permute.xlu0 %2188  ;;  %v3225_v46 = vmin.f32 %v3193_v20, 6.0  ;;  %v6586_v38 = vsel %vm3316_vm1, %v6557_v13, 0.0  ;;  %v6606_v20 = vadd.f32 %v6502_v6, %v6405_v26 }
 0x226   : > { %v6538_v54 = vadd.f32 %v3075_v10, %v2818_v36  ;;  %vm2561_vm13 = vcmp.eq.s32.totalorder %v2507_v28, 1  ;;  %vm2241_vm14 = vcmp.eq.s32.totalorder %v2189_v40, 1  ;;  %v3258_v10 = vmul.f32 %v3226_v35, %v3130_v61  ;;  %v8091_v36 = vld [vmem:[#allocation117_spill] sm:$0xff] }
 0x227   : > { %v2593_v48 = vsel %vm2561_vm13, %v8088_v1, 0.0  ;;  %v2273_v23 = vsel %vm2241_vm14, %v8085_v49, 0.0  ;;  %v3163_v49 = vadd.f32 3.0, %v6543_v24  ;;  %v6564_v28 = vadd.f32 %v6502_v6, %v6392_v8  ;;  %v8092_v1 = vld [vmem:[#allocation140_spill] sm:$0xff] }
 0x228   : > { %v2626_v43 = vmul.f32 %v6147_v3, %v2593_v48  ;;  %v2306_v2 = vmul.f32 %v5831_v15, %v2273_v23  ;;  %v3044_v48 = vsel %vm3012_vm15, %v8092_v1, 0.0  ;;  %v6572_v61 = vadd.f32 %v6502_v6, %v6491_v31  ;;  %v8093_v23 = vld [vmem:[#allocation113_spill] sm:$0xff] }
 0x229   : > { %v3195_v16 = vmax.f32 %v3163_v49, 0.0  ;;  %v6578_v8 = vadd.f32 %v6502_v6, %v6493_v55  ;;  %v6582_v30 = vsel %vm3316_vm1, %v6555_v42, 0.0  ;;  %v6590_v31 = vadd.f32 %v6502_v6, %v6402_v0 }
 0x22a   : > { %v2658_v22 = vadd.f32 %v2626_v43, %v2337_v60  ;;  %v2338_v57 = vadd.f32 %v2306_v2, %v6167_v7  ;;  %v2963_v53 = vpop.permute.xlu2 %2962  ;;  %v3256_v7 = vmul.f32 %v3224_v33, %v3128_v37  ;;  %v2788_v43 = vmul.f32 %v7991_v47, %v8093_v23 }
 0x22b   : > { %v3165_v2 = vadd.f32 3.0, %v6564_v28  ;;  %v3227_v19 = vmin.f32 %v3195_v16, 6.0  ;;  %v3077_v55 = vmul.f32 %v6238_v59, %v3044_v48  ;;  %v3257_v33 = vmul.f32 %v3225_v46, %v6536_v52  ;;  %v8096_v16 = vld [vmem:[#allocation128_spill] sm:$0xff] }
 0x22c   : > { %v2819_v50 = vadd.f32 %v2787_v29, %v2658_v22  ;;  %v6595_v29 = vmul.f32 0.16666667, %v3258_v10  ;;  %v6597_v35 = vmul.f32 0.16666667, %v3256_v7  ;;  %v3156_v49 = vadd.f32 3.0, %v6572_v61 }
 0x22d   : > { %v2510_v9 = vpop.permute.xlu1 %2509  ;;  %v2192_v60 = vpop.permute.xlu0 %2191  ;;  %vm3013_vm4 = vcmp.eq.s32.totalorder %v2963_v53, 1  ;;  %v3197_v52 = vmax.f32 %v3165_v2, 0.0  ;;  %v3259_v7 = vmul.f32 %v3227_v19, %v6543_v24  ;;  %v6633_v19 = vadd.f32 %v6502_v6, %v6431_v12 }
 0x22e   : > { %v6559_v63 = vadd.f32 %v3076_v51, %v2819_v50  ;;  %vm2562_vm2 = vcmp.eq.s32.totalorder %v2510_v9, 1  ;;  %vm2242_vm3 = vcmp.eq.s32.totalorder %v2192_v60, 1  ;;  %v3157_v50 = vadd.f32 3.0, %v6578_v8  ;;  %v8095_v60 = vld [vmem:[#allocation103_spill] sm:$0xff] }
 0x22f   : > { %v2594_v58 = vsel %vm2562_vm2, %v8091_v36, 0.0  ;;  %v2274_v40 = vsel %vm2242_vm3, %v8089_v17, 0.0  ;;  %v8094_v17 = vld [vmem:[#allocation7_spill] sm:$0xff]  ;;  %v3169_v9 = vadd.f32 3.0, %v6590_v31  ;;  %v6621_v46 = vsel %vm3316_vm1, %v6597_v35, 0.0 }
 0x230   : > { %v2627_v4 = vmul.f32 %v6147_v3, %v2594_v58  ;;  %v2307_v11 = vmul.f32 %v5831_v15, %v2274_v40  ;;  %v6615_v58 = vadd.f32 %v6502_v6, %v6421_v25  ;;  %v3045_v40 = vsel %vm3013_vm4, %v8096_v16, 0.0 }
 0x231   : > { %v3164_v25 = vadd.f32 3.0, %v6606_v20  ;;  %v3201_v23 = vmax.f32 %v3169_v9, 0.0  ;;  %v3229_v2 = vmin.f32 %v3197_v52, 6.0 }
 0x232   : > { %v2659_v37 = vadd.f32 %v2627_v4, %v2338_v57  ;;  %v2339_v45 = vadd.f32 %v2307_v11, %v8094_v17  ;;  %v2966_v41 = vpop.permute.xlu2 %2965  ;;  %v3188_v4 = vmax.f32 %v3156_v49, 0.0  ;;  %v8097_v11 = vld [vmem:[#allocation125_spill] sm:$0xff]  ;;  %v6638_v49 = vmul.f32 0.16666667, %v3259_v7 }
 0x233   : > { %v2789_v24 = vmul.f32 %v7991_v47, %v8097_v11  ;;  %vm3014_vm8 = vcmp.eq.s32.totalorder %v2966_v41, 1  ;;  %v3196_v12 = vmax.f32 %v3164_v25, 0.0  ;;  %v3168_v7 = vadd.f32 3.0, %v6633_v19  ;;  %v8100_v11 = vld [vmem:[#allocation147_spill] sm:$0xff] }
 0x234   : > { %v2820_v22 = vadd.f32 %v2788_v43, %v2659_v37  ;;  %v6627_v37 = vsel %vm3316_vm1, %v6595_v29, 0.0  ;;  %v8098_v43 = vld [vmem:[#allocation167_spill] sm:$0xff] }
 0x235   : > { %v2513_v57 = vpop.permute.xlu1 %2512  ;;  %v2195_v51 = vpop.permute.xlu0 %2194 }
 0x236   : > { %v6601_v0 = vadd.f32 %v3077_v55, %v2820_v22  ;;  %vm2563_vm5 = vcmp.eq.s32.totalorder %v2513_v57, 1  ;;  %vm2243_vm7 = vcmp.eq.s32.totalorder %v2195_v51, 1  ;;  %v6636_v57 = vmul.f32 0.16666667, %v3257_v33 }
 0x237   : > { %v2595_v10 = vsel %vm2563_vm5, %v8095_v60, 0.0  ;;  %v2275_v36 = vsel %vm2243_vm7, %v8092_v1, 0.0  ;;  %v3189_v1 = vmax.f32 %v3157_v50, 0.0  ;;  %v3166_v51 = vadd.f32 3.0, %v6615_v58 }
 0x238   : > { %v2628_v53 = vmul.f32 %v6147_v3, %v2595_v10  ;;  %v2308_v26 = vmul.f32 %v5831_v15, %v2275_v36  ;;  %v3220_v60 = vmin.f32 %v3188_v4, 6.0  ;;  %v3233_v36 = vmin.f32 %v3201_v23, 6.0 }
 0x239   : > { %v3221_v52 = vmin.f32 %v3189_v1, 6.0  ;;  %v3261_v33 = vmul.f32 %v3229_v2, %v6564_v28  ;;  %v3198_v4 = vmax.f32 %v3166_v51, 0.0  ;;  %v6653_v25 = vsel %vm3316_vm1, %v6636_v57, 0.0 }
 0x23a   : > { %v2660_v48 = vadd.f32 %v2628_v53, %v2339_v45  ;;  %v2340_v17 = vadd.f32 %v2308_v26, %v8098_v43  ;;  %v3078_v45 = vmul.f32 %v6238_v59, %v3045_v40  ;;  %v2969_v22 = vpop.permute.xlu2 %2968  ;;  %v8099_v53 = vld [vmem:[#allocation82_spill] sm:$0xff]  ;;  %v3252_v1 = vmul.f32 %v3220_v60, %v6572_v61 }
 0x23b   : > { %v8101_v43 = vld [vmem:[#allocation126_spill] sm:$0xff]  ;;  %v3253_v2 = vmul.f32 %v3221_v52, %v6578_v8  ;;  %v3200_v61 = vmax.f32 %v3168_v7, 0.0  ;;  %v3230_v8 = vmin.f32 %v3198_v4, 6.0  ;;  %v6673_v52 = vadd.f32 %v6502_v6, %v6447_v56  ;;  %v8103_v7 = vld [vmem:[#allocation3_spill] sm:$0xff] }
 0x23c   : > { %v2821_v55 = vadd.f32 %v2789_v24, %v2660_v48  ;;  %v3046_v24 = vsel %vm3014_vm8, %v8100_v11, 0.0  ;;  %v2790_v28 = vmul.f32 %v7991_v47, %v8101_v43  ;;  %vm3015_vm0 = vcmp.eq.s32.totalorder %v2969_v22, 1 }
 0x23d   : > { %v2516_v50 = vpop.permute.xlu1 %2515  ;;  %v2198_v10 = vpop.permute.xlu0 %2197  ;;  %v3232_v56 = vmin.f32 %v3200_v61, 6.0  ;;  %v3262_v22 = vmul.f32 %v3230_v8, %v6615_v58 }
 0x23e   : > { %v6641_v9 = vadd.f32 %v3078_v45, %v2821_v55  ;;  %vm2564_vm9 = vcmp.eq.s32.totalorder %v2516_v50, 1  ;;  %vm2244_vm10 = vcmp.eq.s32.totalorder %v2198_v10, 1  ;;  %v3228_v45 = vmin.f32 %v3196_v12, 6.0 }
 0x23f   : > { %v2596_v40 = vsel %vm2564_vm9, %v8099_v53, 0.0  ;;  %v2276_v26 = vsel %vm2244_vm10, %v8096_v16, 0.0  ;;  %v6660_v16 = vsel %vm3316_vm1, %v6638_v49, 0.0  ;;  %v3265_v55 = vmul.f32 %v3233_v36, %v6590_v31 }
 0x240   : > { %v2629_v48 = vmul.f32 %v6147_v3, %v2596_v40  ;;  %v2309_v41 = vmul.f32 %v5831_v15, %v2276_v26  ;;  %v6666_v50 = vadd.f32 %v6502_v6, %v6442_v5  ;;  %v6669_v10 = vmul.f32 0.16666667, %v3261_v33 }
 0x241   : > { %v6675_v31 = vmul.f32 0.16666667, %v3252_v1  ;;  %v6679_v5 = vmul.f32 0.16666667, %v3253_v2  ;;  %v3260_v40 = vmul.f32 %v3228_v45, %v6606_v20  ;;  %v6682_v33 = vmul.f32 0.16666667, %v3265_v55 }
 0x242   : > { %v2661_v23 = vadd.f32 %v2629_v48, %v2340_v17  ;;  %v2341_v51 = vadd.f32 %v2309_v41, %v6219_v32  ;;  %v3079_v17 = vmul.f32 %v6238_v59, %v3046_v24  ;;  %v2972_v53 = vpop.permute.xlu2 %2971  ;;  %v3167_v48 = vadd.f32 3.0, %v6666_v50  ;;  %v8104_v1 = vld [vmem:[#allocation28_spill] sm:$0xff] }
 0x243   : > { %8102 = vst [vmem:[#allocation76_spill] sm:$0xff] %v6682_v33  ;;  %v3170_v41 = vadd.f32 3.0, %v6673_v52  ;;  %v3317_v45 = vsel %vm3316_vm1, %v6675_v31, 0.0  ;;  %v6700_v55 = vsel %vm3316_vm1, %v6669_v10, 0.0  ;;  %v6702_v58 = vmul.f32 0.16666667, %v3260_v40 }
 0x244   : > { %v2822_v60 = vadd.f32 %v2790_v28, %v2661_v23  ;;  %v3047_v23 = vsel %vm3015_vm0, %v8104_v1, 0.0  ;;  %v8105_v28 = vld [vmem:[#allocation146_spill] sm:$0xff]  ;;  %v6706_v61 = vsel %vm3316_vm1, %v6682_v33, 0.0  ;;  %v3199_v8 = vmax.f32 %v3167_v48, 0.0 }
 0x245   : > { %v2519_v12 = vpop.permute.xlu1 %2518  ;;  %v2201_v36 = vpop.permute.xlu0 %2200  ;;  %v2791_v2 = vmul.f32 %v7991_v47, %v8105_v28  ;;  %v6719_v28 = vadd.f32 %v6502_v6, %v6484_v18  ;;  %vm3016_vm13 = vcmp.eq.s32.totalorder %v2972_v53, 1 }
 0x246   : > { %v6677_v32 = vadd.f32 %v3079_v17, %v2822_v60  ;;  %vm2565_vm11 = vcmp.eq.s32.totalorder %v2519_v12, 1  ;;  %vm2245_vm12 = vcmp.eq.s32.totalorder %v2201_v36, 1  ;;  %v3264_v60 = vmul.f32 %v3232_v56, %v6633_v19  ;;  %v8107_v56 = vld [vmem:[#allocation38_spill] sm:$0xff] }
 0x247   : > { %v2597_v26 = vsel %vm2565_vm11, %v8103_v7, 0.0  ;;  %v2277_v4 = vsel %vm2245_vm12, %v8100_v11, 0.0  ;;  %v3318_v11 = vsel %vm3316_vm1, %v6679_v5, 0.0  ;;  %v3080_v12 = vmul.f32 %v6238_v59, %v3047_v23 }
 0x248   : > { %v2630_v24 = vmul.f32 %v6147_v3, %v2597_v26  ;;  %v2310_v20 = vmul.f32 %v5831_v15, %v2277_v4  ;;  %v6711_v7 = vmul.f32 0.16666667, %v3262_v22  ;;  %v3202_v26 = vmax.f32 %v3170_v41, 0.0 }
 0x249   : > { %v6715_v4 = vadd.f32 %v6502_v6, %v6464_v39  ;;  %v6725_v59 = vadd.f32 %v6502_v6, %v6504_v62  ;;  %v6729_v41 = vmul.f32 0.16666667, %v3264_v60  ;;  %v3231_v23 = vmin.f32 %v3199_v8, 6.0  ;;  %v8110_v60 = vld [vmem:[#allocation136_spill] sm:$0xff] }
 0x24a   : > { %v2662_v43 = vadd.f32 %v2630_v24, %v2341_v51  ;;  %v8106_v51 = vld [vmem:[#allocation68_spill] sm:$0xff]  ;;  %v3319_v24 = vadd.f32 %v3318_v11, %v3317_v45  ;;  %v2975_v39 = vpop.permute.xlu2 %2974  ;;  %v3234_v53 = vmin.f32 %v3202_v26, 6.0  ;;  %v8109_v45 = vld [vmem:[#allocation142_spill] sm:$0xff]  ;;  %v2792_v8 = vmul.f32 %v7991_v47, %v8110_v60  ;;  %v8111_v26 = vld [vmem:[#allocation157_spill] sm:$0xff] }
 0x24b   : > { %v2342_v17 = vadd.f32 %v2310_v20, %v8106_v51  ;;  %8108 = vst [vmem:[#allocation75_spill] sm:$0xff] %v6729_v41  ;;  %v3048_v11 = vsel %vm3016_vm13, %v8109_v45, 0.0  ;;  %v3332_v51 = vsel %vm3316_vm1, %v6702_v58, 0.0  ;;  %vm3017_vm2 = vcmp.eq.s32.totalorder %v2975_v39, 1 }
 0x24c   : > { %v2823_v36 = vadd.f32 %v2791_v2, %v2662_v43  ;;  %v3321_v22 = vadd.f32 %v6586_v38, %v3319_v24  ;;  %v3171_v2 = vadd.f32 3.0, %v6715_v4 }
 0x24d   : > { %v2522_v40 = vpop.permute.xlu1 %2521  ;;  %v2204_v19 = vpop.permute.xlu0 %2203 }
 0x24e   : > { %v6721_v20 = vadd.f32 %v3080_v12, %v2823_v36  ;;  %vm2566_vm14 = vcmp.eq.s32.totalorder %v2522_v40, 1  ;;  %vm2246_vm15 = vcmp.eq.s32.totalorder %v2204_v19, 1  ;;  %v3172_v12 = vadd.f32 3.0, %v6719_v28 }
 0x24f   : > { %v2598_v48 = vsel %vm2566_vm14, %v8107_v56, 0.0  ;;  %v2278_v18 = vsel %vm2246_vm15, %v8104_v1, 0.0  ;;  %v6743_v1 = vsel %vm3316_vm1, %v6711_v7, 0.0  ;;  %v3173_v36 = vadd.f32 3.0, %v6725_v59 }
 0x250   : > { %v2631_v43 = vmul.f32 %v6147_v3, %v2598_v48  ;;  %v2311_v62 = vmul.f32 %v5831_v15, %v2278_v18  ;;  %v3323_v24 = vadd.f32 %v6582_v30, %v3321_v22  ;;  %v6750_v19 = vsel %vm3316_vm1, %v6729_v41, 0.0 }
 0x251   : > { %v3263_v56 = vmul.f32 %v3231_v23, %v6666_v50  ;;  %v3203_v60 = vmax.f32 %v3171_v2, 0.0  ;;  %v6762_v30 = vadd.f32 %v6502_v6, %v6519_v14  ;;  %v3205_v33 = vmax.f32 %v3173_v36, 0.0 }
 0x252   : > { %v2663_v38 = vadd.f32 %v2631_v43, %v2342_v17  ;;  %v2343_v40 = vadd.f32 %v2311_v62, %v8111_v26  ;;  %v6756_v17 = vld [vmem:[%s7184_s4 + $0x8] ss:$0 sm:$0xff]  ;;  %v3266_v43 = vmul.f32 %v3234_v53, %v6673_v52  ;;  %v3325_v62 = vadd.f32 %v6621_v46, %v3323_v24 }
 0x253   : > { %v3081_v48 = vmul.f32 %v6756_v17, %v3048_v11  ;;  %v3204_v26 = vmax.f32 %v3172_v12, 0.0  ;;  %v8112_v11 = vld [vmem:[#allocation151_spill] sm:$0xff]  ;;  %v6771_v53 = vadd.f32 %v6502_v6, %v6538_v54  ;;  %v6775_v14 = vadd.f32 %v6502_v6, %v6559_v63  ;;  %v6786_v54 = vpop.permute.xlu2 %2977 }
 0x254   : > { %v2824_v18 = vadd.f32 %v2792_v8, %v2663_v38  ;;  %v3327_v52 = vadd.f32 %v6653_v25, %v3325_v62  ;;  %v3174_v2 = vadd.f32 3.0, %v6762_v30  ;;  %v6782_v12 = vadd.f32 %v6502_v6, %v6601_v0  ;;  %v8113_v8 = vld [vmem:[#allocation88_spill] sm:$0xff] }
 0x255   : > { %v2525_v22 = vpop.permute.xlu1 %2524  ;;  %v2207_v23 = vpop.permute.xlu0 %2206  ;;  %v3049_v25 = vsel %vm3017_vm2, %v8113_v8, 0.0  ;;  %v6788_v24 = vmul.f32 0.16666667, %v3263_v56  ;;  %v3235_v63 = vmin.f32 %v3203_v60, 6.0  ;;  %v3236_v62 = vmin.f32 %v3204_v26, 6.0 }
 0x256   : > { %v6765_v50 = vadd.f32 %v3081_v48, %v2824_v18  ;;  %vm2567_vm3 = vcmp.eq.s32.totalorder %v2525_v22, 1  ;;  %vm2247_vm4 = vcmp.eq.s32.totalorder %v2207_v23, 1  ;;  %v8114_v18 = vld [vmem:[#allocation138_spill] sm:$0xff]  ;;  %v6792_v22 = vmul.f32 0.16666667, %v3266_v43 }
 0x257   : > { %v2599_v38 = vsel %vm2567_vm3, %v8112_v11, 0.0  ;;  %v2279_v46 = vsel %vm2247_vm4, %v8109_v45, 0.0  ;;  %v2793_v45 = vmul.f32 %v7991_v47, %v8114_v18  ;;  %v3329_v0 = vadd.f32 %v6627_v37, %v3327_v52 }
 0x258   : > { %v2632_v39 = vmul.f32 %v6147_v3, %v2599_v38  ;;  %v2312_v36 = vmul.f32 %v5831_v15, %v2279_v46  ;;  %v3175_v11 = vadd.f32 3.0, %v6771_v53  ;;  %v3176_v38 = vadd.f32 3.0, %v6775_v14 }
 0x259   : > { %v3082_v46 = vmul.f32 %v6756_v17, %v3049_v25  ;;  %v3237_v41 = vmin.f32 %v3205_v33, 6.0  ;;  %v3206_v60 = vmax.f32 %v3174_v2, 0.0  ;;  %v3331_v43 = vadd.f32 %v6660_v16, %v3329_v0  ;;  %v8115_v25 = vld [vmem:[#allocation176_spill] sm:$0xff] }
 0x25a   : > { %v2664_v48 = vadd.f32 %v2632_v39, %v2343_v40  ;;  %v2344_v23 = vadd.f32 %v2312_v36, %v6264_v27  ;;  %v3177_v40 = vadd.f32 3.0, %v6782_v12  ;;  %v3267_v26 = vmul.f32 %v3235_v63, %v6715_v4 }
 0x25b   : > { %v6804_v27 = vadd.f32 %v6502_v6, %v6641_v9  ;;  %v3268_v36 = vmul.f32 %v3236_v62, %v6719_v28  ;;  %v3333_v2 = vadd.f32 %v3332_v51, %v3331_v43  ;;  %v3208_v18 = vmax.f32 %v3176_v38, 0.0  ;;  %v2981_v38 = vpop.permute.xlu2 %2980 }
 0x25c   : > { %v2825_v56 = vadd.f32 %v2793_v45, %v2664_v48  ;;  %v3207_v48 = vmax.f32 %v3175_v11, 0.0  ;;  %v3269_v4 = vmul.f32 %v3237_v41, %v6725_v59  ;;  %v3238_v63 = vmin.f32 %v3206_v60, 6.0  ;;  %v8116_v41 = vld [vmem:[#allocation139_spill] sm:$0xff] }
 0x25d   : > { %v2528_v39 = vpop.permute.xlu1 %2527  ;;  %v2210_v52 = vpop.permute.xlu0 %2209  ;;  %v3209_v9 = vmax.f32 %v3177_v40, 0.0  ;;  %v6816_v28 = vsel %vm3316_vm1, %v6792_v22, 0.0  ;;  %v3178_v51 = vadd.f32 3.0, %v6804_v27  ;;  %v6825_v59 = vadd.f32 %v6502_v6, %v6721_v20 }
 0x25e   : > { %v3114_v37 = vadd.f32 %v3082_v46, %v2825_v56  ;;  %vm2568_vm5 = vcmp.eq.s32.totalorder %v2528_v39, 1  ;;  %vm2248_vm7 = vcmp.eq.s32.totalorder %v2210_v52, 1  ;;  %v3338_v46 = vsel %vm3316_vm1, %v6788_v24, 0.0 }
 0x25f   : > { %v2600_v33 = vsel %vm2568_vm5, %v8115_v25, 0.0  ;;  %v2280_v45 = vsel %vm2248_vm7, %v8113_v8, 0.0  ;;  %v6821_v8 = vadd.f32 %v6502_v6, %v6677_v32  ;;  %v3335_v56 = vadd.f32 %v6700_v55, %v3333_v2 }
 0x260   : > { %v2633_v16 = vmul.f32 %v6147_v3, %v2600_v33  ;;  %v2313_v0 = vmul.f32 %v5831_v15, %v2280_v45  ;;  %v6829_v60 = vmul.f32 0.16666667, %v3267_v26  ;;  %v6831_v40 = vmul.f32 0.16666667, %v3268_v36  ;;  %v8118_v36 = vld [vmem:[#allocation32_spill] sm:$0xff] }
 0x261   : > { %v3239_v39 = vmin.f32 %v3207_v48, 6.0  ;;  %v3240_v43 = vmin.f32 %v3208_v18, 6.0  ;;  %v3270_v32 = vmul.f32 %v3238_v63, %v6762_v30  ;;  %v3241_v52 = vmin.f32 %v3209_v9, 6.0  ;;  %v8120_v9 = vld [vmem:[#allocation148_spill] sm:$0xff] }
 0x262   : > { %v2665_v62 = vadd.f32 %v2633_v16, %v2344_v23  ;;  %v2345_v11 = vadd.f32 %v2313_v0, %v8116_v41  ;;  %8117 = vst [vmem:[#allocation42_spill] sm:$0xff] %v6829_v60  ;;  %v6833_v23 = vmul.f32 0.16666667, %v3269_v4  ;;  %v3337_v20 = vadd.f32 %v6743_v1, %v3335_v56  ;;  %v8119_v16 = vld [vmem:[#allocation95_spill] sm:$0xff] }
 0x263   : > { %v3210_v33 = vmax.f32 %v3178_v51, 0.0  ;;  %vm3018_vm8 = vcmp.eq.s32.totalorder %v6786_v54, 1  ;;  %vm3019_vm9 = vcmp.eq.s32.totalorder %v2981_v38, 1  ;;  %v3179_v55 = vadd.f32 3.0, %v6821_v8  ;;  %v8121_v51 = vld [vmem:[#allocation12_spill] sm:$0xff]  ;;  %v8122_v38 = vld [vmem:[#allocation2_spill] sm:$0xff] }
 0x264   : > { %v3180_v26 = vadd.f32 3.0, %v6825_v59  ;;  %v3339_v48 = vadd.f32 %v3338_v46, %v3337_v20  ;;  %v3271_v18 = vmul.f32 %v3239_v39, %v6771_v53  ;;  %v3272_v30 = vmul.f32 %v3240_v43, %v6775_v14 }
 0x265   : > { %v2531_v25 = vpop.permute.xlu1 %2530  ;;  %v2213_v45 = vpop.permute.xlu0 %2212  ;;  %v2794_v1 = vmul.f32 %v7991_v47, %v8119_v16  ;;  %v6848_v54 = vadd.f32 %v6502_v6, %v6765_v50  ;;  %v6851_v63 = vadd.f32 %v6502_v6, %v3114_v37  ;;  %v3050_v0 = vsel %vm3018_vm8, %v8120_v9, 0.0 }
 0x266   : > { %vm2569_vm10 = vcmp.eq.s32.totalorder %v2531_v25, 1  ;;  %v3051_v46 = vsel %vm3019_vm9, %v8121_v51, 0.0  ;;  %v3273_v53 = vmul.f32 %v3241_v52, %v6782_v12  ;;  %v2795_v56 = vmul.f32 %v7991_v47, %v8122_v38 }
 0x267   : > { %v2601_v2 = vsel %vm2569_vm10, %v8118_v36, 0.0  ;;  %v2826_v41 = vadd.f32 %v2794_v1, %v2665_v62  ;;  %v3242_v39 = vmin.f32 %v3210_v33, 6.0  ;;  %v3211_v43 = vmax.f32 %v3179_v55, 0.0 }
 0x268   : > { %v2634_v4 = vmul.f32 %v6147_v3, %v2601_v2  ;;  %v3212_v25 = vmax.f32 %v3180_v26, 0.0  ;;  %v3341_v50 = vadd.f32 %v6750_v19, %v3339_v48  ;;  %v3083_v20 = vmul.f32 %v6756_v17, %v3050_v0 }
 0x269   : > { %v3084_v37 = vmul.f32 %v6756_v17, %v3051_v46  ;;  %vm2249_vm0 = vcmp.eq.s32.totalorder %v2213_v45, 1  ;;  %v3346_v2 = vsel %vm3316_vm1, %v6829_v60, 0.0  ;;  %v6863_v12 = vmul.f32 0.16666667, %v3270_v32 }
 0x26a   : > { %v2666_v14 = vadd.f32 %v2634_v4, %v2345_v11  ;;  %v3181_v62 = vadd.f32 3.0, %v6848_v54  ;;  %v3182_v11 = vadd.f32 3.0, %v6851_v63  ;;  %v6867_v33 = vmul.f32 0.16666667, %v3271_v18 }
 0x26b   : > { %v6869_v55 = vmul.f32 0.16666667, %v3272_v30  ;;  %v3115_v19 = vadd.f32 %v3083_v20, %v2826_v41  ;;  %v6871_v16 = vmul.f32 0.16666667, %v3273_v53  ;;  %v3274_v45 = vmul.f32 %v3242_v39, %v6804_v27  ;;  %v8123_v20 = vld [vmem:[#allocation62_spill] sm:$0xff] }
 0x26c   : > { %v2827_v36 = vadd.f32 %v2795_v56, %v2666_v14  ;;  %v2281_v1 = vsel %vm2249_vm0, %v8120_v9, 0.0  ;;  %v3343_v32 = vadd.f32 %v6706_v61, %v3341_v50  ;;  %v3348_v4 = vsel %vm3316_vm1, %v6831_v40, 0.0 }
 0x26d   : > { %v2534_v52 = vpop.permute.xlu1 %2533  ;;  %v2216_v48 = vpop.permute.xlu0 %2215  ;;  %v3350_v18 = vsel %vm3316_vm1, %v6833_v23, 0.0  ;;  %v3243_v0 = vmin.f32 %v3211_v43, 6.0  ;;  %v3244_v30 = vmin.f32 %v3212_v25, 6.0  ;;  %v3213_v46 = vmax.f32 %v3181_v62, 0.0 }
 0x26e   : > { %v3116_v26 = vadd.f32 %v3084_v37, %v2827_v36  ;;  %v3214_v41 = vmax.f32 %v3182_v11, 0.0  ;;  %vm2250_vm11 = vcmp.eq.s32.totalorder %v2216_v48, 1  ;;  %vm2570_vm12 = vcmp.eq.s32.totalorder %v2534_v52, 1 }
 0x26f   : > { %v3352_v53 = vsel %vm3316_vm1, %v6863_v12, 0.0  ;;  %v3354_v27 = vsel %vm3316_vm1, %v6867_v33, 0.0  ;;  %v6885_v61 = vadd.f32 %v6502_v6, %v3115_v19  ;;  %v2314_v9 = vmul.f32 %v5831_v15, %v2281_v1 }
 0x270   : > { %v3356_v14 = vsel %vm3316_vm1, %v6869_v55, 0.0  ;;  %v3358_v38 = vsel %vm3316_vm1, %v6871_v16, 0.0  ;;  %v6892_v56 = vmul.f32 0.16666667, %v3274_v45  ;;  %v3345_v39 = vadd.f32 %v6816_v28, %v3343_v32  ;;  %v8124_v45 = vld [vmem:[#allocation165_spill] sm:$0xff] }
 0x271   : > { %v3275_v43 = vmul.f32 %v3243_v0, %v6821_v8  ;;  %v6897_v25 = vadd.f32 %v6502_v6, %v3116_v26  ;;  %v2282_v50 = vsel %vm2250_vm11, %v8121_v51, 0.0  ;;  %v2602_v37 = vsel %vm2570_vm12, %v8123_v20, 0.0 }
 0x272   : > { %v3276_v36 = vmul.f32 %v3244_v30, %v6825_v59  ;;  %v3245_v62 = vmin.f32 %v3213_v46, 6.0  ;;  %v3246_v11 = vmin.f32 %v3214_v41, 6.0  ;;  %v3347_v19 = vadd.f32 %v3346_v2, %v3345_v39  ;;  %v8125_v59 = vld [vmem:[#allocation109_spill] sm:$0xff]  ;;  %v8126_v46 = vld [vmem:[#allocation48_spill] sm:$0xff] }
 0x273   : > { %v3183_v48 = vadd.f32 3.0, %v6885_v61  ;;  %v2346_v1 = vadd.f32 %v2314_v9, %v8124_v45  ;;  %v2315_v26 = vmul.f32 %v5831_v15, %v2282_v50  ;;  %v2635_v0 = vmul.f32 %v6147_v3, %v2602_v37  ;;  %v8127_v9 = vld [vmem:[#allocation80_spill] sm:$0xff] }
 0x274   : > { %v3349_v51 = vadd.f32 %v3348_v4, %v3347_v19  ;;  %v3184_v20 = vadd.f32 3.0, %v6897_v25  ;;  %v3360_v50 = vsel %vm3316_vm1, %v6892_v56, 0.0  ;;  %vm3396_vm7 = vcmask 257024  }
 0x275   : > { %v3831_v52 = vpop.permute.xlu1 %3830  ;;  %v2219_v28 = vpop.permute.xlu0 %2218  ;;  %v3215_v19 = vmax.f32 %v3183_v48, 0.0 }
 0x276   : > { %v3833_v32 = vunpack.i.h.bf16 %v3831_v52  ;;  %v3832_v8 = vunpack.i.l.bf16 %v3831_v52  ;;  %vm2251_vm13 = vcmp.eq.s32.totalorder %v2219_v28, 1  ;;  %v3351_v45 = vadd.f32 %v3350_v18, %v3349_v51  ;;  %v8129_v18 = vld [vmem:[#allocation152_spill] sm:$0xff] }
 0x277   : > { %v2283_v30 = vsel %vm2251_vm13, %v8125_v59, 0.0  ;;  %v6913_v52 = vmul.f32 0.16666667, %v3275_v43  ;;  %v2667_v28 = vadd.f32 %v2635_v0, %v2346_v1  ;;  %v2796_v51 = vmul.f32 %v7991_v47, %v8129_v18 }
 0x278   : > { %vm2572_vm14 = vcmp.eq.s32.totalorder %v3833_v32, 1  ;;  %vm2571_vm15 = vcmp.eq.s32.totalorder %v3832_v8, 1  ;;  %v2316_v2 = vmul.f32 %v5831_v15, %v2283_v30  ;;  %v8128_v32 = vld [vmem:[#allocation15_spill] sm:$0xff]  ;;  %v3353_v60 = vadd.f32 %v3352_v53, %v3351_v45 }
 0x279   : > { %v2603_v41 = vsel %vm2571_vm15, %v8126_v46, 0.0  ;;  %v2604_v39 = vsel %vm2572_vm14, %v8127_v9, 0.0  ;;  %v6918_v15 = vmul.f32 0.16666667, %v3276_v36  ;;  %v3216_v30 = vmax.f32 %v3184_v20, 0.0 }
 0x27a   : > { %v2636_v4 = vmul.f32 %v6147_v3, %v2603_v41  ;;  %v2637_v37 = vmul.f32 %v6147_v3, %v2604_v39  ;;  %v2348_v8 = vadd.f32 %v2316_v2, %v8128_v32  ;;  %v2347_v46 = vadd.f32 %v2315_v26, %v6295_v21 }
 0x27b   : > { %v3277_v43 = vmul.f32 %v3245_v62, %v6848_v54  ;;  %v3278_v9 = vmul.f32 %v3246_v11, %v6851_v63  ;;  %v3355_v41 = vadd.f32 %v3354_v27, %v3353_v60  ;;  %v2797_v3 = vmul.f32 0.0, %v7991_v47 }
 0x27c   : > { %v2668_v1 = vadd.f32 %v2636_v4, %v2347_v46  ;;  %v2669_v0 = vadd.f32 %v2637_v37, %v2348_v8  ;;  %v3247_v39 = vmin.f32 %v3215_v19, 6.0  ;;  %v2828_v20 = vadd.f32 %v2796_v51, %v2667_v28 }
 0x27d   : > { %v3836_v48 = vpop.permute.xlu1 %3835  ;;  %v2984_v2 = vpop.permute.xlu0 %2983  ;;  %v3357_v21 = vadd.f32 %v3356_v14, %v3355_v41  ;;  %v3248_v26 = vmin.f32 %v3216_v30, 6.0  ;;  %v3362_v14 = vsel %vm3316_vm1, %v6913_v52, 0.0  ;;  %v6934_v37 = vmul.f32 0.16666667, %v3277_v43 }
 0x27e   : > { %v3838_v53 = vunpack.i.h.bf16 %v3836_v48  ;;  %v3837_v36 = vunpack.i.l.bf16 %v3836_v48  ;;  %vm3020_vm2 = vcmp.eq.s32.totalorder %v2984_v2, 1  ;;  %v2829_v27 = vadd.f32 %v2797_v3, %v2668_v1 }
 0x27f   : > { %v3052_v45 = vsel %vm3020_vm2, %v8125_v59, 0.0  ;;  %v3359_v60 = vadd.f32 %v3358_v38, %v3357_v21  ;;  %v2830_v62 = vadd.f32 %v2797_v3, %v2669_v0  ;;  %v3279_v59 = vmul.f32 %v3247_v39, %v6885_v61 }
 0x280   : > { %vm3022_vm3 = vcmp.eq.s32.totalorder %v3838_v53, 1  ;;  %vm3021_vm4 = vcmp.eq.s32.totalorder %v3837_v36, 1  ;;  %v3085_v54 = vmul.f32 %v6756_v17, %v3052_v45  ;;  %v3364_v38 = vsel %vm3316_vm1, %v6918_v15, 0.0 }
 0x281   : > { %v3053_v47 = vsel %vm3021_vm4, %v8040_v34, 0.0  ;;  %v3054_v63 = vsel %vm3022_vm3, %v8015_v44, 0.0  ;;  %v3361_v34 = vadd.f32 %v3360_v50, %v3359_v60  ;;  %v6939_v32 = vmul.f32 0.16666667, %v3278_v9 }
 0x282   : > { %v3086_v11 = vmul.f32 %v6756_v17, %v3053_v47  ;;  %v3087_v4 = vmul.f32 %v6756_v17, %v3054_v63  ;;  %v3117_v19 = vadd.f32 %v3085_v54, %v2828_v20  ;;  %v3280_v8 = vmul.f32 %v3248_v26, %v6897_v25 }
 0x283   : > { %v3363_v30 = vadd.f32 %v3362_v14, %v3361_v34  ;;  %v3366_v61 = vsel %vm3316_vm1, %v6934_v37, 0.0  ;;  %v6947_v51 = vmul.f32 0.16666667, %v3279_v59  ;;  %v3889_v9 = vmov 256.0  }
 0x284   : > { %v3118_v28 = vadd.f32 %v3086_v11, %v2829_v27  ;;  %v3119_v44 = vadd.f32 %v3087_v4, %v2830_v62  ;;  %v3153_v17 = vadd.f32 %v6502_v6, %v3117_v19  ;;  %3843 = vrcp.f32 %v3889_v9  ;;  %v3394_v9 = vld [vmem:[%s7186_s6] sm:$0xf] }
 0x285   : > { %v3365_v50 = vadd.f32 %v3364_v38, %v3363_v30  ;;  %v3368_v25 = vsel %vm3316_vm1, %v6939_v32, 0.0  ;;  %v6951_v48 = vmul.f32 0.16666667, %v3280_v8  ;;  %v3370_v53 = vsel %vm3316_vm1, %v6947_v51, 0.0 }
 0x286   : > { %v3154_v46 = vadd.f32 %v6502_v6, %v3118_v28  ;;  %v3155_v18 = vadd.f32 %v6502_v6, %v3119_v44  ;;  %v3185_v43 = vadd.f32 3.0, %v3153_v17 }
 0x287   : > { %v3367_v0 = vadd.f32 %v3366_v61, %v3365_v50  ;;  %v3372_v45 = vsel %vm3316_vm1, %v6951_v48, 0.0 }
 0x288   : > { %v3186_v41 = vadd.f32 3.0, %v3154_v46  ;;  %v3187_v3 = vadd.f32 3.0, %v3155_v18  ;;  %v3217_v1 = vmax.f32 %v3185_v43, 0.0 }
 0x289   : > { %v3369_v39 = vadd.f32 %v3368_v25, %v3367_v0 }
 0x28a   : > { %v3218_v2 = vmax.f32 %v3186_v41, 0.0  ;;  %v3219_v6 = vmax.f32 %v3187_v3, 0.0  ;;  %v3249_v36 = vmin.f32 %v3217_v1, 6.0  ;;  %v3844_v54 = vpop.eup %3843 }
 0x28b   : > { %v3371_v60 = vadd.f32 %v3370_v53, %v3369_v39  ;;  %v3387_v59 = vmul.f32 256.0, %v3844_v54  ;;  %vm3391_vm5 = vweird.f32 %v3844_v54  ;;  %v3802_v39 = vld [vmem:[%s7190_s10 + $0x8] sm:$0xff] }
 0x28c   : > { %v3250_v20 = vmin.f32 %v3218_v2, 6.0  ;;  %v3251_v21 = vmin.f32 %v3219_v6, 6.0  ;;  %v3281_v26 = vmul.f32 %v3249_v36, %v3153_v17  ;;  %v3400_v2 = vld [vmem:[%s7187_s7] sm:$0xf]  ;;  %3546 = vmatpush.bf16.msra.mxu1 %v3802_v39  ;;  %3804 = vmatpush.bf16.msra.mxu2 %v3802_v39 }
 0x28d   : > { %v3373_v62 = vadd.f32 %v3372_v45, %v3371_v60  ;;  %v3388_v44 = vsub.f32 1.0, %v3387_v59  ;;  %v3417_v59 = vld [vmem:[%s7189_s9] sm:$0x1] }
 0x28e   : > { %v3282_v47 = vmul.f32 %v3250_v20, %v3154_v46  ;;  %v3283_v63 = vmul.f32 %v3251_v21, %v3155_v18  ;;  %v6957_v27 = vmul.f32 0.16666667, %v3281_v26  ;;  %v3801_v20 = vld [vmem:[%s7190_s10] sm:$0xff] }
 0x28f   : > { %v3389_v30 = vmul.f32 %v3844_v54, %v3388_v44  ;;  %v3403_v21 = vld [vmem:[%s7188_s8] sm:$0xf] }
 0x290   : > { %v6959_v11 = vmul.f32 0.16666667, %v3282_v47  ;;  %v3374_v4 = vsel %vm3316_vm1, %v6957_v27, 0.0  ;;  %v6963_v14 = vmul.f32 0.16666667, %v3283_v63  ;;  %3547 = vmatpush.bf16.msra.mxu1 %v3801_v20  ;;  %3805 = vmatpush.bf16.msra.mxu2 %v3801_v20 }
 0x291   : > { %v3375_v19 = vadd.f32 %v3374_v4, %v3373_v62  ;;  %v3390_v61 = vadd.f32 %v3844_v54, %v3389_v30 }
 0x292   : > { %v3376_v38 = vsel %vm3316_vm1, %v6959_v11, 0.0  ;;  %v3378_v28 = vsel %vm3316_vm1, %v6963_v14, 0.0 }
 0x293   : > { %v3377_v34 = vadd.f32 %v3376_v38, %v3375_v19  ;;  %v3392_v41 = vsel %vm3391_vm5, %v3844_v54, %v3390_v61 }
 0x295   : > { %v3379_v8 = vadd.f32 %v3378_v28, %v3377_v34 }
 0x297   : > { %v3380_v17 = vrot.slane %v3379_v8, 4 }
 0x299   : > { %v3381_v46 = vadd.f32 %v3380_v17, %v3379_v8 }
 0x29b   : > { %v3382_v18 = vrot.slane %v3381_v46, 2 }
 0x29d   : > { %v3383_v43 = vadd.f32 %v3382_v18, %v3381_v46 }
 0x29f   : > { %v3384_v50 = vrot.slane %v3383_v43, 1 }
 0x2a1   : > { %v3385_v3 = vadd.f32 %v3384_v50, %v3383_v43 }
 0x2a3   : > { %v3393_v25 = vmul.f32 %v3392_v41, %v3385_v3 }
 0x2a5   : > { %v3395_v1 = vmul.f32 %v3394_v9, %v3393_v25 }
 0x2a7   : > { %v3397_v0 = vsel %vm3396_vm7, %v3395_v1, 0.0 }
 0x2a8   : > { %3398 = vadd.xlane.f32.xlu2 %v3397_v0 }
 0x31b   : > { %v3399_v6 = vpop.xlane.xlu2 %3398 }
 0x31c   : > { %v3401_v53 = vadd.f32 %v3400_v2, %v3399_v6 }
 0x31e   : > { %v3402_v36 = vmax.f32 %v3401_v53, 0.0 }
 0x320   : > { %3406 = vperm.xlu0 %3816, %v3402_v36  }
 0x392   : > { %v3407_v26 = vpop.permute.xlu0 %3406 }
 0x393   : > { %v3409_v45 = vmul.f32 %v3407_v26, %v3403_v21  ;;  %v8131_v21 = vld [vmem:[#allocation76_spill] sm:$0xff] }
 0x395   : > { %v3410_v54 = vsel %vm3396_vm7, %v3409_v45, 0.0 }
 0x396   : > { %v3411_v60 = vrot.slane %v3410_v54, 4 }
 0x398   : > { %v3412_v47 = vadd.f32 %v3411_v60, %v3410_v54  ;;  %v8132_v54 = vld [vmem:[#allocation42_spill] sm:$0xff] }
 0x39a   : > { %v3413_v63 = vrot.slane %v3412_v47, 2 }
 0x39c   : > { %v3414_v62 = vadd.f32 %v3413_v63, %v3412_v47 }
 0x39e   : > { %v3415_v4 = vrot.slane %v3414_v62, 1 }
 0x3a0   : > { %v3416_v19 = vadd.f32 %v3415_v4, %v3414_v62 }
 0x3a2   : > { %v3418_v38 = vadd.f32 %v3417_v59, %v3416_v19 }
 0x3a4   : > { %v3419_v34 = vmul.f32 0.16666667, %v3418_v38 }
 0x3a6   : > { %v3420_v28 = vadd.f32 0.5, %v3419_v34  ;;  %v3849_v34 = vld [vmem:[%s4014_s20 + $0x80] sm:$0xff] }
 0x3a8   : > { %v3421_v44 = vmax.f32 %v3420_v28, 0.0 }
 0x3aa   : > { %v3422_v8 = vmin.f32 %v3421_v44, 1.0 }
 0x3ac   : > { %v3423_v17 = vperm.slane %v3422_v8, 0  ;;  %v3850_v8 = vld [vmem:[%s4014_s20 + $0x8] sm:$0xff] }
 0x3ae   : > { %v3424_v30 = vmul.f32 %v3423_v17, %v6675_v31  ;;  %v3425_v46 = vmul.f32 %v3423_v17, %v6679_v5  ;;  %v3440_v18 = vmul.f32 %v3423_v17, %v6831_v40  ;;  %v3441_v61 = vmul.f32 %v3423_v17, %v6833_v23 }
 0x3af   : > { %v3426_v41 = vmul.f32 %v3423_v17, %v6557_v13  ;;  %v3427_v3 = vmul.f32 %v3423_v17, %v6555_v42  ;;  %v3442_v9 = vmul.f32 %v3423_v17, %v6863_v12  ;;  %v3443_v31 = vmul.f32 %v3423_v17, %v6867_v33 }
 0x3b0   : > { %v3456_v43 = vpack.c.bf16 %v3425_v46, %v3424_v30  ;;  %v3464_v50 = vpack.c.bf16 %v3441_v61, %v3440_v18  ;;  %v3428_v40 = vmul.f32 %v3423_v17, %v6597_v35  ;;  %v3429_v23 = vmul.f32 %v3423_v17, %v6636_v57  ;;  %v3851_v61 = vld [vmem:[%s4014_s20 + $0x88] sm:$0xff] }
 0x3b1   : > { %v3457_v25 = vpack.c.bf16 %v3427_v3, %v3426_v41  ;;  %v3465_v5 = vpack.c.bf16 %v3443_v31, %v3442_v9  ;;  %v3444_v1 = vmul.f32 %v3423_v17, %v6869_v55  ;;  %v3445_v13 = vmul.f32 %v3423_v17, %v6871_v16  ;;  %v3852_v41 = vld [vmem:[%s4014_s20 + $0x10] sm:$0xff] }
 0x3b2   : > { %3781 = vmatmul.msk.bf16.vlgmr.msra.gmra.mxu1 %vm3316_vm1, %v3456_v43  ;;  %3789 = vmatmul.msk.bf16.vlgmr.msra.gmra.mxu2 %vm3316_vm1, %v3464_v50  ;;  %v3458_v0 = vpack.c.bf16 %v3429_v23, %v3428_v40  ;;  %v3430_v12 = vmul.f32 %v3423_v17, %v6595_v29  ;;  %v3431_v33 = vmul.f32 %v3423_v17, %v6638_v49 }
 0x3b3   : > { %v3466_v42 = vpack.c.bf16 %v3445_v13, %v3444_v1  ;;  %v3446_v2 = vmul.f32 %v3423_v17, %v6892_v56  ;;  %v3447_v35 = vmul.f32 %v3423_v17, %v6913_v52  ;;  %v3432_v55 = vmul.f32 %v3423_v17, %v6702_v58  ;;  %v3854_v1 = vld [vmem:[%s4014_s20 + $0x18] sm:$0xff] }
 0x3b4   : > { %v3459_v6 = vpack.c.bf16 %v3431_v33, %v3430_v12  ;;  %v3433_v16 = vmul.f32 %v3423_v17, %v6669_v10  ;;  %v3448_v53 = vmul.f32 %v3423_v17, %v6918_v15  ;;  %v3449_v29 = vmul.f32 %v3423_v17, %v6934_v37  ;;  %v8130_v15 = vld [vmem:[#allocation75_spill] sm:$0xff]  ;;  %v3855_v33 = vld [vmem:[%s4014_s20 + $0x98] sm:$0xff] }
 0x3b5   : > { %v3467_v57 = vpack.c.bf16 %v3447_v35, %v3446_v2  ;;  %v3434_v56 = vmul.f32 %v3423_v17, %v6711_v7  ;;  %v3435_v52 = vmul.f32 %v3423_v17, %v6788_v24  ;;  %v3450_v39 = vmul.f32 %v3423_v17, %v6939_v32 }
 0x3b6   : > { %v3460_v36 = vpack.c.bf16 %v3433_v16, %v3432_v55  ;;  %v3468_v49 = vpack.c.bf16 %v3449_v29, %v3448_v53  ;;  %v3451_v58 = vmul.f32 %v3423_v17, %v6947_v51  ;;  %v3436_v37 = vmul.f32 %v3423_v17, %v8130_v15  ;;  %v3857_v29 = vld [vmem:[%s4014_s20 + $0xa0] sm:$0xff] }
 0x3b7   : > { %v3461_v20 = vpack.c.bf16 %v3435_v52, %v3434_v56  ;;  %v3437_v26 = vmul.f32 %v3423_v17, %v8131_v21  ;;  %v3452_v45 = vmul.f32 %v3423_v17, %v6951_v48  ;;  %v3453_v7 = vmul.f32 %v3423_v17, %v6957_v27  ;;  %v7040_v27 = vld [vmem:[%s7191_s11] ss:$0 sm:$0xff]  ;;  %v3858_v56 = vld [vmem:[%s4014_s20 + $0x28] sm:$0xff]  ;;  %v3860_v21 = vld [vmem:[%s4014_s20 + $0x30] sm:$0xff] }
 0x3b8   : > { %v3469_v10 = vpack.c.bf16 %v3451_v58, %v3450_v39  ;;  %v3438_v51 = vmul.f32 %v3423_v17, %v6792_v22  ;;  %v3439_v60 = vmul.f32 %v3423_v17, %v8132_v54  ;;  %v3454_v47 = vmul.f32 %v3423_v17, %v6959_v11  ;;  %v3848_v11 = vld [vmem:[%s4014_s20] sm:$0xff] }
 0x3b9   : > { %v3462_v24 = vpack.c.bf16 %v3437_v26, %v3436_v37  ;;  %v3470_v32 = vpack.c.bf16 %v3453_v7, %v3452_v45  ;;  %v3455_v63 = vmul.f32 %v3423_v17, %v6963_v14 }
 0x3ba   : > { %v3463_v48 = vpack.c.bf16 %v3439_v60, %v3438_v51  ;;  %v3862_v60 = vld [vmem:[%s4014_s20 + $0x38] sm:$0xff] }
 0x3bb   : > { %v3471_v62 = vpack.c.bf16 %v3455_v63, %v3454_v47 }
 0x3c2   : > { %3782 = vmatmul.msk.bf16.gmra.mxu1 %vm3316_vm1, %v3457_v25  ;;  %3790 = vmatmul.msk.bf16.gmra.mxu2 %vm3316_vm1, %v3465_v5  ;;  %v3853_v5 = vld [vmem:[%s4014_s20 + $0x90] sm:$0xff] }
 0x3d2   : > { %3783 = vmatmul.msk.bf16.gmra.mxu1 %vm3316_vm1, %v3458_v0  ;;  %3791 = vmatmul.msk.bf16.gmra.mxu2 %vm3316_vm1, %v3466_v42 }
 0x3e2   : > { %3784 = vmatmul.msk.bf16.gmra.mxu1 %vm3316_vm1, %v3459_v6  ;;  %3792 = vmatmul.msk.bf16.gmra.mxu2 %vm3316_vm1, %v3467_v57  ;;  %v3856_v6 = vld [vmem:[%s4014_s20 + $0x20] sm:$0xff] }
 0x3f2   : > { %3785 = vmatmul.msk.bf16.gmra.mxu1 %vm3316_vm1, %v3460_v36  ;;  %3793 = vmatmul.msk.bf16.gmra.mxu2 %vm3316_vm1, %v3468_v49 }
 0x402   : > { %3786 = vmatmul.msk.bf16.gmra.mxu1 %vm3316_vm1, %v3461_v20  ;;  %3794 = vmatmul.msk.bf16.gmra.mxu2 %vm3316_vm1, %v3469_v10  ;;  %v3859_v10 = vld [vmem:[%s4014_s20 + $0xa8] sm:$0xff] }
 0x412   : > { %3787 = vmatmul.msk.bf16.gmra.mxu1 %vm3316_vm1, %v3462_v24  ;;  %3795 = vmatmul.msk.bf16.gmra.mxu2 %vm3316_vm1, %v3470_v32  ;;  %v3861_v32 = vld [vmem:[%s4014_s20 + $0xb0] sm:$0xff] }
 0x422   : > { %3788 = vmatmul.msk.bf16.gmra.mxu1 %vm3316_vm1, %v3463_v48  ;;  %3796 = vmatmul.msk.bf16.gmra.mxu2 %vm3316_vm1, %v3471_v62 }
 0x42f   : > { %v3549_v22 = vpop.f32.mrf.mxu1 }
 0x430   : > { %v3550_v4 = vadd.f32 %v7040_v27, %v3549_v22  ;;  %v3863_v22 = vld [vmem:[%s4014_s20 + $0xb8] sm:$0xff] }
 0x432   : > { %v3629_v14 = vadd.f32 %v3848_v11, %v3550_v4 }
 0x434   : > { %3661 = vst.msk [vmem:[%s7048_s23] sm:$0xff] %vm468_vm6, %v3629_v14  ;;  %v3864_v14 = vld [vmem:[%s4014_s20 + $0x40] sm:$0xff] }
 0x435   : > { %v3589_v59 = vpop.f32.mrf.mxu2 }
 0x436   : > { %v3590_v19 = vadd.f32 %v7040_v27, %v3589_v59 }
 0x437   : > { %v3551_v38 = vpop.f32.mrf.mxu1 }
 0x438   : > { %v3645_v28 = vadd.f32 %v3849_v34, %v3590_v19  ;;  %v3552_v44 = vadd.f32 %v7040_v27, %v3551_v38 }
 0x43a   : > { %3677 = vst.msk [vmem:[%s7048_s23 + $0x80] sm:$0xff] %vm468_vm6, %v3645_v28  ;;  %v3630_v17 = vadd.f32 %v3850_v8, %v3552_v44  ;;  %v3865_v28 = vld [vmem:[%s4014_s20 + $0xc0] sm:$0xff] }
 0x43c   : > { %3662 = vst.msk [vmem:[%s7048_s23 + $0x8] sm:$0xff] %vm468_vm6, %v3630_v17  ;;  %v3866_v17 = vld [vmem:[%s4014_s20 + $0x48] sm:$0xff] }
 0x43d   : > { %v3591_v30 = vpop.f32.mrf.mxu2 }
 0x43e   : > { %v3592_v46 = vadd.f32 %v7040_v27, %v3591_v30 }
 0x43f   : > { %v3554_v18 = vpop.f32.mrf.mxu1 }
 0x440   : > { %v3646_v43 = vadd.f32 %v3851_v61, %v3592_v46  ;;  %v3555_v50 = vadd.f32 %v7040_v27, %v3554_v18 }
 0x442   : > { %3678 = vst.msk [vmem:[%s7048_s23 + $0x88] sm:$0xff] %vm468_vm6, %v3646_v43  ;;  %v3631_v3 = vadd.f32 %v3852_v41, %v3555_v50  ;;  %v3867_v43 = vld [vmem:[%s4014_s20 + $0xc8] sm:$0xff] }
 0x444   : > { %3663 = vst.msk [vmem:[%s7048_s23 + $0x10] sm:$0xff] %vm468_vm6, %v3631_v3  ;;  %v3868_v3 = vld [vmem:[%s4014_s20 + $0x50] sm:$0xff] }
 0x445   : > { %v3594_v9 = vpop.f32.mrf.mxu2 }
 0x446   : > { %v3595_v31 = vadd.f32 %v7040_v27, %v3594_v9 }
 0x447   : > { %v3556_v25 = vpop.f32.mrf.mxu1 }
 0x448   : > { %v3647_v40 = vadd.f32 %v3853_v5, %v3595_v31  ;;  %v3557_v23 = vadd.f32 %v7040_v27, %v3556_v25 }
 0x44a   : > { %3679 = vst.msk [vmem:[%s7048_s23 + $0x90] sm:$0xff] %vm468_vm6, %v3647_v40  ;;  %v3632_v13 = vadd.f32 %v3854_v1, %v3557_v23  ;;  %v3869_v40 = vld [vmem:[%s4014_s20 + $0xd0] sm:$0xff] }
 0x44c   : > { %3664 = vst.msk [vmem:[%s7048_s23 + $0x18] sm:$0xff] %vm468_vm6, %v3632_v13  ;;  %v3870_v13 = vld [vmem:[%s4014_s20 + $0x58] sm:$0xff] }
 0x44d   : > { %v3596_v0 = vpop.f32.mrf.mxu2 }
 0x44e   : > { %v3597_v42 = vadd.f32 %v7040_v27, %v3596_v0 }
 0x44f   : > { %v3559_v12 = vpop.f32.mrf.mxu1 }
 0x450   : > { %v3648_v2 = vadd.f32 %v3855_v33, %v3597_v42  ;;  %v3560_v35 = vadd.f32 %v7040_v27, %v3559_v12 }
 0x452   : > { %3680 = vst.msk [vmem:[%s7048_s23 + $0x98] sm:$0xff] %vm468_vm6, %v3648_v2  ;;  %v3633_v57 = vadd.f32 %v3856_v6, %v3560_v35  ;;  %v3871_v2 = vld [vmem:[%s4014_s20 + $0xd8] sm:$0xff] }
 0x454   : > { %3665 = vst.msk [vmem:[%s7048_s23 + $0x20] sm:$0xff] %vm468_vm6, %v3633_v57  ;;  %v3872_v57 = vld [vmem:[%s4014_s20 + $0x60] sm:$0xff] }
 0x455   : > { %v3599_v55 = vpop.f32.mrf.mxu2 }
 0x456   : > { %v3600_v16 = vadd.f32 %v7040_v27, %v3599_v55 }
 0x457   : > { %v3561_v53 = vpop.f32.mrf.mxu1 }
 0x458   : > { %v3649_v36 = vadd.f32 %v3857_v29, %v3600_v16  ;;  %v3562_v49 = vadd.f32 %v7040_v27, %v3561_v53 }
 0x45a   : > { %3681 = vst.msk [vmem:[%s7048_s23 + $0xa0] sm:$0xff] %vm468_vm6, %v3649_v36  ;;  %v3634_v52 = vadd.f32 %v3858_v56, %v3562_v49  ;;  %v3873_v36 = vld [vmem:[%s4014_s20 + $0xe0] sm:$0xff] }
 0x45c   : > { %3666 = vst.msk [vmem:[%s7048_s23 + $0x28] sm:$0xff] %vm468_vm6, %v3634_v52  ;;  %v3874_v52 = vld [vmem:[%s4014_s20 + $0x68] sm:$0xff] }
 0x45d   : > { %v3601_v39 = vpop.f32.mrf.mxu2 }
 0x45e   : > { %v3602_v58 = vadd.f32 %v7040_v27, %v3601_v39 }
 0x45f   : > { %v3564_v20 = vpop.f32.mrf.mxu1 }
 0x460   : > { %v3650_v15 = vadd.f32 %v3859_v10, %v3602_v58  ;;  %v3565_v37 = vadd.f32 %v7040_v27, %v3564_v20 }
 0x462   : > { %3682 = vst.msk [vmem:[%s7048_s23 + $0xa8] sm:$0xff] %vm468_vm6, %v3650_v15  ;;  %v3635_v26 = vadd.f32 %v3860_v21, %v3565_v37  ;;  %v3875_v15 = vld [vmem:[%s4014_s20 + $0xe8] sm:$0xff] }
 0x464   : > { %3667 = vst.msk [vmem:[%s7048_s23 + $0x30] sm:$0xff] %vm468_vm6, %v3635_v26  ;;  %v3876_v26 = vld [vmem:[%s4014_s20 + $0x70] sm:$0xff] }
 0x465   : > { %v3604_v45 = vpop.f32.mrf.mxu2 }
 0x466   : > { %v3605_v7 = vadd.f32 %v7040_v27, %v3604_v45 }
 0x467   : > { %v3566_v24 = vpop.f32.mrf.mxu1 }
 0x468   : > { %v3651_v51 = vadd.f32 %v3861_v32, %v3605_v7  ;;  %v3567_v54 = vadd.f32 %v7040_v27, %v3566_v24 }
 0x46a   : > { %3683 = vst.msk [vmem:[%s7048_s23 + $0xb0] sm:$0xff] %vm468_vm6, %v3651_v51  ;;  %v3636_v47 = vadd.f32 %v3862_v60, %v3567_v54  ;;  %v3877_v51 = vld [vmem:[%s4014_s20 + $0xf0] sm:$0xff] }
 0x46c   : > { %3668 = vst.msk [vmem:[%s7048_s23 + $0x38] sm:$0xff] %vm468_vm6, %v3636_v47  ;;  %v3878_v47 = vld [vmem:[%s4014_s20 + $0x78] sm:$0xff] }
 0x46d   : > { %v3606_v63 = vpop.f32.mrf.mxu2 }
 0x46e   : > { %v3607_v48 = vadd.f32 %v7040_v27, %v3606_v63 }
 0x46f   : > { %v3569_v62 = vpop.f32.mrf.mxu1 }
 0x470   : > { %v3652_v4 = vadd.f32 %v3863_v22, %v3607_v48  ;;  %v3570_v11 = vadd.f32 %v7040_v27, %v3569_v62  ;;  %v3879_v22 = vld [vmem:[%s4014_s20 + $0xf8] sm:$0xff] }
 0x472   : > { %3684 = vst.msk [vmem:[%s7048_s23 + $0xb8] sm:$0xff] %vm468_vm6, %v3652_v4  ;;  %v3637_v59 = vadd.f32 %v3864_v14, %v3570_v11 }
 0x474   : > { %3669 = vst.msk [vmem:[%s7048_s23 + $0x40] sm:$0xff] %vm468_vm6, %v3637_v59 }
 0x475   : > { %v3609_v19 = vpop.f32.mrf.mxu2 }
 0x476   : > { %v3610_v38 = vadd.f32 %v7040_v27, %v3609_v19 }
 0x477   : > { %v3571_v34 = vpop.f32.mrf.mxu1 }
 0x478   : > { %v3653_v44 = vadd.f32 %v3865_v28, %v3610_v38  ;;  %v3572_v8 = vadd.f32 %v7040_v27, %v3571_v34 }
 0x47a   : > { %3685 = vst.msk [vmem:[%s7048_s23 + $0xc0] sm:$0xff] %vm468_vm6, %v3653_v44  ;;  %v3638_v30 = vadd.f32 %v3866_v17, %v3572_v8 }
 0x47c   : > { %3670 = vst.msk [vmem:[%s7048_s23 + $0x48] sm:$0xff] %vm468_vm6, %v3638_v30 }
 0x47d   : > { %v3611_v46 = vpop.f32.mrf.mxu2 }
 0x47e   : > { %v3612_v18 = vadd.f32 %v7040_v27, %v3611_v46 }
 0x47f   : > { %v3574_v61 = vpop.f32.mrf.mxu1 }
 0x480   : > { %v3654_v50 = vadd.f32 %v3867_v43, %v3612_v18  ;;  %v3575_v41 = vadd.f32 %v7040_v27, %v3574_v61 }
 0x482   : > { %3686 = vst.msk [vmem:[%s7048_s23 + $0xc8] sm:$0xff] %vm468_vm6, %v3654_v50  ;;  %v3639_v9 = vadd.f32 %v3868_v3, %v3575_v41 }
 0x484   : > { %3671 = vst.msk [vmem:[%s7048_s23 + $0x50] sm:$0xff] %vm468_vm6, %v3639_v9 }
 0x485   : > { %v3614_v31 = vpop.f32.mrf.mxu2 }
 0x486   : > { %v3615_v25 = vadd.f32 %v7040_v27, %v3614_v31 }
 0x487   : > { %v3576_v5 = vpop.f32.mrf.mxu1 }
 0x488   : > { %v3655_v23 = vadd.f32 %v3869_v40, %v3615_v25  ;;  %v3577_v1 = vadd.f32 %v7040_v27, %v3576_v5 }
 0x48a   : > { %3687 = vst.msk [vmem:[%s7048_s23 + $0xd0] sm:$0xff] %vm468_vm6, %v3655_v23  ;;  %v3640_v0 = vadd.f32 %v3870_v13, %v3577_v1 }
 0x48c   : > { %3672 = vst.msk [vmem:[%s7048_s23 + $0x58] sm:$0xff] %vm468_vm6, %v3640_v0 }
 0x48d   : > { %v3616_v42 = vpop.f32.mrf.mxu2 }
 0x48e   : > { %v3617_v12 = vadd.f32 %v7040_v27, %v3616_v42 }
 0x48f   : > { %v3579_v33 = vpop.f32.mrf.mxu1 }
 0x490   : > { %v3656_v35 = vadd.f32 %v3871_v2, %v3617_v12  ;;  %v3580_v6 = vadd.f32 %v7040_v27, %v3579_v33 }
 0x492   : > { %3688 = vst.msk [vmem:[%s7048_s23 + $0xd8] sm:$0xff] %vm468_vm6, %v3656_v35  ;;  %v3641_v55 = vadd.f32 %v3872_v57, %v3580_v6 }
 0x494   : > { %3673 = vst.msk [vmem:[%s7048_s23 + $0x60] sm:$0xff] %vm468_vm6, %v3641_v55 }
 0x495   : > { %v3619_v16 = vpop.f32.mrf.mxu2 }
 0x496   : > { %v3620_v53 = vadd.f32 %v7040_v27, %v3619_v16 }
 0x497   : > { %v3581_v29 = vpop.f32.mrf.mxu1 }
 0x498   : > { %v3657_v49 = vadd.f32 %v3873_v36, %v3620_v53  ;;  %v3582_v56 = vadd.f32 %v7040_v27, %v3581_v29 }
 0x49a   : > { %3689 = vst.msk [vmem:[%s7048_s23 + $0xe0] sm:$0xff] %vm468_vm6, %v3657_v49  ;;  %v3642_v39 = vadd.f32 %v3874_v52, %v3582_v56 }
 0x49c   : > { %3674 = vst.msk [vmem:[%s7048_s23 + $0x68] sm:$0xff] %vm468_vm6, %v3642_v39 }
 0x49d   : > { %v3621_v58 = vpop.f32.mrf.mxu2 }
 0x49e   : > { %v3622_v20 = vadd.f32 %v7040_v27, %v3621_v58 }
 0x49f   : > { %v3584_v10 = vpop.f32.mrf.mxu1 }
 0x4a0   : > { %v3658_v37 = vadd.f32 %v3875_v15, %v3622_v20  ;;  %v3585_v21 = vadd.f32 %v7040_v27, %v3584_v10 }
 0x4a2   : > { %3690 = vst.msk [vmem:[%s7048_s23 + $0xe8] sm:$0xff] %vm468_vm6, %v3658_v37  ;;  %v3643_v45 = vadd.f32 %v3876_v26, %v3585_v21 }
 0x4a4   : > { %3675 = vst.msk [vmem:[%s7048_s23 + $0x70] sm:$0xff] %vm468_vm6, %v3643_v45 }
 0x4a5   : > { %v3624_v7 = vpop.f32.mrf.mxu2 }
 0x4a6   : > { %v3625_v24 = vadd.f32 %v7040_v27, %v3624_v7 }
 0x4a7   : > { %v3586_v32 = vpop.f32.mrf.mxu1 }
 0x4a8   : > { %v3659_v54 = vadd.f32 %v3877_v51, %v3625_v24  ;;  %v3587_v60 = vadd.f32 %v7040_v27, %v3586_v32 }
 0x4aa   : > { %3691 = vst.msk [vmem:[%s7048_s23 + $0xf0] sm:$0xff] %vm468_vm6, %v3659_v54  ;;  %v3644_v63 = vadd.f32 %v3878_v47, %v3587_v60 }
 0x4ac   : > { %3676 = vst.msk [vmem:[%s7048_s23 + $0x78] sm:$0xff] %vm468_vm6, %v3644_v63 }
 0x4ad   : > { %v3626_v48 = vpop.f32.mrf.mxu2 }
 0x4ae   : > { %v3627_v62 = vadd.f32 %v7040_v27, %v3626_v48 }
 0x4b0   : > { %v3660_v4 = vadd.f32 %v3879_v22, %v3627_v62 }
 0x4b2   : > { %3692 = vst.msk [vmem:[%s7048_s23 + $0xf8] sm:$0xff] %vm468_vm6, %v3660_v4 }
 0x4b3 PF: > { %s22_s21 = sadd.s32 1, %s3886_s21  }
 0x4b4   : > { %p19_p4 = scmp.ge.s32.totalorder %s22_s21, 4  }
 0x4b6   :  { %21 = sbr.rel (!%p19_p4) target bundleno = 1 (0x1), region = 98 }

</bundles_post_ra>
